<compile_context>
chip_gen: v6e
topology: v6e:2x2x1
jax: 0.10.0
libtpu: 0.0.40
codegen_flags: <defaults>
</compile_context>

<pallas_src>
import jax
import jax.numpy as jnp
from jax.experimental import pallas as pl
from jax.experimental.pallas import tpu as pltpu


def _resblock_kernel(x_ref, w1_ref, s1_ref, o1_ref, w2_ref, s2_ref, o2_ref,
                     out_ref, pad_ref):
    # x_ref: (Nb, H, W, Cin) block covering Nb batch images.
    Nb, H, W, Cin = x_ref.shape
    Cmid = w1_ref.shape[1]
    bf16 = jnp.bfloat16

    x = x_ref[...]                                     # (Nb, H, W, Cin) f32
    x2 = x.reshape(Nb * H * W, Cin)                    # collapse leading dims

    # ---- Conv 1x1 (channel matmul, bf16 MXU, f32 acc) + folded BN + LeakyReLU
    h = jnp.dot(x2.astype(bf16), w1_ref[...],
                preferred_element_type=jnp.float32)    # (Nb*H*W, Cmid)
    h = h * s1_ref[...] + o1_ref[...]                  # BN scale/offset (bias folded)
    h = jnp.maximum(h, 0.1 * h)                        # LeakyReLU(0.1)
    hb = h.astype(bf16).reshape(Nb, H, W, Cmid)        # single f32 -> bf16 cast

    # ---- build the three dx-shifted copies once (zero column at the edge)
    #      and lane-concat into (Nb, H, W, 3*Cmid); channel block = dx index.
    zcol = jnp.zeros((Nb, H, 1, Cmid), bf16)
    m0 = jnp.concatenate([zcol, hb[:, :, :W - 1, :]], axis=2)   # h[.., x-1, :]
    m2 = jnp.concatenate([hb[:, :, 1:, :], zcol], axis=2)       # h[.., x+1, :]
    g = jnp.concatenate([m0, hb, m2], axis=3)          # (Nb, H, W, 3*Cmid)

    # ---- H-padded bf16 scratch: the two zero border rows are written only on
    #      the first grid step (scratch persists; interior never touches them).
    @pl.when(pl.program_id(0) == 0)
    def _():
        zrow = jnp.zeros((Nb, 1, W, 3 * Cmid), pad_ref.dtype)
        pad_ref[:, 0:1, :, :] = zrow
        pad_ref[:, H + 1:H + 2, :, :] = zrow

    pad_ref[:, 1:H + 1, :, :] = g                      # aligned interior store

    # ---- Conv 3x3 (padding=1): 3 matmuls, one per kernel row dy, K = 3*Cmid.
    #      Each slab read is an outer-dim (H) offset -> aligned; no im2col buf.
    acc = None
    for dy in range(3):
        slab = pad_ref[:, dy:dy + H, :, :].reshape(Nb * H * W, 3 * Cmid)
        part = jnp.dot(slab, w2_ref[dy],
                       preferred_element_type=jnp.float32)      # (Nb*H*W, Cin)
        acc = part if acc is None else acc + part

    acc = acc * s2_ref[...] + o2_ref[...]              # folded BN (+ conv bias)
    acc = jnp.maximum(acc, 0.1 * acc)                  # LeakyReLU(0.1)

    # ---- residual add, lane-dense store (last dim = Cin) ----
    out_ref[...] = (acc + x2).reshape(Nb, H, W, Cin).astype(out_ref.dtype)


def residual_block_pallas(x_nhwc, kp, *, block_n=None):
    """x_nhwc: (N, H, W, Cin) float32. kp: dict of kernel-format params."""
    N, H, W, Cin = x_nhwc.shape
    Cmid = kp["w1"].shape[1]

    if block_n is None:
        # Small feature maps are per-step-overhead bound: block as many batch
        # images per grid step as fit a modest VMEM budget for the x block.
        per_img = H * W * Cin * x_nhwc.dtype.itemsize
        block_n = max(1, min(N, (2 << 20) // max(per_img, 1)))
        while N % block_n:
            block_n -= 1

    def full(shape):
        return pl.BlockSpec(shape, lambda n, s=shape: (0,) * len(s))

    return pl.pallas_call(
        _resblock_kernel,
        out_shape=jax.ShapeDtypeStruct((N, H, W, Cin), x_nhwc.dtype),
        grid_spec=pltpu.PrefetchScalarGridSpec(
            num_scalar_prefetch=0,
            grid=(N // block_n,),
            in_specs=[
                pl.BlockSpec((block_n, H, W, Cin), lambda n: (n, 0, 0, 0)),  # x
                full((Cin, Cmid)),            # w1 (bf16)
                full((1, Cmid)),              # bn1 scale
                full((1, Cmid)),              # bn1 offset (conv bias folded)
                full((3, 3 * Cmid, Cin)),     # w2: one (3*Cmid, Cin) slab per dy (bf16)
                full((1, Cin)),               # bn2 scale
                full((1, Cin)),               # bn2 offset (conv bias folded)
            ],
            out_specs=pl.BlockSpec((block_n, H, W, Cin), lambda n: (n, 0, 0, 0)),
            scratch_shapes=[
                pltpu.VMEM((block_n, H + 2, W, 3 * Cmid), jnp.bfloat16)],
        ),
        # "arbitrary": the border init is hoisted to grid step 0, so every
        # step must run on the core that zeroed the scratch (a megacore-
        # partitioned "parallel" axis would break that).  Measured impact of
        # parallel vs arbitrary on single-TC chips is ~0.
        compiler_params=pltpu.CompilerParams(
            dimension_semantics=("arbitrary",)),
    )(x_nhwc, kp["w1"], kp["s1"], kp["o1"], kp["w2r"], kp["s2"], kp["o2"])


def make_params(key, input_channel, mid_channel):
    """Raw (PyTorch-equivalent) parameters, eval-mode BN running stats."""
    ks = jax.random.split(key, 12)
    n = lambda k, s: jax.random.normal(k, s, jnp.float32)
    return dict(
        # conv1 weight: PyTorch (Cmid, Cin, 1, 1) stored transposed as (Cin, Cmid)
        w1=0.1 * n(ks[0], (input_channel, mid_channel)),
        b1=0.1 * n(ks[1], (mid_channel,)),
        g1=1.0 + 0.1 * n(ks[2], (mid_channel,)),
        be1=0.1 * n(ks[3], (mid_channel,)),
        rm1=0.1 * n(ks[4], (mid_channel,)),
        rv1=jnp.abs(1.0 + 0.1 * n(ks[5], (mid_channel,))),
        # conv2 weight: PyTorch (Cin, Cmid, 3, 3) stored as HWIO (3, 3, Cmid, Cin)
        w2=0.1 * n(ks[6], (3, 3, mid_channel, input_channel)),
        b2=0.1 * n(ks[7], (input_channel,)),
        g2=1.0 + 0.1 * n(ks[8], (input_channel,)),
        be2=0.1 * n(ks[9], (input_channel,)),
        rm2=0.1 * n(ks[10], (input_channel,)),
        rv2=jnp.abs(1.0 + 0.1 * n(ks[11], (input_channel,))),
    )


def fold_params(p, eps=1e-5):
    """Fold BN (eval stats) and conv biases; cast matmul weights to bf16."""
    Cin, Cmid = p["w1"].shape
    s1 = p["g1"] / jnp.sqrt(p["rv1"] + eps)
    o1 = p["be1"] - p["rm1"] * s1 + p["b1"] * s1      # conv bias folded in
    s2 = p["g2"] / jnp.sqrt(p["rv2"] + eps)
    o2 = p["be2"] - p["rm2"] * s2 + p["b2"] * s2
    return dict(
        w1=p["w1"].astype(jnp.bfloat16),                              # (Cin, Cmid)
        # per-dy slabs, (dx, cmid) flattened row-major -> matches the lane
        # concat order [h(x-1), h(x), h(x+1)] built inside the kernel
        w2r=p["w2"].reshape(3, 3 * Cmid, Cin).astype(jnp.bfloat16),   # (3, 3*Cmid, Cin)
        s1=s1.reshape(1, Cmid), o1=o1.reshape(1, Cmid),
        s2=s2.reshape(1, Cin), o2=o2.reshape(1, Cin),
    )


def reference_forward(x_nhwc, p, eps=1e-5):
    """Independent reference: explicit conv + bias + BN + LeakyReLU + residual.

    Conv inputs are cast to bf16 (f32 accumulation) to mirror the kernel's
    MXU numerics; everything else is f32.
    """
    dn = ("NHWC", "HWIO", "NHWC")
    Cin, Cmid = p["w1"].shape
    bf = jnp.bfloat16
    s1 = p["g1"] / jnp.sqrt(p["rv1"] + eps)
    o1 = p["be1"] - p["rm1"] * s1
    s2 = p["g2"] / jnp.sqrt(p["rv2"] + eps)
    o2 = p["be2"] - p["rm2"] * s2

    h = jax.lax.conv_general_dilated(
        x_nhwc.astype(bf), p["w1"].reshape(1, 1, Cin, Cmid).astype(bf),
        (1, 1), "VALID", dimension_numbers=dn,
        preferred_element_type=jnp.float32)
    h = (h + p["b1"]) * s1 + o1
    h = jnp.where(h > 0, h, 0.1 * h)

    y = jax.lax.conv_general_dilated(
        h.astype(bf), p["w2"].astype(bf), (1, 1), ((1, 1), (1, 1)),
        dimension_numbers=dn, preferred_element_type=jnp.float32)
    y = (y + p["b2"]) * s2 + o2
    y = jnp.where(y > 0, y, 0.1 * y)
    return x_nhwc + y


if __name__ == "__main__":
    key = jax.random.PRNGKey(0)
    k_x, k_p = jax.random.split(key)

    # Real DarkNet53 residual-block config (stage 2): mid = in // 2.
    # Cin = 128 keeps the NHWC output stores lane-dense (last dim = 128).
    N, Cin, H, W = 2, 128, 16, 16
    Cmid = Cin // 2

    x_nchw = jax.random.normal(k_x, (N, Cin, H, W), jnp.float32)  # PyTorch layout
    x_nhwc = jnp.transpose(x_nchw, (0, 2, 3, 1))                  # kernel layout

    raw_params = make_params(k_p, Cin, Cmid)
    kernel_params = fold_params(raw_params)

    out_nhwc = residual_block_pallas(x_nhwc, kernel_params)
    out_nhwc = jax.block_until_ready(out_nhwc)

    ref = reference_forward(x_nhwc, raw_params)
    assert jnp.allclose(out_nhwc, ref, atol=1e-2, rtol=1e-2), \
        "mismatch vs reference"

    # back to NCHW to match the PyTorch module's output convention
    out_nchw = jnp.transpose(out_nhwc, (0, 3, 1, 2))
    jax.block_until_ready(out_nchw)
    print("KERNEL_OK")
</pallas_src>

<mosaic_0001>
module attributes {stable_mosaic.version = 11 : i64} {
  func.func @_resblock_kernel(%arg0: i32, %arg1: memref<2x16x16x128xf32, #tpu.memory_space<vmem>>, %arg2: memref<128x64xbf16, #tpu.memory_space<vmem>>, %arg3: memref<1x64xf32, #tpu.memory_space<vmem>>, %arg4: memref<1x64xf32, #tpu.memory_space<vmem>>, %arg5: memref<3x192x128xbf16, #tpu.memory_space<vmem>>, %arg6: memref<1x128xf32, #tpu.memory_space<vmem>>, %arg7: memref<1x128xf32, #tpu.memory_space<vmem>>, %arg8: memref<2x16x16x128xf32, #tpu.memory_space<vmem>>, %arg9: memref<2x18x16x192xbf16, #tpu.memory_space<vmem>>) attributes {dimension_semantics = [#tpu.dimension_semantics<arbitrary>], iteration_bounds = array<i64: 1>, scalar_prefetch = 0 : i64, scratch_operands = 1 : i64, tpu.core_type = #tpu.core_type<tc>, window_params = [{transform_indices = @transform_0, window_bounds = array<i64: 2, 16, 16, 128>}, {pipeline_mode = #tpu.pipeline_mode<synchronous>, transform_indices = @transform_1, window_bounds = array<i64: 128, 64>}, {pipeline_mode = #tpu.pipeline_mode<synchronous>, transform_indices = @transform_2, window_bounds = array<i64: 1, 64>}, {pipeline_mode = #tpu.pipeline_mode<synchronous>, transform_indices = @transform_3, window_bounds = array<i64: 1, 64>}, {pipeline_mode = #tpu.pipeline_mode<synchronous>, transform_indices = @transform_4, window_bounds = array<i64: 3, 192, 128>}, {pipeline_mode = #tpu.pipeline_mode<synchronous>, transform_indices = @transform_5, window_bounds = array<i64: 1, 128>}, {pipeline_mode = #tpu.pipeline_mode<synchronous>, transform_indices = @transform_6, window_bounds = array<i64: 1, 128>}, {transform_indices = @transform_7, window_bounds = array<i64: 2, 16, 16, 128>}]} {
    %c0 = arith.constant 0 : index
    %c0_0 = arith.constant 0 : index
    %c0_1 = arith.constant 0 : index
    %c0_2 = arith.constant 0 : index
    %0 = vector.load %arg1[%c0, %c0_0, %c0_1, %c0_2] : memref<2x16x16x128xf32, #tpu.memory_space<vmem>>, vector<2x16x16x128xf32>
    %1 = vector.shape_cast %0 : vector<2x16x16x128xf32> to vector<512x128xf32>
    %2 = arith.truncf %1 : vector<512x128xf32> to vector<512x128xbf16>
    %c0_3 = arith.constant 0 : index
    %c0_4 = arith.constant 0 : index
    %3 = vector.load %arg2[%c0_3, %c0_4] : memref<128x64xbf16, #tpu.memory_space<vmem>>, vector<128x64xbf16>
    %cst = arith.constant dense<0.000000e+00> : vector<512x64xf32>
    %4 = tpu.matmul %2, %3, %cst {dimension_numbers = #tpu.dot_dimension_numbers<[1], [0], [0], [1], [0, 0, 1, 1], [], []>} : vector<512x128xbf16>, vector<128x64xbf16>, vector<512x64xf32> -> vector<512x64xf32>
    %c0_5 = arith.constant 0 : index
    %c0_6 = arith.constant 0 : index
    %5 = vector.load %arg3[%c0_5, %c0_6] : memref<1x64xf32, #tpu.memory_space<vmem>>, vector<1x64xf32>
    %6 = vector.broadcast %5 : vector<1x64xf32> to vector<512x64xf32>
    %7 = arith.mulf %4, %6 : vector<512x64xf32>
    %c0_7 = arith.constant 0 : index
    %c0_8 = arith.constant 0 : index
    %8 = vector.load %arg4[%c0_7, %c0_8] : memref<1x64xf32, #tpu.memory_space<vmem>>, vector<1x64xf32>
    %9 = vector.broadcast %8 : vector<1x64xf32> to vector<512x64xf32>
    %10 = arith.addf %7, %9 : vector<512x64xf32>
    %cst_9 = arith.constant 1.000000e-01 : f32
    %11 = vector.broadcast %cst_9 : f32 to vector<512x64xf32>
    %12 = arith.mulf %11, %10 : vector<512x64xf32>
    %13 = arith.maximumf %10, %12 : vector<512x64xf32>
    %14 = arith.truncf %13 : vector<512x64xf32> to vector<512x64xbf16>
    %15 = vector.shape_cast %14 : vector<512x64xbf16> to vector<2x16x16x64xbf16>
    %cst_10 = arith.constant 0.000000e+00 : bf16
    %16 = vector.broadcast %cst_10 : bf16 to vector<2x16x1x64xbf16>
    %17 = vector.extract_strided_slice %15 {offsets = [0, 0, 0, 0], sizes = [2, 16, 15, 64], strides = [1, 1, 1, 1]} : vector<2x16x16x64xbf16> to vector<2x16x15x64xbf16>
    %18 = tpu.concatenate %16, %17 in 2 : vector<2x16x1x64xbf16>, vector<2x16x15x64xbf16> -> vector<2x16x16x64xbf16>
    %19 = vector.extract_strided_slice %15 {offsets = [0, 0, 1, 0], sizes = [2, 16, 15, 64], strides = [1, 1, 1, 1]} : vector<2x16x16x64xbf16> to vector<2x16x15x64xbf16>
    %20 = tpu.concatenate %19, %16 in 2 : vector<2x16x15x64xbf16>, vector<2x16x1x64xbf16> -> vector<2x16x16x64xbf16>
    %21 = tpu.concatenate %18, %15, %20 in 3 : vector<2x16x16x64xbf16>, vector<2x16x16x64xbf16>, vector<2x16x16x64xbf16> -> vector<2x16x16x192xbf16>
    %c0_i32 = arith.constant 0 : i32
    %22 = arith.cmpi eq, %arg0, %c0_i32 : i32
    %23 = arith.extui %22 : i1 to i32
    %c0_i32_11 = arith.constant 0 : i32
    %24 = arith.cmpi ne, %23, %c0_i32_11 : i32
    scf.if %24 {
      %cst_47 = arith.constant 0.000000e+00 : bf16
      %55 = vector.broadcast %cst_47 : bf16 to vector<2x1x16x192xbf16>
      %c0_48 = arith.constant 0 : index
      %c0_49 = arith.constant 0 : index
      %c0_50 = arith.constant 0 : index
      %c0_51 = arith.constant 0 : index
      %56 = vector.load %arg9[%c0_48, %c0_49, %c0_50, %c0_51] : memref<2x18x16x192xbf16, #tpu.memory_space<vmem>>, vector<2x1x16x192xbf16>
      tpu.vector_store %arg9[%c0_48, %c0_49, %c0_50, %c0_51], %55 {strides = array<i32>} : memref<2x18x16x192xbf16, #tpu.memory_space<vmem>>, vector<2x1x16x192xbf16>,
      %c0_52 = arith.constant 0 : index
      %c17 = arith.constant 17 : index
      %c0_53 = arith.constant 0 : index
      %c0_54 = arith.constant 0 : index
      %57 = vector.load %arg9[%c0_52, %c17, %c0_53, %c0_54] : memref<2x18x16x192xbf16, #tpu.memory_space<vmem>>, vector<2x1x16x192xbf16>
      tpu.vector_store %arg9[%c0_52, %c17, %c0_53, %c0_54], %55 {strides = array<i32>} : memref<2x18x16x192xbf16, #tpu.memory_space<vmem>>, vector<2x1x16x192xbf16>,
    } else {
    }
    %c0_12 = arith.constant 0 : index
    %c1 = arith.constant 1 : index
    %c0_13 = arith.constant 0 : index
    %c0_14 = arith.constant 0 : index
    %25 = vector.load %arg9[%c0_12, %c1, %c0_13, %c0_14] : memref<2x18x16x192xbf16, #tpu.memory_space<vmem>>, vector<2x16x16x192xbf16>
    tpu.vector_store %arg9[%c0_12, %c1, %c0_13, %c0_14], %21 {strides = array<i32>} : memref<2x18x16x192xbf16, #tpu.memory_space<vmem>>, vector<2x16x16x192xbf16>,
    %c0_15 = arith.constant 0 : index
    %c0_16 = arith.constant 0 : index
    %c0_17 = arith.constant 0 : index
    %c0_18 = arith.constant 0 : index
    %26 = vector.load %arg9[%c0_15, %c0_16, %c0_17, %c0_18] : memref<2x18x16x192xbf16, #tpu.memory_space<vmem>>, vector<2x16x16x192xbf16>
    %27 = vector.shape_cast %26 : vector<2x16x16x192xbf16> to vector<512x192xbf16>
    %c0_19 = arith.constant 0 : index
    %c0_20 = arith.constant 0 : index
    %c0_21 = arith.constant 0 : index
    %28 = vector.load %arg5[%c0_19, %c0_20, %c0_21] : memref<3x192x128xbf16, #tpu.memory_space<vmem>>, vector<1x192x128xbf16>
    %29 = vector.shape_cast %28 : vector<1x192x128xbf16> to vector<192x128xbf16>
    %cst_22 = arith.constant dense<0.000000e+00> : vector<512x128xf32>
    %30 = tpu.matmul %27, %29, %cst_22 {dimension_numbers = #tpu.dot_dimension_numbers<[1], [0], [0], [1], [0, 0, 1, 1], [], []>} : vector<512x192xbf16>, vector<192x128xbf16>, vector<512x128xf32> -> vector<512x128xf32>
    %c0_23 = arith.constant 0 : index
    %c1_24 = arith.constant 1 : index
    %c0_25 = arith.constant 0 : index
    %c0_26 = arith.constant 0 : index
    %31 = vector.load %arg9[%c0_23, %c1_24, %c0_25, %c0_26] : memref<2x18x16x192xbf16, #tpu.memory_space<vmem>>, vector<2x16x16x192xbf16>
    %32 = vector.shape_cast %31 : vector<2x16x16x192xbf16> to vector<512x192xbf16>
    %c1_27 = arith.constant 1 : index
    %c0_28 = arith.constant 0 : index
    %c0_29 = arith.constant 0 : index
    %33 = vector.load %arg5[%c1_27, %c0_28, %c0_29] : memref<3x192x128xbf16, #tpu.memory_space<vmem>>, vector<1x192x128xbf16>
    %34 = vector.shape_cast %33 : vector<1x192x128xbf16> to vector<192x128xbf16>
    %cst_30 = arith.constant dense<0.000000e+00> : vector<512x128xf32>
    %35 = tpu.matmul %32, %34, %cst_30 {dimension_numbers = #tpu.dot_dimension_numbers<[1], [0], [0], [1], [0, 0, 1, 1], [], []>} : vector<512x192xbf16>, vector<192x128xbf16>, vector<512x128xf32> -> vector<512x128xf32>
    %36 = arith.addf %30, %35 : vector<512x128xf32>
    %c0_31 = arith.constant 0 : index
    %c2 = arith.constant 2 : index
    %c0_32 = arith.constant 0 : index
    %c0_33 = arith.constant 0 : index
    %37 = vector.load %arg9[%c0_31, %c2, %c0_32, %c0_33] : memref<2x18x16x192xbf16, #tpu.memory_space<vmem>>, vector<2x16x16x192xbf16>
    %38 = vector.shape_cast %37 : vector<2x16x16x192xbf16> to vector<512x192xbf16>
    %c2_34 = arith.constant 2 : index
    %c0_35 = arith.constant 0 : index
    %c0_36 = arith.constant 0 : index
    %39 = vector.load %arg5[%c2_34, %c0_35, %c0_36] : memref<3x192x128xbf16, #tpu.memory_space<vmem>>, vector<1x192x128xbf16>
    %40 = vector.shape_cast %39 : vector<1x192x128xbf16> to vector<192x128xbf16>
    %cst_37 = arith.constant dense<0.000000e+00> : vector<512x128xf32>
    %41 = tpu.matmul %38, %40, %cst_37 {dimension_numbers = #tpu.dot_dimension_numbers<[1], [0], [0], [1], [0, 0, 1, 1], [], []>} : vector<512x192xbf16>, vector<192x128xbf16>, vector<512x128xf32> -> vector<512x128xf32>
    %42 = arith.addf %36, %41 : vector<512x128xf32>
    %c0_38 = arith.constant 0 : index
    %c0_39 = arith.constant 0 : index
    %43 = vector.load %arg6[%c0_38, %c0_39] : memref<1x128xf32, #tpu.memory_space<vmem>>, vector<1x128xf32>
    %44 = vector.broadcast %43 : vector<1x128xf32> to vector<512x128xf32>
    %45 = arith.mulf %42, %44 : vector<512x128xf32>
    %c0_40 = arith.constant 0 : index
    %c0_41 = arith.constant 0 : index
    %46 = vector.load %arg7[%c0_40, %c0_41] : memref<1x128xf32, #tpu.memory_space<vmem>>, vector<1x128xf32>
    %47 = vector.broadcast %46 : vector<1x128xf32> to vector<512x128xf32>
    %48 = arith.addf %45, %47 : vector<512x128xf32>
    %cst_42 = arith.constant 1.000000e-01 : f32
    %49 = vector.broadcast %cst_42 : f32 to vector<512x128xf32>
    %50 = arith.mulf %49, %48 : vector<512x128xf32>
    %51 = arith.maximumf %48, %50 : vector<512x128xf32>
    %52 = arith.addf %51, %1 : vector<512x128xf32>
    %53 = vector.shape_cast %52 : vector<512x128xf32> to vector<2x16x16x128xf32>
    %c0_43 = arith.constant 0 : index
    %c0_44 = arith.constant 0 : index
    %c0_45 = arith.constant 0 : index
    %c0_46 = arith.constant 0 : index
    %54 = vector.load %arg8[%c0_43, %c0_44, %c0_45, %c0_46] : memref<2x16x16x128xf32, #tpu.memory_space<vmem>>, vector<2x16x16x128xf32>
    tpu.vector_store %arg8[%c0_43, %c0_44, %c0_45, %c0_46], %53 {strides = array<i32>} : memref<2x16x16x128xf32, #tpu.memory_space<vmem>>, vector<2x16x16x128xf32>,
    return
  }
  func.func @transform_0(%arg0: i32) -> (i32, i32, i32, i32) {
    %c0_i32 = arith.constant 0 : i32
    %c0_i32_0 = arith.constant 0 : i32
    %c0_i32_1 = arith.constant 0 : i32
    %c0_i32_2 = arith.constant 0 : i32
    return %arg0, %c0_i32, %c0_i32_0, %c0_i32_1 : i32, i32, i32, i32
  }
  func.func @transform_1(%arg0: i32) -> (i32, i32) {
    %c0_i32 = arith.constant 0 : i32
    %c0_i32_0 = arith.constant 0 : i32
    %c0_i32_1 = arith.constant 0 : i32
    return %c0_i32, %c0_i32_0 : i32, i32
  }
  func.func @transform_2(%arg0: i32) -> (i32, i32) {
    %c0_i32 = arith.constant 0 : i32
    %c0_i32_0 = arith.constant 0 : i32
    %c0_i32_1 = arith.constant 0 : i32
    return %c0_i32, %c0_i32_0 : i32, i32
  }
  func.func @transform_3(%arg0: i32) -> (i32, i32) {
    %c0_i32 = arith.constant 0 : i32
    %c0_i32_0 = arith.constant 0 : i32
    %c0_i32_1 = arith.constant 0 : i32
    return %c0_i32, %c0_i32_0 : i32, i32
  }
  func.func @transform_4(%arg0: i32) -> (i32, i32, i32) {
    %c0_i32 = arith.constant 0 : i32
    %c0_i32_0 = arith.constant 0 : i32
    %c0_i32_1 = arith.constant 0 : i32
    %c0_i32_2 = arith.constant 0 : i32
    return %c0_i32, %c0_i32_0, %c0_i32_1 : i32, i32, i32
  }
  func.func @transform_5(%arg0: i32) -> (i32, i32) {
    %c0_i32 = arith.constant 0 : i32
    %c0_i32_0 = arith.constant 0 : i32
    %c0_i32_1 = arith.constant 0 : i32
    return %c0_i32, %c0_i32_0 : i32, i32
  }
  func.func @transform_6(%arg0: i32) -> (i32, i32) {
    %c0_i32 = arith.constant 0 : i32
    %c0_i32_0 = arith.constant 0 : i32
    %c0_i32_1 = arith.constant 0 : i32
    return %c0_i32, %c0_i32_0 : i32, i32
  }
  func.func @transform_7(%arg0: i32) -> (i32, i32, i32, i32) {
    %c0_i32 = arith.constant 0 : i32
    %c0_i32_0 = arith.constant 0 : i32
    %c0_i32_1 = arith.constant 0 : i32
    %c0_i32_2 = arith.constant 0 : i32
    return %arg0, %c0_i32, %c0_i32_0, %c0_i32_1 : i32, i32, i32, i32
  }
}

</mosaic_0001>

<bundles_post_ra>
// kernel: tpu_custom_call.1
= control target key start
LH: loop header
LB: loop body
LE: loop exit
PB: predicated region body
PF: predicated region fallthrough
CT: control target
= control target key end

     0   :  { %12 = vsyncpa [#allocation4], 0  ;;  %s7547_s0 = inlined_call_operand.hbm [shape: f32[2,16,16,128], index: 0, kind: input, shape index: {}]   ;;  %s7548_s1 = inlined_call_operand.vmem [shape: bf16[128,64], index: 1, kind: input, shape index: {}]   ;;  %s7549_s2 = inlined_call_operand.vmem [shape: f32[1,64], index: 2, kind: input, shape index: {}]   ;;  %s7550_s3 = inlined_call_operand.vmem [shape: f32[1,64], index: 3, kind: input, shape index: {}]   ;;  %s7551_s4 = inlined_call_operand.hbm [shape: bf16[3,192,128], index: 4, kind: input, shape index: {}]   ;;  %s7552_s5 = inlined_call_operand.vmem [shape: f32[1,128], index: 5, kind: input, shape index: {}]   ;;  %s7553_s6 = inlined_call_operand.vmem [shape: f32[1,128], index: 6, kind: input, shape index: {}]   ;;  %s7554_s7 = inlined_call_operand.hbm [shape: f32[2,16,16,128], index: 7, kind: output, shape index: {}]  }
   0x1   :  { %13 = vsyncpa [#allocation7], 0 }
   0x2   :  { %14 = vsyncpa [#allocation5], 0  ;;  %s5699_s24 = smov [#allocation3]  }
   0x3   :  { %s20_s25 = sshll.u32 %s5699_s24, 4  ;;  %s21_s25 = int_to_ptr.vmem [resolvable:$true] %s20_s25 }
   0x4   :  { %s5641_s26 = scalar_lea.vmem %s21_s25, 8192  ;;  %p5646_p1 = scmp.lt.s32.totalorder %s21_s25, %s21_s25 }
   0x5   :  { %p5642_p0 = scmp.ne.s32.totalorder %s21_s25, %s5641_s26  ;;  %p5647_p2 = scmp.lt.s32.totalorder %s5641_s26, %s5641_s26 }
   0x7   :  { %p5648_p3 = por %p5647_p2, %p5646_p1 }
   0x9   :  { %p5649_p4 = pnand %p5648_p3, %p5642_p0 }
   0xb   :  { %5652 = shalt.err (!%p5649_p4)
}
   0xc   :  { %s5700_s27 = smov 128   ;;  %s5701_s28 = smov 8  }
   0xd   :  { %26 = dma.hbm_to_vmem [thread:$0]  %s7547_s0, 8192, %s21_s25, [#allocation4], %s5700_s27, %s5700_s27, %s5701_s28  }
   0xe   :  { %s5702_s8 = smov [#allocation6]  }
   0xf   :  { %s38_s9 = sshll.u32 %s5702_s8, 4  ;;  %s39_s9 = int_to_ptr.vmem [resolvable:$true] %s38_s9 }
  0x10   :  { %s5661_s10 = scalar_lea.vmem %s39_s9, 4608  ;;  %p5666_p6 = scmp.lt.s32.totalorder %s39_s9, %s39_s9 }
  0x11   :  { %p5662_p5 = scmp.ne.s32.totalorder %s39_s9, %s5661_s10  ;;  %p5667_p7 = scmp.lt.s32.totalorder %s5661_s10, %s5661_s10 }
  0x13   :  { %p5668_p8 = por %p5667_p7, %p5666_p6 }
  0x15   :  { %p5669_p9 = pnand %p5668_p8, %p5662_p5 }
  0x17   :  { %5672 = shalt.err (!%p5669_p9)
}
  0x18   :  { %s5703_s11 = smov 64   ;;  %s5704_s12 = smov 4  }
  0x19   :  { %44 = dma.hbm_to_vmem [thread:$0]  %s7551_s4, 4608, %s39_s9, [#allocation7], %s5703_s11, %s5703_s11, %s5704_s12  }
  0x1a   :  { %5693 = dma.done.wait [#allocation4], 8192  }
  0x1b   :  { %5694 = vsyncadd [#allocation4], 4294959104 }
  0x1c   :  { %5695 = dma.done.wait [#allocation7], 4608  }
  0x1d   :  { %5696 = vsyncadd [#allocation7], 4294962688  ;;  %v5360_v0 = vld [vmem:[%s7548_s1 + $0x38] sm:$0xff]   ;;  %v5361_v1 = vld [vmem:[%s7548_s1 + $0x30] sm:$0xff]   ;;  %vm1426_vm0 = vcmask 1043456   ;;  %vm1427_vm1 = vcmask 523268  }
  0x1e   :  { %5248 = vmatprep.subr.bf16.mxu0 %v5360_v0  ;;  %v5362_v2 = vld [vmem:[%s7548_s1 + $0x28] sm:$0xff]   ;;  %v5363_v3 = vld [vmem:[%s7548_s1 + $0x20] sm:$0xff]   ;;  %v5364_v7 = vld [vmem:[%s7548_s1 + $0x18] sm:$0xff]   ;;  %vm1063_vm3 = vcmask 1040384   ;;  %vm1064_vm4 = vsmask.f32 256 }
  0x1f   :  { %5249 = vmatpush3.bf16.msra.mxu0 %v5360_v0  ;;  %v56_v4 = vld [vmem:[#allocation3] sm:$0xff]  ;;  %v57_v5 = vld [vmem:[#allocation3 + $0x8] sm:$0xff]  ;;  %v5365_v8 = vld [vmem:[%s7548_s1 + $0x10] sm:$0xff]   ;;  %vm1194_vm5 = vcmask 1047552   ;;  %vm1195_vm6 = vsmask.f32 7424 }
  0x20   :  { %5250 = vmatprep.subr.bf16.mxu0 %v5361_v1  ;;  %v120_v6 = vpack.c.bf16 %v57_v5, %v56_v4  ;;  %v5366_v9 = vld [vmem:[%s7548_s1 + $0x8] sm:$0xff]   ;;  %v5367_v10 = vld [vmem:[%s7548_s1] sm:$0xff]   ;;  %v58_v11 = vld [vmem:[#allocation3 + $0x10] sm:$0xff]  ;;  %vm1325_vm7 = vcmask 523264  }
  0x21   :  { %v59_v12 = vld [vmem:[#allocation3 + $0x18] sm:$0xff]  ;;  %v60_v13 = vld [vmem:[#allocation3 + $0x20] sm:$0xff]  ;;  %v61_v14 = vld [vmem:[#allocation3 + $0x28] sm:$0xff] }
  0x22   :  { %5264 = vmatprep.mubr.bf16.mxu0 %v120_v6  ;;  %v121_v15 = vpack.c.bf16 %v59_v12, %v58_v11  ;;  %v122_v16 = vpack.c.bf16 %v61_v14, %v60_v13  ;;  %v62_v17 = vld [vmem:[#allocation3 + $0x30] sm:$0xff]  ;;  %v63_v18 = vld [vmem:[#allocation3 + $0x38] sm:$0xff]  ;;  %v64_v19 = vld [vmem:[#allocation3 + $0x40] sm:$0xff] }
  0x23   :  { %5251 = vmatpush3.bf16.msra.mxu0 %v5361_v1  ;;  %v65_v20 = vld [vmem:[#allocation3 + $0x48] sm:$0xff]  ;;  %v123_v21 = vpack.c.bf16 %v63_v18, %v62_v17  ;;  %v66_v23 = vld [vmem:[#allocation3 + $0x50] sm:$0xff]  ;;  %v67_v24 = vld [vmem:[#allocation3 + $0x58] sm:$0xff] }
  0x24   :  { %5252 = vmatprep.subr.bf16.mxu0 %v5362_v2  ;;  %v124_v22 = vpack.c.bf16 %v65_v20, %v64_v19  ;;  %v68_v25 = vld [vmem:[#allocation3 + $0x60] sm:$0xff]  ;;  %v69_v26 = vld [vmem:[#allocation3 + $0x68] sm:$0xff]  ;;  %v125_v27 = vpack.c.bf16 %v67_v24, %v66_v23  ;;  %v70_v29 = vld [vmem:[#allocation3 + $0x70] sm:$0xff] }
  0x25   :  { %v126_v28 = vpack.c.bf16 %v69_v26, %v68_v25  ;;  %v71_v30 = vld [vmem:[#allocation3 + $0x78] sm:$0xff]  ;;  %v72_v31 = vld [vmem:[#allocation3 + $0x80] sm:$0xff]  ;;  %v73_v32 = vld [vmem:[#allocation3 + $0x88] sm:$0xff] }
  0x26   :  { %v127_v33 = vpack.c.bf16 %v71_v30, %v70_v29  ;;  %v128_v34 = vpack.c.bf16 %v73_v32, %v72_v31  ;;  %v74_v35 = vld [vmem:[#allocation3 + $0x90] sm:$0xff]  ;;  %v75_v36 = vld [vmem:[#allocation3 + $0x98] sm:$0xff]  ;;  %v76_v37 = vld [vmem:[#allocation3 + $0xa0] sm:$0xff] }
  0x27   :  { %5253 = vmatpush3.bf16.msra.mxu0 %v5362_v2  ;;  %v77_v38 = vld [vmem:[#allocation3 + $0xa8] sm:$0xff]  ;;  %v129_v39 = vpack.c.bf16 %v75_v36, %v74_v35  ;;  %v78_v41 = vld [vmem:[#allocation3 + $0xb0] sm:$0xff]  ;;  %v79_v42 = vld [vmem:[#allocation3 + $0xb8] sm:$0xff] }
  0x28   :  { %5254 = vmatprep.subr.bf16.mxu0 %v5363_v3  ;;  %v130_v40 = vpack.c.bf16 %v77_v38, %v76_v37  ;;  %v80_v43 = vld [vmem:[#allocation3 + $0xc0] sm:$0xff]  ;;  %v81_v44 = vld [vmem:[#allocation3 + $0xc8] sm:$0xff]  ;;  %v131_v45 = vpack.c.bf16 %v79_v42, %v78_v41  ;;  %v82_v47 = vld [vmem:[#allocation3 + $0xd0] sm:$0xff] }
  0x29   :  { %v132_v46 = vpack.c.bf16 %v81_v44, %v80_v43  ;;  %v83_v48 = vld [vmem:[#allocation3 + $0xd8] sm:$0xff]  ;;  %v84_v49 = vld [vmem:[#allocation3 + $0xe0] sm:$0xff]  ;;  %v85_v50 = vld [vmem:[#allocation3 + $0xe8] sm:$0xff]  ;;  %v5705_v43 = vmov 0  }
  0x2a   :  { %v133_v51 = vpack.c.bf16 %v83_v48, %v82_v47  ;;  %v134_v52 = vpack.c.bf16 %v85_v50, %v84_v49  ;;  %v86_v53 = vld [vmem:[#allocation3 + $0xf0] sm:$0xff]  ;;  %v87_v54 = vld [vmem:[#allocation3 + $0xf8] sm:$0xff]  ;;  %v88_v55 = vld [vmem:[#allocation3 + $0x100] sm:$0xff]  ;;  %5328 = vmatprep.subr.bf16.mxu1 %v5705_v43 }
  0x2b   :  { %5255 = vmatpush3.bf16.msra.mxu0 %v5363_v3  ;;  %v89_v56 = vld [vmem:[#allocation3 + $0x108] sm:$0xff]  ;;  %v135_v57 = vpack.c.bf16 %v87_v54, %v86_v53  ;;  %v90_v59 = vld [vmem:[#allocation3 + $0x110] sm:$0xff]  ;;  %v91_v60 = vld [vmem:[#allocation3 + $0x118] sm:$0xff] }
  0x2c   :  { %5256 = vmatprep.subr.bf16.mxu0 %v5364_v7  ;;  %v136_v58 = vpack.c.bf16 %v89_v56, %v88_v55  ;;  %v92_v61 = vld [vmem:[#allocation3 + $0x120] sm:$0xff]  ;;  %v93_v62 = vld [vmem:[#allocation3 + $0x128] sm:$0xff]  ;;  %v137_v63 = vpack.c.bf16 %v91_v60, %v90_v59  ;;  %v94_v1 = vld [vmem:[#allocation3 + $0x130] sm:$0xff] }
  0x2d   :  { %v138_v0 = vpack.c.bf16 %v93_v62, %v92_v61  ;;  %v95_v2 = vld [vmem:[#allocation3 + $0x138] sm:$0xff]  ;;  %v96_v3 = vld [vmem:[#allocation3 + $0x140] sm:$0xff]  ;;  %v97_v4 = vld [vmem:[#allocation3 + $0x148] sm:$0xff] }
  0x2e   :  { %v139_v5 = vpack.c.bf16 %v95_v2, %v94_v1  ;;  %v140_v6 = vpack.c.bf16 %v97_v4, %v96_v3  ;;  %v102_v13 = vld [vmem:[#allocation3 + $0x170] sm:$0xff]  ;;  %v103_v14 = vld [vmem:[#allocation3 + $0x178] sm:$0xff]  ;;  %v5371_v59 = vld [vmem:[#allocation6 + $0x80] sm:$0xff]  }
  0x2f   :  { %5257 = vmatpush3.bf16.msra.mxu0 %v5364_v7  ;;  %v98_v7 = vld [vmem:[#allocation3 + $0x150] sm:$0xff]  ;;  %v143_v17 = vpack.c.bf16 %v103_v14, %v102_v13  ;;  %v107_v20 = vld [vmem:[#allocation3 + $0x198] sm:$0xff]  ;;  %vm5820_vm2 = vmor %vm1427_vm1, %vm1426_vm0 }
  0x30   :  { %5258 = vmatprep.subr.bf16.mxu0 %v5365_v8  ;;  %v106_v19 = vld [vmem:[#allocation3 + $0x190] sm:$0xff]  ;;  %v111_v26 = vld [vmem:[#allocation3 + $0x1b8] sm:$0xff]  ;;  %1429 = vst.msk [vmem:[#allocation2] sm:$0xff] %vm5820_vm2, %v5705_v43  ;;  %1430 = vst.msk [vmem:[#allocation2 + $0x8] sm:$0xff] %vm5820_vm2, %v5705_v43 }
  0x31   :  { %v145_v23 = vpack.c.bf16 %v107_v20, %v106_v19  ;;  %v110_v25 = vld [vmem:[#allocation3 + $0x1b0] sm:$0xff]  ;;  %v115_v32 = vld [vmem:[#allocation3 + $0x1d8] sm:$0xff]  ;;  %1431 = vst.msk [vmem:[#allocation2 + $0x120] sm:$0xff] %vm5820_vm2, %v5705_v43  ;;  %1432 = vst.msk [vmem:[#allocation2 + $0x128] sm:$0xff] %vm5820_vm2, %v5705_v43 }
  0x32   :  { %v147_v29 = vpack.c.bf16 %v111_v26, %v110_v25  ;;  %v114_v31 = vld [vmem:[#allocation3 + $0x1d0] sm:$0xff]  ;;  %v119_v38 = vld [vmem:[#allocation3 + $0x1f8] sm:$0xff]  ;;  %1434 = vst.msk [vmem:[#allocation2 + $0x110] sm:$0xff] %vm5820_vm2, %v5705_v43  ;;  %1435 = vst.msk [vmem:[#allocation2 + $0x118] sm:$0xff] %vm5820_vm2, %v5705_v43 }
  0x33   :  { %5259 = vmatpush3.bf16.msra.mxu0 %v5365_v8  ;;  %v99_v8 = vld [vmem:[#allocation3 + $0x158] sm:$0xff]  ;;  %v149_v35 = vpack.c.bf16 %v115_v32, %v114_v31  ;;  %v118_v37 = vld [vmem:[#allocation3 + $0x1f0] sm:$0xff]  ;;  %1436 = vst.msk [vmem:[#allocation2 + $0x230] sm:$0xff] %vm5820_vm2, %v5705_v43  ;;  %1437 = vst.msk [vmem:[#allocation2 + $0x238] sm:$0xff] %vm5820_vm2, %v5705_v43 }
  0x34   :  { %5260 = vmatprep.subr.bf16.mxu0 %v5366_v9  ;;  %v141_v11 = vpack.c.bf16 %v99_v8, %v98_v7  ;;  %v5368_v41 = vld [vmem:[#allocation6 + $0x98] sm:$0xff]   ;;  %v5369_v47 = vld [vmem:[#allocation6 + $0x90] sm:$0xff]   ;;  %v5375_v25 = vld [vmem:[#allocation6 + $0x60] sm:$0xff]  }
  0x35   :  { %5340 = vmatpush1.bf16.msra.mxu1 %v5368_v41  ;;  %v5372_v3 = vld [vmem:[#allocation6 + $0x78] sm:$0xff]   ;;  %vm6137_vm8 = vmand %vm1063_vm3, %vm1064_vm4 }
  0x36   :  { %5329 = vmatprep.subr.bf16.mxu1 %v5705_v43  ;;  %v5376_v32 = vld [vmem:[#allocation6 + $0xb8] sm:$0xff]   ;;  %vm6142_vm9 = vmand %vm1194_vm5, %vm1195_vm6 }
  0x37   :  { %5261 = vmatpush3.bf16.msra.mxu0 %v5366_v9  ;;  %v100_v9 = vld [vmem:[#allocation3 + $0x160] sm:$0xff] }
  0x38   :  { %5262 = vmatprep.subr.bf16.mxu0 %v5367_v10 }
  0x39   :  { %5341 = vmatpush1.bf16.msra.mxu1 %v5369_v47 }
  0x3a   :  { %5330 = vmatprep.subr.bf16.mxu1 %v5705_v43 }
  0x3b   :  { %5263 = vmatpush3.bf16.msra.mxu0 %v5367_v10  ;;  %v101_v10 = vld [vmem:[#allocation3 + $0x168] sm:$0xff] }
  0x3c   :  { %v142_v12 = vpack.c.bf16 %v101_v10, %v100_v9  ;;  %2459 = vmatprep.subr.bf16.mxu0 %v5705_v43  ;;  %v5373_v10 = vld [vmem:[#allocation6 + $0x70] sm:$0xff]  }
  0x3e   :  { %5265 = vmatmul.mubr.bf16.vlgmr.msra.gmra.mxu0 %v121_v15  ;;  %v104_v15 = vld [vmem:[#allocation3 + $0x180] sm:$0xff] }
  0x3f   :  { %5268 = vmatprep.mubr.bf16.mxu0 %v122_v16  ;;  %v105_v16 = vld [vmem:[#allocation3 + $0x188] sm:$0xff]  ;;  %2460 = vmatpush1.bf16.msra.mxu0 %v5368_v41 }
  0x40   :  { %v144_v18 = vpack.c.bf16 %v105_v16, %v104_v15  ;;  %2461 = vmatprep.subr.bf16.mxu0 %v5705_v43 }
  0x43   :  { %2462 = vmatpush1.bf16.msra.mxu0 %v5369_v47 }
  0x44   :  { %2463 = vmatprep.subr.bf16.mxu0 %v5705_v43 }
  0x46   :  { %5269 = vmatmul.mubr.bf16.gmra.mxu0 %v123_v21  ;;  %v108_v21 = vld [vmem:[#allocation3 + $0x1a0] sm:$0xff] }
  0x47   :  { %5272 = vmatprep.mubr.bf16.mxu0 %v124_v22  ;;  %v109_v22 = vld [vmem:[#allocation3 + $0x1a8] sm:$0xff] }
  0x48   :  { %v146_v24 = vpack.c.bf16 %v109_v22, %v108_v21 }
  0x4e   :  { %5273 = vmatmul.mubr.bf16.gmra.mxu0 %v125_v27  ;;  %v112_v27 = vld [vmem:[#allocation3 + $0x1c0] sm:$0xff] }
  0x4f   :  { %5276 = vmatprep.mubr.bf16.mxu0 %v126_v28  ;;  %v113_v28 = vld [vmem:[#allocation3 + $0x1c8] sm:$0xff] }
  0x50   :  { %v148_v30 = vpack.c.bf16 %v113_v28, %v112_v27 }
  0x56   :  { %5277 = vmatmul.mubr.bf16.gmra.mxu0 %v127_v33  ;;  %v116_v33 = vld [vmem:[#allocation3 + $0x1e0] sm:$0xff] }
  0x57   :  { %5280 = vmatprep.mubr.bf16.mxu0 %v128_v34  ;;  %v117_v34 = vld [vmem:[#allocation3 + $0x1e8] sm:$0xff] }
  0x58   :  { %v150_v36 = vpack.c.bf16 %v117_v34, %v116_v33 }
  0x5e   :  { %5281 = vmatmul.mubr.bf16.gmra.mxu0 %v129_v39  ;;  %v151_v39 = vpack.c.bf16 %v119_v38, %v118_v37 }
  0x5f   :  { %5284 = vmatprep.mubr.bf16.mxu0 %v130_v40  ;;  %v5785_v40 = vld [vmem:[%s7549_s2] ss:$0 sm:$0xff] }
  0x66   :  { %5285 = vmatmul.mubr.bf16.gmra.mxu0 %v131_v45  ;;  %v5793_v45 = vld [vmem:[%s7550_s3] ss:$0 sm:$0xff] }
  0x67   :  { %5288 = vmatprep.mubr.bf16.mxu0 %v132_v46 }
  0x6e   :  { %5289 = vmatmul.mubr.bf16.gmra.mxu0 %v133_v51 }
  0x6f   :  { %5292 = vmatprep.mubr.bf16.mxu0 %v134_v52  ;;  %v5370_v52 = vld [vmem:[#allocation6 + $0x88] sm:$0xff]  }
  0x70   :  { %5342 = vmatpush1.bf16.msra.mxu1 %v5370_v52  ;;  %2464 = vmatpush1.bf16.msra.mxu0 %v5370_v52 }
  0x71   :  { %5331 = vmatprep.subr.bf16.mxu1 %v5705_v43  ;;  %2465 = vmatprep.subr.bf16.mxu0 %v5705_v43 }
  0x74   :  { %5343 = vmatpush1.bf16.msra.mxu1 %v5371_v59  ;;  %2466 = vmatpush1.bf16.msra.mxu0 %v5371_v59 }
  0x75   :  { %5332 = vmatprep.subr.bf16.mxu1 %v5705_v43  ;;  %2467 = vmatprep.subr.bf16.mxu0 %v5705_v43 }
  0x76   :  { %5293 = vmatmul.mubr.bf16.gmra.mxu0 %v135_v57 }
  0x77   :  { %5296 = vmatprep.mubr.bf16.mxu0 %v136_v58 }
  0x78   :  { %5344 = vmatpush1.bf16.msra.mxu1 %v5372_v3  ;;  %2468 = vmatpush1.bf16.msra.mxu0 %v5372_v3 }
  0x79   :  { %5333 = vmatprep.subr.bf16.mxu1 %v5705_v43  ;;  %2469 = vmatprep.subr.bf16.mxu0 %v5705_v43 }
  0x7c   :  { %5345 = vmatpush1.bf16.msra.mxu1 %v5373_v10  ;;  %2470 = vmatpush1.bf16.msra.mxu0 %v5373_v10 }
  0x7d   :  { %5334 = vmatprep.subr.bf16.mxu1 %v5705_v43  ;;  %2471 = vmatprep.subr.bf16.mxu0 %v5705_v43 }
  0x7e   :  { %5297 = vmatmul.mubr.bf16.gmra.mxu0 %v137_v63 }
  0x7f   :  { %5300 = vmatprep.mubr.bf16.mxu0 %v138_v0 }
  0x86   :  { %5301 = vmatmul.mubr.bf16.gmra.mxu0 %v139_v5  ;;  %v5458_v5 = vld [vmem:[#allocation6 + $0x48] sm:$0xff]  }
  0x87   :  { %5304 = vmatprep.mubr.bf16.mxu0 %v140_v6 }
  0x8e   :  { %5305 = vmatmul.mubr.bf16.gmra.mxu0 %v141_v11 }
  0x8f   :  { %5308 = vmatprep.mubr.bf16.mxu0 %v142_v12 }
  0x96   :  { %5309 = vmatmul.mubr.bf16.gmra.mxu0 %v143_v17  ;;  %v5374_v17 = vld [vmem:[#allocation6 + $0x68] sm:$0xff]  }
  0x97   :  { %5312 = vmatprep.mubr.bf16.mxu0 %v144_v18  ;;  %5346 = vmatpush1.bf16.msra.mxu1 %v5374_v17 }
  0x98   :  { %2472 = vmatpush1.bf16.msra.mxu0 %v5374_v17  ;;  %5335 = vmatprep.subr.bf16.mxu1 %v5705_v43 }
  0x99   :  { %2473 = vmatprep.subr.bf16.mxu0 %v5705_v43 }
  0x9b   :  { %5347 = vmatpush1.bf16.msra.mxu1 %v5375_v25 }
  0x9c   :  { %2474 = vmatpush1.bf16.msra.mxu0 %v5375_v25  ;;  %5336 = vmatprep.subr.bf16.mxu1 %v5705_v43 }
  0x9d   :  { %2483 = vmatprep.subr.bf16.mxu0 %v5705_v43 }
  0x9e   :  { %5313 = vmatmul.mubr.bf16.gmra.mxu0 %v145_v23 }
  0x9f   :  { %5316 = vmatprep.mubr.bf16.mxu0 %v146_v24  ;;  %5348 = vmatpush2.bf16.msra.mxu1 %v5376_v32 }
  0xa0   :  { %2484 = vmatpush2.bf16.msra.mxu0 %v5376_v32  ;;  %5337 = vmatprep.subr.bf16.mxu1 %v5705_v43 }
  0xa1   :  { %2485 = vmatprep.subr.bf16.mxu0 %v5705_v43 }
  0xa6   :  { %5317 = vmatmul.mubr.bf16.gmra.mxu0 %v147_v29 }
  0xa7   :  { %5320 = vmatprep.mubr.bf16.mxu0 %v148_v30 }
  0xae   :  { %5321 = vmatmul.mubr.bf16.gmra.mxu0 %v149_v35 }
  0xaf   :  { %5324 = vmatprep.mubr.bf16.mxu0 %v150_v36 }
  0xb6   :  { %5325 = vmatmul.mubr.bf16.gmra.mxu0 %v151_v39 }
  0xfe   :  { %v5266_v42 = vpop.f32.mrf.mxu0 }
  0xff   :  { %v514_v44 = vmul.f32 %v5266_v42, %v5785_v40 }
 0x100   :  { %v5795_v46 = vpop.f32.mrf.mxu0 }
 0x101   :  { %v585_v48 = vadd.f32 %v5793_v45, %v514_v44  ;;  %v5377_v44 = vld [vmem:[#allocation6 + $0xb0] sm:$0xff]  }
 0x102   :  { %v5267_v49 = vpop.f32.mrf.mxu0  ;;  %5349 = vmatpush2.bf16.msra.mxu1 %v5377_v44  ;;  %2486 = vmatpush2.bf16.msra.mxu0 %v5377_v44 }
 0x103   :  { %v515_v50 = vmul.f32 %v5267_v49, %v5785_v40  ;;  %v649_v54 = vmul.f32 0.1, %v585_v48  ;;  %5338 = vmatprep.subr.bf16.mxu1 %v5705_v43  ;;  %2487 = vmatprep.subr.bf16.mxu0 %v5705_v43 }
 0x104   :  { %v5801_v51 = vpop.f32.mrf.mxu0 }
 0x105   :  { %v586_v53 = vadd.f32 %v5793_v45, %v515_v50  ;;  %v713_v61 = vmax.f32 %v585_v48, %v649_v54  ;;  %v5378_v54 = vld [vmem:[#allocation6 + $0xa8] sm:$0xff]  }
 0x106   :  { %v5270_v55 = vpop.f32.mrf.mxu0  ;;  %5350 = vmatpush2.bf16.msra.mxu1 %v5378_v54  ;;  %2488 = vmatpush2.bf16.msra.mxu0 %v5378_v54 }
 0x107   :  { %v650_v56 = vmul.f32 0.1, %v586_v53  ;;  %v518_v57 = vmul.f32 %v5270_v55, %v5785_v40  ;;  %5339 = vmatprep.subr.bf16.mxu1 %v5705_v43  ;;  %2489 = vmatprep.subr.bf16.mxu0 %v5705_v43 }
 0x108   :  { %v5807_v58 = vpop.f32.mrf.mxu0 }
 0x109   :  { %v714_v60 = vmax.f32 %v586_v53, %v650_v56  ;;  %v589_v62 = vadd.f32 %v5793_v45, %v518_v57 }
 0x10a   :  { %v5271_v63 = vpop.f32.mrf.mxu0 }
 0x10b   :  { %v519_v0 = vmul.f32 %v5271_v63, %v5785_v40  ;;  %v5815_v2 = vpack.c.bf16 %v714_v60, %v713_v61  ;;  %v653_v6 = vmul.f32 0.1, %v589_v62 }
 0x10c   :  { %v5813_v1 = vpop.f32.mrf.mxu0 }
 0x10d   :  { %v590_v4 = vadd.f32 %v5793_v45, %v519_v0  ;;  %v717_v13 = vmax.f32 %v589_v62, %v653_v6 }
 0x10e   :  { %v5274_v7 = vpop.f32.mrf.mxu0 }
 0x10f   :  { %v654_v8 = vmul.f32 0.1, %v590_v4  ;;  %v522_v9 = vmul.f32 %v5274_v7, %v5785_v40  ;;  %v5379_v7 = vld [vmem:[#allocation6 + $0xa0] sm:$0xff]  }
 0x110   :  { %v5849_v11 = vpop.f32.mrf.mxu0  ;;  %5351 = vmatpush2.bf16.msra.mxu1 %v5379_v7  ;;  %2490 = vmatpush2.bf16.msra.mxu0 %v5379_v7 }
 0x111   :  { %v718_v12 = vmax.f32 %v590_v4, %v654_v8  ;;  %v593_v14 = vadd.f32 %v5793_v45, %v522_v9  ;;  %4039 = vmatprep.subr.bf16.mxu1 %v5705_v43  ;;  %3204 = vmatprep.subr.bf16.mxu0 %v5705_v43 }
 0x112   :  { %v5275_v15 = vpop.f32.mrf.mxu0 }
 0x113   :  { %v523_v16 = vmul.f32 %v5275_v15, %v5785_v40  ;;  %v5857_v19 = vpack.c.bf16 %v718_v12, %v717_v13  ;;  %v657_v21 = vmul.f32 0.1, %v593_v14 }
 0x114   :  { %v5855_v18 = vpop.f32.mrf.mxu0 }
 0x115   :  { %v594_v20 = vadd.f32 %v5793_v45, %v523_v16  ;;  %v721_v28 = vmax.f32 %v593_v14, %v657_v21 }
 0x116   :  { %v5278_v22 = vpop.f32.mrf.mxu0 }
 0x117   :  { %v658_v23 = vmul.f32 0.1, %v594_v20  ;;  %v526_v24 = vmul.f32 %v5278_v22, %v5785_v40 }
 0x118   :  { %v5863_v26 = vpop.f32.mrf.mxu0 }
 0x119   :  { %v722_v27 = vmax.f32 %v594_v20, %v658_v23  ;;  %v597_v29 = vadd.f32 %v5793_v45, %v526_v24 }
 0x11a   :  { %v5279_v30 = vpop.f32.mrf.mxu0 }
 0x11b   :  { %v527_v31 = vmul.f32 %v5279_v30, %v5785_v40  ;;  %v5871_v34 = vpack.c.bf16 %v722_v27, %v721_v28  ;;  %v661_v36 = vmul.f32 0.1, %v597_v29 }
 0x11c   :  { %v5869_v33 = vpop.f32.mrf.mxu0 }
 0x11d   :  { %v598_v35 = vadd.f32 %v5793_v45, %v527_v31  ;;  %v725_v47 = vmax.f32 %v597_v29, %v661_v36 }
 0x11e   :  { %v5282_v37 = vpop.f32.mrf.mxu0 }
 0x11f   :  { %v662_v38 = vmul.f32 0.1, %v598_v35  ;;  %v530_v39 = vmul.f32 %v5282_v37, %v5785_v40 }
 0x120   :  { %v5877_v41 = vpop.f32.mrf.mxu0 }
 0x121   :  { %v726_v42 = vmax.f32 %v598_v35, %v662_v38  ;;  %v601_v48 = vadd.f32 %v5793_v45, %v530_v39 }
 0x122   :  { %v5283_v49 = vpop.f32.mrf.mxu0 }
 0x123   :  { %v531_v50 = vmul.f32 %v5283_v49, %v5785_v40  ;;  %v5885_v53 = vpack.c.bf16 %v726_v42, %v725_v47  ;;  %v665_v56 = vmul.f32 0.1, %v601_v48 }
 0x124   :  { %v5883_v52 = vpop.f32.mrf.mxu0 }
 0x125   :  { %v602_v55 = vadd.f32 %v5793_v45, %v531_v50  ;;  %v729_v0 = vmax.f32 %v601_v48, %v665_v56 }
 0x126   :  { %v5286_v57 = vpop.f32.mrf.mxu0 }
 0x127   :  { %v666_v59 = vmul.f32 0.1, %v602_v55  ;;  %v534_v60 = vmul.f32 %v5286_v57, %v5785_v40 }
 0x128   :  { %v330_v61 = vpop.f32.mrf.mxu0 }
 0x129   :  { %v730_v62 = vmax.f32 %v602_v55, %v666_v59  ;;  %v532_v63 = vmul.f32 %v5785_v40, %v330_v61  ;;  %v605_v3 = vadd.f32 %v5793_v45, %v534_v60 }
 0x12a   :  { %v5287_v4 = vpop.f32.mrf.mxu0 }
 0x12b   :  { %v535_v6 = vmul.f32 %v5287_v4, %v5785_v40  ;;  %v603_v8 = vadd.f32 %v5793_v45, %v532_v63  ;;  %v5897_v10 = vpack.c.bf16 %v730_v62, %v729_v0  ;;  %v669_v14 = vmul.f32 0.1, %v605_v3 }
 0x12c   :  { %v333_v9 = vpop.f32.mrf.mxu0 }
 0x12d   :  { %v606_v12 = vadd.f32 %v5793_v45, %v535_v6  ;;  %v533_v13 = vmul.f32 %v5785_v40, %v333_v9  ;;  %1279 = vrot.lane.b32.xlu0 %v5897_v10, %s5703_s11  ;;  %v667_v21 = vmul.f32 0.1, %v603_v8  ;;  %v733_v28 = vmax.f32 %v605_v3, %v669_v14 }
 0x12e   :  { %v5290_v15 = vpop.f32.mrf.mxu0 }
 0x12f   :  { %v670_v16 = vmul.f32 0.1, %v606_v12  ;;  %v604_v17 = vadd.f32 %v5793_v45, %v533_v13  ;;  %v538_v20 = vmul.f32 %v5290_v15, %v5785_v40  ;;  %v731_v35 = vmax.f32 %v603_v8, %v667_v21 }
 0x130   :  { %v346_v22 = vpop.f32.mrf.mxu0 }
 0x131   :  { %v734_v23 = vmax.f32 %v606_v12, %v670_v16  ;;  %v668_v24 = vmul.f32 0.1, %v604_v17  ;;  %v609_v25 = vadd.f32 %v5793_v45, %v538_v20  ;;  %v536_v27 = vmul.f32 %v5785_v40, %v346_v22 }
 0x132   :  { %v5291_v29 = vpop.f32.mrf.mxu0 }
 0x133   :  { %v732_v30 = vmax.f32 %v604_v17, %v668_v24  ;;  %v607_v31 = vadd.f32 %v5793_v45, %v536_v27  ;;  %v539_v32 = vmul.f32 %v5291_v29, %v5785_v40  ;;  %v673_v36 = vmul.f32 0.1, %v609_v25 }
 0x134   :  { %v349_v37 = vpop.f32.mrf.mxu0  ;;  %v5911_v38 = vpack.c.bf16 %v734_v23, %v733_v28 }
 0x135   :  { %v610_v39 = vadd.f32 %v5793_v45, %v539_v32  ;;  %v537_v42 = vmul.f32 %v5785_v40, %v349_v37  ;;  %v671_v44 = vmul.f32 0.1, %v607_v31  ;;  %v5917_v48 = vpack.c.bf16 %v732_v30, %v731_v35 }
 0x136   :  { %1283 = vrot.lane.b32.xlu1 %v5911_v38, %s5703_s11  ;;  %v5294_v47 = vpop.f32.mrf.mxu0  ;;  %v737_v55 = vmax.f32 %v609_v25, %v673_v36 }
 0x137   :  { %v674_v49 = vmul.f32 0.1, %v610_v39  ;;  %v608_v50 = vadd.f32 %v5793_v45, %v537_v42  ;;  %v542_v54 = vmul.f32 %v5294_v47, %v5785_v40  ;;  %1281 = vrot.lane.b32.xlu0 %v5917_v48, %s5703_s11  ;;  %v735_v62 = vmax.f32 %v607_v31, %v671_v44 }
 0x138   :  { %v362_v56 = vpop.f32.mrf.mxu0 }
 0x139   :  { %v738_v57 = vmax.f32 %v610_v39, %v674_v49  ;;  %v672_v59 = vmul.f32 0.1, %v608_v50  ;;  %v613_v60 = vadd.f32 %v5793_v45, %v542_v54  ;;  %v540_v61 = vmul.f32 %v5785_v40, %v362_v56 }
 0x13a   :  { %v5295_v63 = vpop.f32.mrf.mxu0 }
 0x13b   :  { %v736_v0 = vmax.f32 %v608_v50, %v672_v59  ;;  %v611_v3 = vadd.f32 %v5793_v45, %v540_v61  ;;  %v543_v4 = vmul.f32 %v5295_v63, %v5785_v40  ;;  %v677_v6 = vmul.f32 0.1, %v613_v60 }
 0x13c   :  { %v365_v7 = vpop.f32.mrf.mxu0  ;;  %v5927_v8 = vpack.c.bf16 %v738_v57, %v737_v55 }
 0x13d   :  { %v614_v9 = vadd.f32 %v5793_v45, %v543_v4  ;;  %v541_v12 = vmul.f32 %v5785_v40, %v365_v7  ;;  %v675_v13 = vmul.f32 0.1, %v611_v3  ;;  %v5933_v15 = vpack.c.bf16 %v736_v0, %v735_v62 }
 0x13e   :  { %1287 = vrot.lane.b32.xlu0 %v5927_v8, %s5703_s11  ;;  %v5298_v14 = vpop.f32.mrf.mxu0  ;;  %v741_v21 = vmax.f32 %v613_v60, %v677_v6 }
 0x13f   :  { %v678_v16 = vmul.f32 0.1, %v614_v9  ;;  %v612_v17 = vadd.f32 %v5793_v45, %v541_v12  ;;  %v546_v20 = vmul.f32 %v5298_v14, %v5785_v40  ;;  %1285 = vrot.lane.b32.xlu1 %v5933_v15, %s5703_s11  ;;  %v739_v28 = vmax.f32 %v611_v3, %v675_v13 }
 0x140   :  { %v378_v22 = vpop.f32.mrf.mxu0 }
 0x141   :  { %v742_v23 = vmax.f32 %v614_v9, %v678_v16  ;;  %v676_v24 = vmul.f32 0.1, %v612_v17  ;;  %v617_v25 = vadd.f32 %v5793_v45, %v546_v20  ;;  %v544_v27 = vmul.f32 %v5785_v40, %v378_v22 }
 0x142   :  { %v5299_v29 = vpop.f32.mrf.mxu0 }
 0x143   :  { %v740_v30 = vmax.f32 %v612_v17, %v676_v24  ;;  %v615_v31 = vadd.f32 %v5793_v45, %v544_v27  ;;  %v547_v32 = vmul.f32 %v5299_v29, %v5785_v40  ;;  %v681_v35 = vmul.f32 0.1, %v617_v25 }
 0x144   :  { %v381_v36 = vpop.f32.mrf.mxu0  ;;  %v5943_v37 = vpack.c.bf16 %v742_v23, %v741_v21  ;;  %v513_v24 = vmul.f32 %v5785_v40, %v5801_v51 }
 0x145   :  { %v618_v39 = vadd.f32 %v5793_v45, %v547_v32  ;;  %v545_v42 = vmul.f32 %v5785_v40, %v381_v36  ;;  %v679_v44 = vmul.f32 0.1, %v615_v31  ;;  %v5949_v49 = vpack.c.bf16 %v740_v30, %v739_v28 }
 0x146   :  { %1291 = vrot.lane.b32.xlu0 %v5943_v37, %s5703_s11  ;;  %v5302_v47 = vpop.f32.mrf.mxu0  ;;  %v745_v56 = vmax.f32 %v617_v25, %v681_v35  ;;  %v512_v32 = vmul.f32 %v5785_v40, %v5795_v46  ;;  %v517_v46 = vmul.f32 %v5785_v40, %v5813_v1  ;;  %v516_v1 = vmul.f32 %v5785_v40, %v5807_v58 }
 0x147   :  { %v682_v50 = vmul.f32 0.1, %v618_v39  ;;  %v616_v54 = vadd.f32 %v5793_v45, %v545_v42  ;;  %v550_v55 = vmul.f32 %v5302_v47, %v5785_v40  ;;  %1289 = vrot.lane.b32.xlu1 %v5949_v49, %s5703_s11  ;;  %v743_v63 = vmax.f32 %v615_v31, %v679_v44 }
 0x148   :  { %v394_v57 = vpop.f32.mrf.mxu0  ;;  %v584_v44 = vadd.f32 %v5793_v45, %v513_v24  ;;  %v587_v58 = vadd.f32 %v5793_v45, %v516_v1 }
 0x149   :  { %v746_v59 = vmax.f32 %v618_v39, %v682_v50  ;;  %v680_v60 = vmul.f32 0.1, %v616_v54  ;;  %v621_v61 = vadd.f32 %v5793_v45, %v550_v55  ;;  %v548_v62 = vmul.f32 %v5785_v40, %v394_v57 }
 0x14a   :  { %v5303_v0 = vpop.f32.mrf.mxu0  ;;  %v583_v57 = vadd.f32 %v5793_v45, %v512_v32 }
 0x14b   :  { %v744_v3 = vmax.f32 %v616_v54, %v680_v60  ;;  %v619_v4 = vadd.f32 %v5793_v45, %v548_v62  ;;  %v551_v6 = vmul.f32 %v5303_v0, %v5785_v40  ;;  %v685_v7 = vmul.f32 0.1, %v621_v61 }
 0x14c   :  { %v397_v9 = vpop.f32.mrf.mxu0  ;;  %v5959_v12 = vpack.c.bf16 %v746_v59, %v745_v56  ;;  %v648_v0 = vmul.f32 0.1, %v584_v44 }
 0x14d   :  { %v622_v13 = vadd.f32 %v5793_v45, %v551_v6  ;;  %v549_v14 = vmul.f32 %v5785_v40, %v397_v9  ;;  %v683_v16 = vmul.f32 0.1, %v619_v4  ;;  %v5965_v20 = vpack.c.bf16 %v744_v3, %v743_v63 }
 0x14e   :  { %1295 = vrot.lane.b32.xlu0 %v5959_v12, %s5703_s11  ;;  %v5306_v17 = vpop.f32.mrf.mxu0  ;;  %v749_v25 = vmax.f32 %v621_v61, %v685_v7 }
 0x14f   :  { %v686_v21 = vmul.f32 0.1, %v622_v13  ;;  %v620_v22 = vadd.f32 %v5793_v45, %v549_v14  ;;  %v554_v23 = vmul.f32 %v5306_v17, %v5785_v40  ;;  %1293 = vrot.lane.b32.xlu1 %v5965_v20, %s5703_s11  ;;  %v747_v35 = vmax.f32 %v619_v4, %v683_v16 }
 0x150   :  { %v410_v27 = vpop.f32.mrf.mxu0  ;;  %v647_v14 = vmul.f32 0.1, %v583_v57  ;;  %v588_v16 = vadd.f32 %v5793_v45, %v517_v46  ;;  %v651_v46 = vmul.f32 0.1, %v587_v58 }
 0x151   :  { %v750_v28 = vmax.f32 %v622_v13, %v686_v21  ;;  %v684_v29 = vmul.f32 0.1, %v620_v22  ;;  %v625_v30 = vadd.f32 %v5793_v45, %v554_v23  ;;  %v552_v31 = vmul.f32 %v5785_v40, %v410_v27 }
 0x152   :  { %v5307_v36 = vpop.f32.mrf.mxu0  ;;  %v711_v32 = vmax.f32 %v583_v57, %v647_v14  ;;  %v715_v14 = vmax.f32 %v587_v58, %v651_v46 }
 0x153   :  { %v748_v39 = vmax.f32 %v620_v22, %v684_v29  ;;  %v623_v42 = vadd.f32 %v5793_v45, %v552_v31  ;;  %v555_v51 = vmul.f32 %v5307_v36, %v5785_v40  ;;  %v689_v47 = vmul.f32 0.1, %v625_v30 }
 0x154   :  { %v413_v50 = vpop.f32.mrf.mxu0  ;;  %v5980_v54 = vpack.c.bf16 %v750_v28, %v749_v25  ;;  %v712_v25 = vmax.f32 %v584_v44, %v648_v0 }
 0x155   :  { %v626_v55 = vadd.f32 %v5793_v45, %v555_v51  ;;  %v553_v56 = vmul.f32 %v5785_v40, %v413_v50  ;;  %v687_v59 = vmul.f32 0.1, %v623_v42  ;;  %v5989_v61 = vpack.c.bf16 %v748_v39, %v747_v35 }
 0x156   :  { %1299 = vrot.lane.b32.xlu0 %v5980_v54, %s5703_s11  ;;  %v5310_v60 = vpop.f32.mrf.mxu0  ;;  %v753_v3 = vmax.f32 %v625_v30, %v689_v47  ;;  %v652_v35 = vmul.f32 0.1, %v588_v16  ;;  %v521_v51 = vmul.f32 %v5785_v40, %v5855_v18  ;;  %v6017_v57 = vpack.c.bf16 %v712_v25, %v711_v32 }
 0x157   :  { %v690_v62 = vmul.f32 0.1, %v626_v55  ;;  %v624_v63 = vadd.f32 %v5793_v45, %v553_v56  ;;  %v558_v4 = vmul.f32 %v5310_v60, %v5785_v40  ;;  %1297 = vrot.lane.b32.xlu1 %v5989_v61, %s5703_s11  ;;  %v751_v17 = vmax.f32 %v623_v42, %v687_v59 }
 0x158   :  { %v426_v6 = vpop.f32.mrf.mxu0  ;;  %v520_v59 = vmul.f32 %v5785_v40, %v5849_v11  ;;  %v716_v18 = vmax.f32 %v588_v16, %v652_v35 }
 0x159   :  { %v754_v7 = vmax.f32 %v626_v55, %v690_v62  ;;  %v688_v9 = vmul.f32 0.1, %v624_v63  ;;  %v556_v13 = vmul.f32 %v5785_v40, %v426_v6  ;;  %v629_v27 = vadd.f32 %v5793_v45, %v558_v4 }
 0x15a   :  { %v5311_v21 = vpop.f32.mrf.mxu0  ;;  %v591_v16 = vadd.f32 %v5793_v45, %v520_v59  ;;  %v6038_v58 = vpack.c.bf16 %v716_v18, %v715_v14 }
 0x15b   :  { %v752_v22 = vmax.f32 %v624_v63, %v688_v9  ;;  %v627_v23 = vadd.f32 %v5793_v45, %v556_v13  ;;  %v559_v24 = vmul.f32 %v5311_v21, %v5785_v40  ;;  %v6002_v29 = vpack.c.bf16 %v754_v7, %v753_v3 }
 0x15c   :  { %v429_v28 = vpop.f32.mrf.mxu0  ;;  %v693_v47 = vmul.f32 0.1, %v629_v27  ;;  %v592_v3 = vadd.f32 %v5793_v45, %v521_v51 }
 0x15d   :  { %v630_v30 = vadd.f32 %v5793_v45, %v559_v24  ;;  %v557_v31 = vmul.f32 %v5785_v40, %v429_v28  ;;  %v691_v36 = vmul.f32 0.1, %v627_v23  ;;  %1303 = vrot.lane.b32.xlu0 %v6002_v29, %s5703_s11  ;;  %v6009_v42 = vpack.c.bf16 %v752_v22, %v751_v17 }
 0x15e   :  { %v5314_v39 = vpop.f32.mrf.mxu0  ;;  %v757_v7 = vmax.f32 %v629_v27, %v693_v47  ;;  %v525_v22 = vmul.f32 %v5785_v40, %v5869_v33  ;;  %v656_v27 = vmul.f32 0.1, %v592_v3 }
 0x15f   :  { %v628_v44 = vadd.f32 %v5793_v45, %v557_v31  ;;  %v694_v50 = vmul.f32 0.1, %v630_v30  ;;  %v562_v55 = vmul.f32 %v5314_v39, %v5785_v40  ;;  %1301 = vrot.lane.b32.xlu1 %v6009_v42, %s5703_s11  ;;  %v755_v63 = vmax.f32 %v627_v23, %v691_v36 }
 0x160   :  { %v442_v56 = vpop.f32.mrf.mxu0  ;;  %v655_v36 = vmul.f32 0.1, %v591_v16  ;;  %v524_v39 = vmul.f32 %v5785_v40, %v5863_v26  ;;  %v596_v47 = vadd.f32 %v5793_v45, %v525_v22 }
 0x161   :  { %v692_v60 = vmul.f32 0.1, %v628_v44  ;;  %v560_v62 = vmul.f32 %v5785_v40, %v442_v56  ;;  %1261 = vrot.lane.b32.xlu0 %v6017_v57, %s5703_s11  ;;  %v758_v9 = vmax.f32 %v630_v30, %v694_v50  ;;  %v633_v11 = vadd.f32 %v5793_v45, %v562_v55 }
 0x162   :  { %v5315_v0 = vpop.f32.mrf.mxu0  ;;  %v720_v56 = vmax.f32 %v592_v3, %v656_v27 }
 0x163   :  { %v756_v4 = vmax.f32 %v628_v44, %v692_v60  ;;  %v631_v6 = vadd.f32 %v5793_v45, %v560_v62  ;;  %v563_v1 = vmul.f32 %v5315_v0, %v5785_v40  ;;  %v697_v30 = vmul.f32 0.1, %v633_v11 }
 0x164   :  { %v445_v13 = vpop.f32.mrf.mxu0  ;;  %v6043_v35 = vpack.c.bf16 %v758_v9, %v757_v7  ;;  %v719_v0 = vmax.f32 %v591_v16, %v655_v36 }
 0x165   :  { %v634_v17 = vadd.f32 %v5793_v45, %v563_v1  ;;  %v561_v21 = vmul.f32 %v5785_v40, %v445_v13  ;;  %v695_v23 = vmul.f32 0.1, %v631_v6  ;;  %1263 = vrot.lane.b32.xlu0 %v5815_v2, %s5703_s11  ;;  %v6035_v25 = vpack.c.bf16 %v756_v4, %v755_v63 }
 0x166   :  { %v5318_v24 = vpop.f32.mrf.mxu0  ;;  %v761_v62 = vmax.f32 %v633_v11, %v697_v30  ;;  %v595_v4 = vadd.f32 %v5793_v45, %v524_v39  ;;  %v660_v1 = vmul.f32 0.1, %v596_v47  ;;  %v529_v13 = vmul.f32 %v5785_v40, %v5883_v52 }
 0x167   :  { %v632_v28 = vadd.f32 %v5793_v45, %v561_v21  ;;  %v698_v31 = vmul.f32 0.1, %v634_v17  ;;  %v566_v32 = vmul.f32 %v5318_v24, %v5785_v40  ;;  %1305 = vrot.lane.b32.xlu1 %v6035_v25, %s5703_s11  ;;  %v759_v50 = vmax.f32 %v631_v6, %v695_v23 }
 0x168   :  { %v458_v33 = vpop.f32.mrf.mxu0  ;;  %v6066_v16 = vpack.c.bf16 %v720_v56, %v719_v0  ;;  %v659_v27 = vmul.f32 0.1, %v595_v4  ;;  %v528_v52 = vmul.f32 %v5785_v40, %v5877_v41  ;;  %v600_v36 = vadd.f32 %v5793_v45, %v529_v13 }
 0x169   :  { %v696_v51 = vmul.f32 0.1, %v632_v28  ;;  %v564_v44 = vmul.f32 %v5785_v40, %v458_v33  ;;  %1265 = vrot.lane.b32.xlu0 %v6038_v58, %s5703_s11  ;;  %v762_v18 = vmax.f32 %v634_v17, %v698_v31  ;;  %v637_v26 = vadd.f32 %v5793_v45, %v566_v32 }
 0x16a   :  { %v5319_v55 = vpop.f32.mrf.mxu0  ;;  %v724_v31 = vmax.f32 %v596_v47, %v660_v1  ;;  %v723_v47 = vmax.f32 %v595_v4, %v659_v27 }
 0x16b   :  { %v760_v46 = vmax.f32 %v632_v28, %v696_v51  ;;  %v635_v59 = vadd.f32 %v5793_v45, %v564_v44  ;;  %v567_v60 = vmul.f32 %v5319_v55, %v5785_v40  ;;  %1307 = vrot.lane.b32.xlu1 %v6043_v35, %s5703_s11  ;;  %v701_v17 = vmul.f32 0.1, %v637_v26 }
 0x16c   :  { %v461_v63 = vpop.f32.mrf.mxu0  ;;  %v6071_v24 = vpack.c.bf16 %v762_v18, %v761_v62 }
 0x16d   :  { %v638_v6 = vadd.f32 %v5793_v45, %v567_v60  ;;  %v565_v3 = vmul.f32 %v5785_v40, %v461_v63  ;;  %v699_v7 = vmul.f32 0.1, %v635_v59  ;;  %1267 = vrot.lane.b32.xlu0 %v5857_v19, %s5703_s11  ;;  %v6061_v11 = vpack.c.bf16 %v760_v46, %v759_v50 }
 0x16e   :  { %v5322_v9 = vpop.f32.mrf.mxu0  ;;  %v765_v50 = vmax.f32 %v637_v26, %v701_v17  ;;  %v599_v60 = vadd.f32 %v5793_v45, %v528_v52  ;;  %v664_v63 = vmul.f32 0.1, %v600_v36 }
 0x16f   :  { %v636_v14 = vadd.f32 %v5793_v45, %v565_v3  ;;  %v702_v21 = vmul.f32 0.1, %v638_v6  ;;  %v570_v22 = vmul.f32 %v5322_v9, %v5785_v40  ;;  %1309 = vrot.lane.b32.xlu1 %v6061_v11, %s5703_s11  ;;  %v763_v32 = vmax.f32 %v635_v59, %v699_v7 }
 0x170   :  { %v474_v23 = vpop.f32.mrf.mxu0  ;;  %v663_v17 = vmul.f32 0.1, %v599_v60 }
 0x171   :  { %v700_v28 = vmul.f32 0.1, %v636_v14  ;;  %v568_v30 = vmul.f32 %v5785_v40, %v474_v23  ;;  %1269 = vrot.lane.b32.xlu0 %v6066_v16, %s5703_s11  ;;  %v766_v55 = vmax.f32 %v638_v6, %v702_v21  ;;  %v641_v56 = vadd.f32 %v5793_v45, %v570_v22 }
 0x172   :  { %v5323_v33 = vpop.f32.mrf.mxu0  ;;  %v6092_v6 = vpack.c.bf16 %v724_v31, %v723_v47 }
 0x173   :  { %v764_v39 = vmax.f32 %v636_v14, %v700_v28  ;;  %v639_v51 = vadd.f32 %v5793_v45, %v568_v30  ;;  %v571_v44 = vmul.f32 %v5323_v33, %v5785_v40  ;;  %1311 = vrot.lane.b32.xlu1 %v6071_v24, %s5703_s11  ;;  %v705_v3 = vmul.f32 0.1, %v641_v56 }
 0x174   :  { %v477_v41 = vpop.f32.mrf.mxu0  ;;  %v6097_v9 = vpack.c.bf16 %v766_v55, %v765_v50  ;;  %v728_v30 = vmax.f32 %v600_v36, %v664_v63  ;;  %v727_v50 = vmax.f32 %v599_v60, %v663_v17  ;;  %v888_v17 = vshll.u32 %v5911_v38, 16 }
 0x175   :  { %v642_v46 = vadd.f32 %v5793_v45, %v571_v44  ;;  %v569_v59 = vmul.f32 %v5785_v40, %v477_v41  ;;  %v703_v62 = vmul.f32 0.1, %v639_v51  ;;  %1271 = vrot.lane.b32.xlu0 %v5871_v34, %s5703_s11  ;;  %v6089_v26 = vpack.c.bf16 %v764_v39, %v763_v32 }
 0x176   :  { %v5326_v18 = vpop.f32.mrf.mxu0  ;;  %v769_v31 = vmax.f32 %v641_v56, %v705_v3  ;;  %v6116_v47 = vpack.c.bf16 %v728_v30, %v727_v50  ;;  %v874_v3 = vshll.u32 %v5897_v10, 16  ;;  %v899_v50 = vshrl.u32 %v5927_v8, 16 }
 0x177   :  { %v640_v0 = vadd.f32 %v5793_v45, %v569_v59  ;;  %v706_v4 = vmul.f32 0.1, %v642_v46  ;;  %v574_v1 = vmul.f32 %v5326_v18, %v5785_v40  ;;  %1313 = vrot.lane.b32.xlu1 %v6089_v26, %s5703_s11  ;;  %v767_v21 = vmax.f32 %v639_v51, %v703_v62 }
 0x178   :  { %v490_v7 = vpop.f32.mrf.mxu0 }
 0x179   :  { %v704_v13 = vmul.f32 0.1, %v640_v0  ;;  %v572_v14 = vmul.f32 %v5785_v40, %v490_v7  ;;  %1273 = vrot.lane.b32.xlu0 %v6092_v6, %s5703_s11  ;;  %v770_v52 = vmax.f32 %v642_v46, %v706_v4  ;;  %v645_v32 = vadd.f32 %v5793_v45, %v574_v1 }
 0x17a   :  { %v5327_v22 = vpop.f32.mrf.mxu0  ;;  %v1116_v1 = vrot.slane %v874_v3, 1 }
 0x17b   :  { %v768_v23 = vmax.f32 %v640_v0, %v704_v13  ;;  %v643_v27 = vadd.f32 %v5793_v45, %v572_v14  ;;  %v575_v28 = vmul.f32 %v5327_v22, %v5785_v40  ;;  %1315 = vrot.lane.b32.xlu1 %v6097_v9, %s5703_s11  ;;  %v709_v56 = vmul.f32 0.1, %v645_v32 }
 0x17c   :  { %v493_v33 = vpop.f32.mrf.mxu0  ;;  %v6118_v46 = vpack.c.bf16 %v770_v52, %v769_v31  ;;  %v871_v0 = vshrl.u32 %v5897_v10, 16  ;;  %v885_v13 = vshrl.u32 %v5911_v38, 16  ;;  %v881_v10 = vshll.u32 %v5917_v48, 16 }
 0x17d   :  { %v707_v39 = vmul.f32 0.1, %v643_v27  ;;  %v646_v51 = vadd.f32 %v5793_v45, %v575_v28  ;;  %v573_v44 = vmul.f32 %v5785_v40, %v493_v33  ;;  %1275 = vrot.lane.b32.xlu0 %v5885_v53, %s5703_s11  ;;  %v6111_v55 = vpack.c.bf16 %v768_v23, %v767_v21 }
 0x17e   :  { %v773_v60 = vmax.f32 %v645_v32, %v709_v56  ;;  %v873_v4 = vrot.slane %v871_v0, 7  ;;  %v1117_v14 = vor.u32 %v1116_v1, %v871_v0  ;;  %v878_v21 = vshrl.u32 %v5917_v48, 16 }
 0x17f   :  { %v644_v36 = vadd.f32 %v5793_v45, %v573_v44  ;;  %v710_v41 = vmul.f32 0.1, %v646_v51  ;;  %1317 = vrot.lane.b32.xlu1 %v6111_v55, %s5703_s11  ;;  %v771_v59 = vmax.f32 %v643_v27, %v707_v39  ;;  %v887_v30 = vrot.slane %v885_v13, 7 }
 0x180   :  { %v876_v7 = vor.u32 %v874_v3, %v873_v4  ;;  %v1206_v38 = vsel %vm6142_vm9, %v1117_v14, 0  ;;  %v1120_v52 = vrot.slane %v888_v17, 1  ;;  %v880_v39 = vrot.slane %v878_v21, 7 }
 0x181   :  { %v708_v62 = vmul.f32 0.1, %v644_v36  ;;  %1277 = vrot.lane.b32.xlu0 %v6116_v47, %s5703_s11  ;;  %v774_v18 = vmax.f32 %v646_v51, %v710_v41  ;;  %v1118_v51 = vrot.slane %v881_v10, 1  ;;  %v815_v48 = vshrl.u32 %v5815_v2, 16 }
 0x182   :  { %v1075_v28 = vsel %vm6137_vm8, 0, %v876_v7  ;;  %v890_v44 = vor.u32 %v888_v17, %v887_v30  ;;  %v1121_v56 = vor.u32 %v1120_v52, %v885_v13  ;;  %v902_v41 = vshll.u32 %v5927_v8, 16 }
 0x183   :  { %v772_v40 = vmax.f32 %v644_v36, %v708_v62  ;;  %1319 = vrot.lane.b32.xlu1 %v6118_v46, %s5703_s11  ;;  %v6128_v63 = vpack.c.bf16 %v774_v18, %v773_v60  ;;  %v808_v36 = vshrl.u32 %v6017_v57, 16  ;;  %v883_v62 = vor.u32 %v881_v10, %v880_v39 }
 0x184   :  { %v1119_v60 = vor.u32 %v1118_v51, %v878_v21  ;;  %v895_v18 = vshll.u32 %v5933_v15, 16  ;;  %v817_v0 = vrot.slane %v815_v48, 7  ;;  %v1077_v4 = vsel %vm6137_vm8, 0, %v890_v44 }
 0x185   :  { %v6124_v45 = vpack.c.bf16 %v772_v40, %v771_v59  ;;  %v811_v59 = vshll.u32 %v6017_v57, 16  ;;  %v892_v40 = vshrl.u32 %v5933_v15, 16  ;;  %v901_v1 = vrot.slane %v899_v50, 7 }
 0x186   :  { %v810_v7 = vrot.slane %v808_v36, 7  ;;  %v818_v13 = vshll.u32 %v5815_v2, 16  ;;  %v1208_v8 = vsel %vm6142_vm9, %v1121_v56, 0  ;;  %v1124_v14 = vrot.slane %v902_v41, 1  ;;  %v5383_v56 = vld [vmem:[#allocation6 + $0xf8] sm:$0xff]  }
 0x187   :  { %1321 = vrot.lane.b32.xlu1 %v6124_v45, %s5703_s11  ;;  %v1098_v17 = vrot.slane %v811_v59, 1  ;;  %v1207_v30 = vsel %vm6142_vm9, %v1119_v60, 0  ;;  %v1122_v52 = vrot.slane %v895_v18, 1  ;;  %v904_v44 = vor.u32 %v902_v41, %v901_v1 }
 0x188   :  { %v1125_v60 = vor.u32 %v1124_v14, %v899_v50  ;;  %v909_v50 = vshll.u32 %v5949_v49, 16  ;;  %v923_v2 = vshll.u32 %v5965_v20, 16 }
 0x189   :  { %v1099_v41 = vor.u32 %v1098_v17, %v808_v36  ;;  %v1123_v1 = vor.u32 %v1122_v52, %v892_v40  ;;  %v829_v36 = vshrl.u32 %v5857_v19, 16  ;;  %v832_v17 = vshll.u32 %v5857_v19, 16 }
 0x18b   :  { %1323 = vrot.lane.b32.xlu1 %v6128_v63, %s5703_s11 }
 0x19f   :  { %v1280_v27 = vpop.permute.xlu0 %1279 }
 0x1a0   :  { %v1355_v31 = vsel %vm1325_vm7, %v1075_v28, %v1280_v27  ;;  %v1076_v27 = vsel %vm6137_vm8, 0, %v883_v62  ;;  %v894_v28 = vrot.slane %v892_v40, 7  ;;  %v913_v62 = vshrl.u32 %v5943_v37, 16 }
 0x1a1   :  { %v4836_v32 = vcombine.low %v1355_v31, %v1206_v38  ;;  %v4837_v33 = vcombine.high %v1355_v31, %v1206_v38 }
 0x1a3   :  { %1780 = vst.msk [vmem:[#allocation2 + $0xa0] sm:$0xff] %vm5820_vm2, %v4836_v32  ;;  %1781 = vst.msk [vmem:[#allocation2 + $0xa8] sm:$0xff] %vm5820_vm2, %v4837_v33  ;;  %v6175_v32 = vor.u32 %v818_v13, %v817_v0  ;;  %v897_v0 = vor.u32 %v895_v18, %v894_v28  ;;  %v915_v18 = vrot.slane %v913_v62, 7 }
 0x1a8   :  { %v1284_v3 = vpop.permute.xlu1 %1283 }
 0x1a9   :  { %v1361_v57 = vsel %vm1325_vm7, %v1077_v4, %v1284_v3  ;;  %v1282_v10 = vpop.permute.xlu0 %1281  ;;  %v916_v3 = vshll.u32 %v5943_v37, 16  ;;  %v1100_v4 = vrot.slane %v818_v13, 1  ;;  %v1067_v37 = vsel %vm6137_vm8, 0, %v6175_v32 }
 0x1aa   :  { %v4840_v21 = vcombine.low %v1361_v57, %v1208_v8  ;;  %v4841_v15 = vcombine.high %v1361_v57, %v1208_v8  ;;  %v1358_v38 = vsel %vm1325_vm7, %v1076_v27, %v1282_v10  ;;  %v5380_v31 = vld [vmem:[#allocation2 + $0xa0] ss:$8 sps:$4 sm:$0xff]   ;;  %v5382_v51 = vld [vmem:[#allocation2 + $0xa4] ss:$8 sps:$4 sm:$0xff]   ;;  %v906_v8 = vshrl.u32 %v5949_v49, 16 }
 0x1ab   :  { %v4838_v33 = vcombine.low %v1358_v38, %v1207_v30  ;;  %v4839_v39 = vcombine.high %v1358_v38, %v1207_v30  ;;  %4967 = vmatprep.mubr.msk.bf16.mxu1 %vm1325_vm7, %v5382_v51  ;;  %v6189_v57 = vor.u32 %v811_v59, %v810_v7  ;;  %v822_v13 = vshrl.u32 %v6038_v58, 16 }
 0x1ac   :  { %1784 = vst.msk [vmem:[#allocation2 + $0xc0] sm:$0xff] %vm5820_vm2, %v4840_v21  ;;  %1785 = vst.msk [vmem:[#allocation2 + $0xc8] sm:$0xff] %vm5820_vm2, %v4841_v15  ;;  %2564 = vmatmul.mubr.bf16.vlgmr.msra.gmra.mxu1 %v5380_v31  ;;  %v1079_v21 = vsel %vm6137_vm8, 0, %v904_v44  ;;  %v5388_v15 = vld [vmem:[#allocation6 + $0xf0] sm:$0xff]   ;;  %v825_v59 = vshll.u32 %v6038_v58, 16  ;;  %v1210_v49 = vsel %vm6142_vm9, %v1125_v60, 0 }
 0x1ad   :  { %1782 = vst.msk [vmem:[#allocation2 + $0xb0] sm:$0xff] %vm5820_vm2, %v4838_v33  ;;  %1783 = vst.msk [vmem:[#allocation2 + $0xb8] sm:$0xff] %vm5820_vm2, %v4839_v39  ;;  %4040 = vmatpush1.bf16.msra.mxu1 %v5383_v56  ;;  %v1128_v7 = vrot.slane %v916_v3, 1  ;;  %v1078_v30 = vsel %vm6137_vm8, 0, %v897_v0  ;;  %v908_v38 = vrot.slane %v906_v8, 7  ;;  %v1209_v31 = vsel %vm6142_vm9, %v1123_v1, 0 }
 0x1ae   :  { %4041 = vmatprep.subr.bf16.mxu1 %v5705_v43  ;;  %v1126_v33 = vrot.slane %v909_v50, 1  ;;  %v824_v39 = vrot.slane %v822_v13, 7  ;;  %v918_v56 = vor.u32 %v916_v3, %v915_v18  ;;  %v927_v60 = vshrl.u32 %v5959_v12, 16  ;;  %v5393_v0 = vld [vmem:[#allocation6 + $0xe8] sm:$0xff]  }
 0x1af   :  { %v911_v18 = vor.u32 %v909_v50, %v908_v38 }
 0x1b0   :  { %v1288_v14 = vpop.permute.xlu0 %1287  ;;  %v1081_v50 = vsel %vm6137_vm8, 0, %v918_v56  ;;  %v6239_v38 = vor.u32 %v825_v59, %v824_v39 }
 0x1b1   :  { %v1367_v40 = vsel %vm1325_vm7, %v1079_v21, %v1288_v14  ;;  %v1286_v28 = vpop.permute.xlu1 %1285  ;;  %4042 = vmatpush1.bf16.msra.mxu1 %v5388_v15 }
 0x1b2   :  { %v4844_v10 = vcombine.low %v1367_v40, %v1210_v49  ;;  %v4845_v27 = vcombine.high %v1367_v40, %v1210_v49  ;;  %v1364_v52 = vsel %vm1325_vm7, %v1078_v30, %v1286_v28  ;;  %v1129_v49 = vor.u32 %v1128_v7, %v913_v62  ;;  %4043 = vmatprep.subr.bf16.mxu1 %v5705_v43 }
 0x1b3   :  { %v4842_v51 = vcombine.low %v1364_v52, %v1209_v31  ;;  %v4843_v44 = vcombine.high %v1364_v52, %v1209_v31  ;;  %v930_v40 = vshll.u32 %v5959_v12, 16  ;;  %v920_v62 = vshrl.u32 %v5965_v20, 16  ;;  %v5386_v15 = vld [vmem:[#allocation2 + $0xc4] ss:$8 sps:$4 sm:$0xff]  }
 0x1b4   :  { %1788 = vst.msk [vmem:[#allocation2 + $0xe0] sm:$0xff] %vm5820_vm2, %v4844_v10  ;;  %1789 = vst.msk [vmem:[#allocation2 + $0xe8] sm:$0xff] %vm5820_vm2, %v4845_v27  ;;  %v1934_v1 = vld [vmem:[#allocation2 + $0xb0] sm:$0xff]  ;;  %v1935_v14 = vld [vmem:[#allocation2 + $0xb8] sm:$0xff]  ;;  %v1066_v10 = vsel %vm6137_vm8, 0, %v6189_v57  ;;  %v1101_v27 = vor.u32 %v1100_v4, %v815_v48  ;;  %v6231_v12 = vsel %vm6142_vm9, %v1099_v41, 0  ;;  %v1127_v7 = vor.u32 %v1126_v33, %v906_v8 }
 0x1b5   :  { %v5384_v21 = vld [vmem:[#allocation2 + $0xb4] ss:$8 sps:$4 sm:$0xff]   ;;  %1786 = vst.msk [vmem:[#allocation2 + $0xd0] sm:$0xff] %vm5820_vm2, %v4842_v51  ;;  %1787 = vst.msk [vmem:[#allocation2 + $0xd8] sm:$0xff] %vm5820_vm2, %v4843_v44  ;;  %v4902_v3 = vcombine.low %v1934_v1, %v1935_v14  ;;  %v1102_v48 = vrot.slane %v825_v59, 1  ;;  %v831_v4 = vrot.slane %v829_v36, 7  ;;  %4044 = vmatpush1.bf16.msra.mxu1 %v5393_v0 }
 0x1b6   :  { %4968 = vmatprep.mubr.msk.bf16.mxu1 %vm1325_vm7, %v5384_v21  ;;  %v929_v30 = vrot.slane %v927_v60, 7  ;;  %v1104_v41 = vrot.slane %v832_v17, 1  ;;  %v1212_v8 = vsel %vm6142_vm9, %v1129_v49, 0  ;;  %v1132_v31 = vrot.slane %v930_v40, 1  ;;  %v5398_v52 = vld [vmem:[#allocation6 + $0xe0] sm:$0xff]   ;;  %4045 = vmatprep.subr.bf16.mxu1 %v5705_v43  ;;  %v1937_v14 = vld [vmem:[#allocation2 + $0xc8] sm:$0xff] }
 0x1b7   :  { %2572 = vmatmul.mubr.bf16.gmra.mxu1 %v4902_v3  ;;  %v836_v33 = vshrl.u32 %v6066_v16, 16  ;;  %v1080_v59 = vsel %vm6137_vm8, 0, %v911_v18  ;;  %v922_v39 = vrot.slane %v920_v62, 7  ;;  %v1936_v1 = vld [vmem:[#allocation2 + $0xc0] sm:$0xff]  ;;  %v1211_v21 = vsel %vm6142_vm9, %v1127_v7, 0 }
 0x1b8   :  { %v1292_v28 = vpop.permute.xlu0 %1291  ;;  %4969 = vmatprep.mubr.msk.bf16.mxu1 %vm1325_vm7, %v5386_v15  ;;  %v1130_v0 = vrot.slane %v923_v2, 1  ;;  %v839_v3 = vshll.u32 %v6066_v16, 16  ;;  %v6263_v7 = vsel %vm6142_vm9, %v1101_v27, 0  ;;  %v937_v27 = vshll.u32 %v5989_v61, 16 }
 0x1b9   :  { %v1373_v20 = vsel %vm1325_vm7, %v1081_v50, %v1292_v28  ;;  %v1290_v56 = vpop.permute.xlu1 %1289  ;;  %v932_v28 = vor.u32 %v930_v40, %v929_v30  ;;  %v941_v50 = vshrl.u32 %v5980_v54, 16  ;;  %4046 = vmatpush1.bf16.msra.mxu1 %v5398_v52  ;;  %v4904_v40 = vcombine.low %v1936_v1, %v1937_v14 }
 0x1ba   :  { %v4848_v51 = vcombine.low %v1373_v20, %v1212_v8  ;;  %v4849_v44 = vcombine.high %v1373_v20, %v1212_v8  ;;  %v1370_v49 = vsel %vm1325_vm7, %v1080_v59, %v1290_v56  ;;  %v1133_v8 = vor.u32 %v1132_v31, %v927_v60  ;;  %4047 = vmatprep.subr.bf16.mxu1 %v5705_v43 }
 0x1bb   :  { %v4846_v18 = vcombine.low %v1370_v49, %v1211_v21  ;;  %v4847_v15 = vcombine.high %v1370_v49, %v1211_v21  ;;  %v944_v20 = vshll.u32 %v5980_v54, 16  ;;  %v1103_v56 = vor.u32 %v1102_v48, %v822_v13 }
 0x1bc   :  { %1792 = vst.msk [vmem:[#allocation2 + $0x100] sm:$0xff] %vm5820_vm2, %v4848_v51  ;;  %1793 = vst.msk [vmem:[#allocation2 + $0x108] sm:$0xff] %vm5820_vm2, %v4849_v44  ;;  %v5410_v51 = vld [vmem:[#allocation6 + $0xd8] sm:$0xff]   ;;  %v925_v30 = vor.u32 %v923_v2, %v922_v39  ;;  %v934_v60 = vshrl.u32 %v5989_v61, 16  ;;  %v1068_v54 = vsel %vm6137_vm8, 0, %v6239_v38  ;;  %v1131_v13 = vor.u32 %v1130_v0, %v920_v62  ;;  %v1938_v49 = vld [vmem:[#allocation2 + $0xd0] sm:$0xff] }
 0x1bd   :  { %1790 = vst.msk [vmem:[#allocation2 + $0xf0] sm:$0xff] %vm5820_vm2, %v4846_v18  ;;  %1791 = vst.msk [vmem:[#allocation2 + $0xf8] sm:$0xff] %vm5820_vm2, %v4847_v15  ;;  %v5389_v58 = vld [vmem:[#allocation2 + $0xd4] ss:$8 sps:$4 sm:$0xff]   ;;  %v6279_v48 = vor.u32 %v832_v17, %v831_v4  ;;  %v1105_v31 = vor.u32 %v1104_v41, %v829_v36  ;;  %v1083_v52 = vsel %vm6137_vm8, 0, %v932_v28  ;;  %v943_v44 = vrot.slane %v941_v50, 7  ;;  %4048 = vmatpush1.bf16.msra.mxu1 %v5410_v51 }
 0x1be   :  { %v838_v59 = vrot.slane %v836_v33, 7  ;;  %v1106_v62 = vrot.slane %v839_v3, 1  ;;  %v1214_v61 = vsel %vm6142_vm9, %v1133_v8, 0  ;;  %v1136_v19 = vrot.slane %v944_v20, 1  ;;  %v5420_v4 = vld [vmem:[#allocation6 + $0xd0] sm:$0xff]   ;;  %4049 = vmatprep.subr.bf16.mxu1 %v5705_v43  ;;  %v1939_v0 = vld [vmem:[#allocation2 + $0xd8] sm:$0xff] }
 0x1bf   :  { %2580 = vmatmul.mubr.bf16.gmra.mxu1 %v4904_v40  ;;  %v843_v36 = vshrl.u32 %v5871_v34, 16  ;;  %v1082_v14 = vsel %vm6137_vm8, 0, %v925_v30  ;;  %v936_v21 = vrot.slane %v934_v60, 7  ;;  %v1213_v18 = vsel %vm6142_vm9, %v1131_v13, 0 }
 0x1c0   :  { %v1296_v2 = vpop.permute.xlu0 %1295  ;;  %4970 = vmatprep.mubr.msk.bf16.mxu1 %vm1325_vm7, %v5389_v58  ;;  %v1134_v28 = vrot.slane %v937_v27, 1  ;;  %v846_v8 = vshll.u32 %v5871_v34, 16  ;;  %v946_v30 = vor.u32 %v944_v20, %v943_v44  ;;  %v955_v58 = vshrl.u32 %v6002_v29, 16  ;;  %v5391_v44 = vld [vmem:[#allocation2 + $0xe4] ss:$8 sps:$4 sm:$0xff]  }
 0x1c1   :  { %v1379_v17 = vsel %vm1325_vm7, %v1083_v52, %v1296_v2  ;;  %v1294_v1 = vpop.permute.xlu1 %1293  ;;  %v1137_v2 = vor.u32 %v1136_v19, %v941_v50  ;;  %v958_v52 = vshll.u32 %v6002_v29, 16  ;;  %v6309_v13 = vsel %vm6142_vm9, %v1103_v56, 0  ;;  %4050 = vmatpush1.bf16.msra.mxu1 %v5420_v4 }
 0x1c2   :  { %v4852_v41 = vcombine.low %v1379_v17, %v1214_v61  ;;  %v4853_v39 = vcombine.high %v1379_v17, %v1214_v61  ;;  %v1376_v15 = vsel %vm1325_vm7, %v1082_v14, %v1294_v1  ;;  %v1069_v61 = vsel %vm6137_vm8, 0, %v6279_v48  ;;  %v5435_v17 = vld [vmem:[#allocation6 + $0xc8] sm:$0xff]   ;;  %4051 = vmatprep.subr.bf16.mxu1 %v5705_v43 }
 0x1c3   :  { %v4850_v51 = vcombine.low %v1376_v15, %v1213_v18  ;;  %v4851_v40 = vcombine.high %v1376_v15, %v1213_v18  ;;  %v4906_v20 = vcombine.low %v1938_v49, %v1939_v0  ;;  %v939_v50 = vor.u32 %v937_v27, %v936_v21  ;;  %v1940_v15 = vld [vmem:[#allocation2 + $0xe0] sm:$0xff] }
 0x1c4   :  { %1796 = vst.msk [vmem:[#allocation2 + $0x140] sm:$0xff] %vm5820_vm2, %v4852_v41  ;;  %1797 = vst.msk [vmem:[#allocation2 + $0x148] sm:$0xff] %vm5820_vm2, %v4853_v39  ;;  %v948_v29 = vshrl.u32 %v6009_v42, 16  ;;  %v6321_v56 = vsel %vm6142_vm9, %v1105_v31, 0  ;;  %v1135_v19 = vor.u32 %v1134_v28, %v934_v60  ;;  %v951_v4 = vshll.u32 %v6009_v42, 16  ;;  %v1941_v28 = vld [vmem:[#allocation2 + $0xe8] sm:$0xff] }
 0x1c5   :  { %1794 = vst.msk [vmem:[#allocation2 + $0x130] sm:$0xff] %vm5820_vm2, %v4850_v51  ;;  %1795 = vst.msk [vmem:[#allocation2 + $0x138] sm:$0xff] %vm5820_vm2, %v4851_v40  ;;  %v6327_v41 = vor.u32 %v839_v3, %v838_v59  ;;  %v1107_v39 = vor.u32 %v1106_v62, %v836_v33  ;;  %v1085_v1 = vsel %vm6137_vm8, 0, %v946_v30  ;;  %v957_v31 = vrot.slane %v955_v58, 7  ;;  %4052 = vmatpush1.bf16.msra.mxu1 %v5435_v17  ;;  %v5452_v59 = vld [vmem:[#allocation6 + $0xc0] sm:$0xff]  }
 0x1c6   :  { %v845_v14 = vrot.slane %v843_v36, 7  ;;  %v1108_v60 = vrot.slane %v846_v8, 1  ;;  %v1216_v42 = vsel %vm6142_vm9, %v1137_v2, 0  ;;  %v1140_v16 = vrot.slane %v958_v52, 1  ;;  %4053 = vmatprep.subr.bf16.mxu1 %v5705_v43 }
 0x1c7   :  { %2588 = vmatmul.mubr.bf16.gmra.mxu1 %v4906_v20  ;;  %v850_v33 = vshrl.u32 %v6092_v6, 16  ;;  %v1084_v0 = vsel %vm6137_vm8, 0, %v939_v50  ;;  %v950_v18 = vrot.slane %v948_v29, 7  ;;  %v1215_v51 = vsel %vm6142_vm9, %v1135_v19, 0 }
 0x1c8   :  { %v1300_v27 = vpop.permute.xlu0 %1299  ;;  %4971 = vmatprep.mubr.msk.bf16.mxu1 %vm1325_vm7, %v5391_v44  ;;  %v1138_v30 = vrot.slane %v951_v4, 1  ;;  %v853_v2 = vshll.u32 %v6092_v6, 16  ;;  %v960_v50 = vor.u32 %v958_v52, %v957_v31  ;;  %v857_v44 = vshrl.u32 %v5885_v53, 16 }
 0x1c9   :  { %v1385_v3 = vsel %vm1325_vm7, %v1085_v1, %v1300_v27  ;;  %v1298_v49 = vpop.permute.xlu1 %1297  ;;  %v1141_v27 = vor.u32 %v1140_v16, %v955_v58  ;;  %v962_v1 = vshrl.u32 %v6035_v25, 16  ;;  %v1070_v19 = vsel %vm6137_vm8, 0, %v6327_v41  ;;  %4054 = vmatpush1.bf16.msra.mxu1 %v5452_v59 }
 0x1ca   :  { %v4856_v62 = vcombine.low %v1385_v3, %v1216_v42  ;;  %v4857_v21 = vcombine.high %v1385_v3, %v1216_v42  ;;  %v1382_v40 = vsel %vm1325_vm7, %v1084_v0, %v1298_v49  ;;  %v6360_v42 = vsel %vm6142_vm9, %v1107_v39, 0  ;;  %v5466_v3 = vld [vmem:[#allocation6 + $0x118] sm:$0xff]   ;;  %4063 = vmatprep.subr.bf16.mxu1 %v5705_v43 }
 0x1cb   :  { %v4854_v17 = vcombine.low %v1382_v40, %v1215_v51  ;;  %v4855_v20 = vcombine.high %v1382_v40, %v1215_v51  ;;  %v4908_v52 = vcombine.low %v1940_v15, %v1941_v28  ;;  %v953_v58 = vor.u32 %v951_v4, %v950_v18  ;;  %v5394_v39 = vld [vmem:[#allocation2 + $0xf4] ss:$8 sps:$4 sm:$0xff]  }
 0x1cc   :  { %1800 = vst.msk [vmem:[#allocation2 + $0x160] sm:$0xff] %vm5820_vm2, %v4856_v62  ;;  %1801 = vst.msk [vmem:[#allocation2 + $0x168] sm:$0xff] %vm5820_vm2, %v4857_v21  ;;  %v965_v31 = vshll.u32 %v6035_v25, 16  ;;  %v6369_v16 = vor.u32 %v846_v8, %v845_v14  ;;  %v1139_v62 = vor.u32 %v1138_v30, %v948_v29  ;;  %v1109_v59 = vor.u32 %v1108_v60, %v843_v36  ;;  %v5473_v18 = vld [vmem:[#allocation6 + $0x110] sm:$0xff]  }
 0x1cd   :  { %1798 = vst.msk [vmem:[#allocation2 + $0x150] sm:$0xff] %vm5820_vm2, %v4854_v17  ;;  %1799 = vst.msk [vmem:[#allocation2 + $0x158] sm:$0xff] %vm5820_vm2, %v4855_v20  ;;  %v852_v21 = vrot.slane %v850_v33, 7  ;;  %v1110_v49 = vrot.slane %v853_v2, 1  ;;  %v1087_v4 = vsel %vm6137_vm8, 0, %v960_v50  ;;  %v969_v25 = vshrl.u32 %v6043_v35, 16  ;;  %4064 = vmatpush2.bf16.msra.mxu1 %v5466_v3 }
 0x1ce   :  { %v859_v8 = vrot.slane %v857_v44, 7  ;;  %v860_v14 = vshll.u32 %v5885_v53, 16  ;;  %v1218_v34 = vsel %vm6142_vm9, %v1141_v27, 0  ;;  %v964_v29 = vrot.slane %v962_v1, 7  ;;  %4065 = vmatprep.subr.bf16.mxu1 %v5705_v43  ;;  %v1942_v17 = vld [vmem:[#allocation2 + $0xf0] sm:$0xff]  ;;  %v1943_v20 = vld [vmem:[#allocation2 + $0xf8] sm:$0xff] }
 0x1cf   :  { %v1304_v0 = vpop.permute.xlu0 %1303  ;;  %2596 = vmatmul.mubr.bf16.gmra.mxu1 %v4908_v52  ;;  %v972_v60 = vshll.u32 %v6043_v35, 16  ;;  %v1086_v40 = vsel %vm6137_vm8, 0, %v953_v58  ;;  %v1142_v30 = vrot.slane %v965_v31, 1  ;;  %v1217_v50 = vsel %vm6142_vm9, %v1139_v62, 0 }
 0x1d0   :  { %v1391_v36 = vsel %vm1325_vm7, %v1087_v4, %v1304_v0  ;;  %4972 = vmatprep.mubr.msk.bf16.mxu1 %vm1325_vm7, %v5394_v39  ;;  %v6393_v52 = vor.u32 %v853_v2, %v852_v21  ;;  %v1111_v35 = vor.u32 %v1110_v49, %v850_v33  ;;  %v971_v0 = vrot.slane %v969_v25, 7  ;;  %v5480_v49 = vld [vmem:[#allocation6 + $0x108] sm:$0xff]  }
 0x1d1   :  { %v4860_v15 = vcombine.low %v1391_v36, %v1218_v34  ;;  %v4861_v28 = vcombine.high %v1391_v36, %v1218_v34  ;;  %v1302_v51 = vpop.permute.xlu1 %1301  ;;  %v6403_v62 = vor.u32 %v860_v14, %v859_v8  ;;  %v967_v33 = vor.u32 %v965_v31, %v964_v29  ;;  %4066 = vmatpush2.bf16.msra.mxu1 %v5473_v18 }
 0x1d2   :  { %v1388_v27 = vsel %vm1325_vm7, %v1086_v40, %v1302_v51  ;;  %v1144_v2 = vrot.slane %v972_v60, 1  ;;  %v976_v21 = vshrl.u32 %v6061_v11, 16  ;;  %v4910_v34 = vcombine.low %v1942_v17, %v1943_v20  ;;  %4067 = vmatprep.subr.bf16.mxu1 %v5705_v43 }
 0x1d3   :  { %1804 = vst.msk [vmem:[#allocation2 + $0x180] sm:$0xff] %vm5820_vm2, %v4860_v15  ;;  %1805 = vst.msk [vmem:[#allocation2 + $0x188] sm:$0xff] %vm5820_vm2, %v4861_v28  ;;  %v4858_v3 = vcombine.low %v1388_v27, %v1217_v50  ;;  %v4859_v58 = vcombine.high %v1388_v27, %v1217_v50  ;;  %v1262_v39 = vpop.permute.xlu0 %1261  ;;  %v1143_v57 = vor.u32 %v1142_v30, %v962_v1  ;;  %v979_v31 = vshll.u32 %v6061_v11, 16  ;;  %v5487_v30 = vld [vmem:[#allocation6 + $0x100] sm:$0xff]   ;;  %v1945_v27 = vld [vmem:[#allocation2 + $0x108] sm:$0xff] }
 0x1d4   :  { %v1328_v6 = vsel %vm1325_vm7, %v1066_v10, %v1262_v39  ;;  %v5396_v10 = vld [vmem:[#allocation2 + $0x104] ss:$8 sps:$4 sm:$0xff]   ;;  %v983_v36 = vshrl.u32 %v6071_v24, 16  ;;  %v1071_v29 = vsel %vm6137_vm8, 0, %v6369_v16  ;;  %v6425_v18 = vsel %vm6142_vm9, %v1109_v59, 0 }
 0x1d5   :  { %1802 = vst.msk [vmem:[#allocation2 + $0x170] sm:$0xff] %vm5820_vm2, %v4858_v3  ;;  %1803 = vst.msk [vmem:[#allocation2 + $0x178] sm:$0xff] %vm5820_vm2, %v4859_v58  ;;  %v4818_v4 = vcombine.low %v1328_v6, %v6231_v12  ;;  %v4819_v8 = vcombine.high %v1328_v6, %v6231_v12  ;;  %v974_v1 = vor.u32 %v972_v60, %v971_v0  ;;  %v986_v15 = vshll.u32 %v6071_v24, 16  ;;  %v1944_v50 = vld [vmem:[#allocation2 + $0x100] sm:$0xff] }
 0x1d6   :  { %v1072_v28 = vsel %vm6137_vm8, 0, %v6393_v52  ;;  %v6437_v51 = vsel %vm6142_vm9, %v1111_v35, 0  ;;  %v1145_v40 = vor.u32 %v1144_v2, %v969_v25  ;;  %v978_v24 = vrot.slane %v976_v21, 7  ;;  %4068 = vmatpush2.bf16.msra.mxu1 %v5480_v49 }
 0x1d7   :  { %1762 = vst.msk [vmem:[#allocation2 + $0x10] sm:$0xff] %vm5820_vm2, %v4818_v4  ;;  %1763 = vst.msk [vmem:[#allocation2 + $0x18] sm:$0xff] %vm5820_vm2, %v4819_v8  ;;  %v1264_v12 = vpop.permute.xlu0 %1263  ;;  %2604 = vmatmul.mubr.bf16.gmra.mxu1 %v4910_v34  ;;  %v1073_v60 = vsel %vm6137_vm8, 0, %v6403_v62  ;;  %v1219_v25 = vsel %vm6142_vm9, %v1143_v57, 0  ;;  %4069 = vmatprep.subr.bf16.mxu1 %v5705_v43  ;;  %v1146_v3 = vrot.slane %v979_v31, 1  ;;  %v985_v58 = vrot.slane %v983_v36, 7 }
 0x1d8   :  { %v1331_v59 = vsel %vm1325_vm7, %v1067_v37, %v1264_v12  ;;  %4973 = vmatprep.mubr.msk.bf16.mxu1 %vm1325_vm7, %v5396_v10  ;;  %v1088_v37 = vsel %vm6137_vm8, 0, %v967_v33  ;;  %v990_v39 = vshrl.u32 %v6089_v26, 16  ;;  %v1089_v33 = vsel %vm6137_vm8, 0, %v974_v1 }
 0x1d9   :  { %v4820_v17 = vcombine.low %v1331_v59, %v6263_v7  ;;  %v4821_v20 = vcombine.high %v1331_v59, %v6263_v7  ;;  %v1306_v32 = vpop.permute.xlu1 %1305  ;;  %v1148_v2 = vrot.slane %v986_v15, 1  ;;  %v1220_v4 = vsel %vm6142_vm9, %v1145_v40, 0 }
 0x1da   :  { %v1394_v35 = vsel %vm1325_vm7, %v1088_v37, %v1306_v32  ;;  %v981_v8 = vor.u32 %v979_v31, %v978_v24  ;;  %v993_v34 = vshll.u32 %v6089_v26, 16  ;;  %4070 = vmatpush2.bf16.msra.mxu1 %v5487_v30  ;;  %v4912_v12 = vcombine.low %v1944_v50, %v1945_v27 }
 0x1db   :  { %1764 = vst.msk [vmem:[#allocation2 + $0x20] sm:$0xff] %vm5820_vm2, %v4820_v17  ;;  %1765 = vst.msk [vmem:[#allocation2 + $0x28] sm:$0xff] %vm5820_vm2, %v4821_v20  ;;  %v4862_v7 = vcombine.low %v1394_v35, %v1219_v25  ;;  %v4863_v0 = vcombine.high %v1394_v35, %v1219_v25  ;;  %v1266_v6 = vpop.permute.xlu0 %1265  ;;  %v997_v1 = vshrl.u32 %v6097_v9, 16  ;;  %v1147_v40 = vor.u32 %v1146_v3, %v976_v21  ;;  %v5419_v21 = vld [vmem:[#allocation6 + $0x38] sm:$0xff]   ;;  %v1946_v3 = vld [vmem:[#allocation2 + $0x130] sm:$0xff] }
 0x1dc   :  { %v1334_v49 = vsel %vm1325_vm7, %v1068_v54, %v1266_v6  ;;  %v5402_v54 = vld [vmem:[#allocation2 + $0x134] ss:$8 sps:$4 sm:$0xff]   ;;  %v988_v24 = vor.u32 %v986_v15, %v985_v58  ;;  %v992_v30 = vrot.slane %v990_v39, 7  ;;  %v1149_v32 = vor.u32 %v1148_v2, %v983_v36 }
 0x1dd   :  { %1806 = vst.msk [vmem:[#allocation2 + $0x190] sm:$0xff] %vm5820_vm2, %v4862_v7  ;;  %1807 = vst.msk [vmem:[#allocation2 + $0x198] sm:$0xff] %vm5820_vm2, %v4863_v0  ;;  %v4822_v57 = vcombine.low %v1334_v49, %v6309_v13  ;;  %v4823_v10 = vcombine.high %v1334_v49, %v6309_v13  ;;  %v1308_v38 = vpop.permute.xlu1 %1307  ;;  %v1000_v11 = vshll.u32 %v6097_v9, 16  ;;  %v1150_v37 = vrot.slane %v993_v34, 1  ;;  %v1947_v58 = vld [vmem:[#allocation2 + $0x138] sm:$0xff] }
 0x1de   :  { %v1397_v31 = vsel %vm1325_vm7, %v1089_v33, %v1308_v38  ;;  %v6481_v59 = vld [vmem:[#allocation2 + $0x10] ss:$8 sps:$4 sm:$0xff]   ;;  %v6491_v50 = vld [vmem:[#allocation2 + $0x14] ss:$8 sps:$4 sm:$0xff]   ;;  %v1112_v25 = vrot.slane %v860_v14, 1  ;;  %v1004_v27 = vshrl.u32 %v6111_v55, 16  ;;  %v995_v33 = vor.u32 %v993_v34, %v992_v30 }
 0x1df   :  { %1766 = vst.msk [vmem:[#allocation2 + $0x30] sm:$0xff] %vm5820_vm2, %v4822_v57  ;;  %1767 = vst.msk [vmem:[#allocation2 + $0x38] sm:$0xff] %vm5820_vm2, %v4823_v10  ;;  %v4864_v13 = vcombine.low %v1397_v31, %v1220_v4  ;;  %v4865_v17 = vcombine.high %v1397_v31, %v1220_v4  ;;  %v1268_v20 = vpop.permute.xlu0 %1267  ;;  %2612 = vmatmul.mubr.bf16.gmra.mxu1 %v4912_v12  ;;  %4958 = vmatprep.mubr.msk.bf16.mxu0 %vm1325_vm7, %v6491_v50  ;;  %v1090_v35 = vsel %vm6137_vm8, 0, %v981_v8  ;;  %v5421_v10 = vld [vmem:[#allocation6 + $0x30] sm:$0xff]  }
 0x1e0   :  { %v1337_v15 = vsel %vm1325_vm7, %v1069_v61, %v1268_v20  ;;  %4974 = vmatprep.mubr.msk.bf16.mxu1 %vm1325_vm7, %v5402_v54  ;;  %v999_v14 = vrot.slane %v997_v1, 7  ;;  %v1221_v7 = vsel %vm6142_vm9, %v1147_v40, 0  ;;  %2492 = vmatmul.mubr.bf16.vlgmr.msra.gmra.mxu0 %v6481_v59  ;;  %v1091_v6 = vsel %vm6137_vm8, 0, %v988_v24  ;;  %v5406_v24 = vld [vmem:[#allocation2 + $0x144] ss:$8 sps:$4 sm:$0xff]  }
 0x1e1   :  { %1808 = vst.msk [vmem:[#allocation2 + $0x1a0] sm:$0xff] %vm5820_vm2, %v4864_v13  ;;  %1809 = vst.msk [vmem:[#allocation2 + $0x1a8] sm:$0xff] %vm5820_vm2, %v4865_v17  ;;  %v4824_v36 = vcombine.low %v1337_v15, %v6321_v56  ;;  %v4825_v48 = vcombine.high %v1337_v15, %v6321_v56  ;;  %v1310_v61 = vpop.permute.xlu1 %1309  ;;  %v1222_v8 = vsel %vm6142_vm9, %v1149_v32, 0  ;;  %v1152_v57 = vrot.slane %v1000_v11, 1  ;;  %3205 = vmatpush1.bf16.msra.mxu0 %v5419_v21  ;;  %v5426_v15 = vld [vmem:[#allocation6 + $0x28] sm:$0xff]  }
 0x1e2   :  { %v1400_v0 = vsel %vm1325_vm7, %v1090_v35, %v1310_v61  ;;  %v6519_v56 = vld [vmem:[#allocation2 + $0x24] ss:$8 sps:$4 sm:$0xff]   ;;  %v1151_v12 = vor.u32 %v1150_v37, %v990_v39  ;;  %v1113_v54 = vor.u32 %v1112_v25, %v857_v44  ;;  %v1006_v31 = vrot.slane %v1004_v27, 7  ;;  %3206 = vmatprep.subr.bf16.mxu0 %v5705_v43 }
 0x1e3   :  { %1768 = vst.msk [vmem:[#allocation2 + $0x40] sm:$0xff] %vm5820_vm2, %v4824_v36  ;;  %1769 = vst.msk [vmem:[#allocation2 + $0x48] sm:$0xff] %vm5820_vm2, %v4825_v48  ;;  %v4866_v2 = vcombine.low %v1400_v0, %v1221_v7  ;;  %v4867_v49 = vcombine.high %v1400_v0, %v1221_v7  ;;  %v1270_v4 = vpop.permute.xlu0 %1269  ;;  %v1916_v38 = vld [vmem:[#allocation2 + $0x20] sm:$0xff]  ;;  %4959 = vmatprep.mubr.msk.bf16.mxu0 %vm1325_vm7, %v6519_v56  ;;  %v1917_v26 = vld [vmem:[#allocation2 + $0x28] sm:$0xff]  ;;  %v4914_v40 = vcombine.low %v1946_v3, %v1947_v58 }
 0x1e4   :  { %v1340_v34 = vsel %vm1325_vm7, %v1070_v19, %v1270_v4  ;;  %v6549_v53 = vor.u32 %v1000_v11, %v999_v14  ;;  %v1092_v30 = vsel %vm6137_vm8, 0, %v995_v33  ;;  %v1007_v13 = vshll.u32 %v6111_v55, 16  ;;  %v1948_v14 = vld [vmem:[#allocation2 + $0x140] sm:$0xff]  ;;  %v1949_v3 = vld [vmem:[#allocation2 + $0x148] sm:$0xff]  ;;  %v5434_v55 = vld [vmem:[#allocation6 + $0x18] sm:$0xff]  }
 0x1e5   :  { %1810 = vst.msk [vmem:[#allocation2 + $0x1b0] sm:$0xff] %vm5820_vm2, %v4866_v2  ;;  %1811 = vst.msk [vmem:[#allocation2 + $0x1b8] sm:$0xff] %vm5820_vm2, %v4867_v49  ;;  %v4826_v41 = vcombine.low %v1340_v34, %v6360_v42  ;;  %v4827_v19 = vcombine.high %v1340_v34, %v6360_v42  ;;  %v1312_v39 = vpop.permute.xlu1 %1311  ;;  %v864_v17 = vshrl.u32 %v6116_v47, 16  ;;  %v1153_v11 = vor.u32 %v1152_v57, %v997_v1 }
 0x1e6   :  { %v1403_v44 = vsel %vm1325_vm7, %v1091_v6, %v1312_v39  ;;  %v867_v21 = vshll.u32 %v6116_v47, 16  ;;  %3207 = vmatpush1.bf16.msra.mxu0 %v5421_v10  ;;  %v6569_v25 = vcombine.low %v1916_v38, %v1917_v26  ;;  %v6573_v36 = vsel %vm6142_vm9, %v1113_v54, 0  ;;  %v6585_v61 = vld [vmem:[#allocation2 + $0x34] ss:$8 sps:$4 sm:$0xff]  }
 0x1e7   :  { %1770 = vst.msk [vmem:[#allocation2 + $0x50] sm:$0xff] %vm5820_vm2, %v4826_v41  ;;  %1771 = vst.msk [vmem:[#allocation2 + $0x58] sm:$0xff] %vm5820_vm2, %v4827_v19  ;;  %v4868_v42 = vcombine.low %v1403_v44, %v1222_v8  ;;  %v4869_v20 = vcombine.high %v1403_v44, %v1222_v8  ;;  %v1272_v32 = vpop.permute.xlu0 %1271  ;;  %2620 = vmatmul.mubr.bf16.gmra.mxu1 %v4914_v40  ;;  %v1011_v9 = vshrl.u32 %v6118_v46, 16  ;;  %3208 = vmatprep.subr.bf16.mxu0 %v5705_v43  ;;  %v5427_v8 = vld [vmem:[#allocation6 + $0x20] sm:$0xff]   ;;  %v1918_v57 = vld [vmem:[#allocation2 + $0x30] sm:$0xff] }
 0x1e8   :  { %v1343_v37 = vsel %vm1325_vm7, %v1071_v29, %v1272_v32  ;;  %4975 = vmatprep.mubr.msk.bf16.mxu1 %vm1325_vm7, %v5406_v24  ;;  %v1223_v48 = vsel %vm6142_vm9, %v1151_v12, 0  ;;  %v1093_v35 = vsel %vm6137_vm8, 0, %v6549_v53  ;;  %2500 = vmatmul.mubr.bf16.gmra.mxu0 %v6569_v25  ;;  %v1154_v7 = vrot.slane %v1007_v13, 1  ;;  %v1919_v54 = vld [vmem:[#allocation2 + $0x38] sm:$0xff] }
 0x1e9   :  { %1812 = vst.msk [vmem:[#allocation2 + $0x1c0] sm:$0xff] %vm5820_vm2, %v4868_v42  ;;  %1813 = vst.msk [vmem:[#allocation2 + $0x1c8] sm:$0xff] %vm5820_vm2, %v4869_v20  ;;  %v4828_v16 = vcombine.low %v1343_v37, %v6425_v18  ;;  %v4829_v29 = vcombine.high %v1343_v37, %v6425_v18  ;;  %v1314_v1 = vpop.permute.xlu1 %1313  ;;  %v866_v18 = vrot.slane %v864_v17, 7  ;;  %v1014_v0 = vshll.u32 %v6118_v46, 16  ;;  %4960 = vmatprep.mubr.msk.bf16.mxu0 %vm1325_vm7, %v6585_v61  ;;  %v5411_v39 = vld [vmem:[#allocation2 + $0x154] ss:$8 sps:$4 sm:$0xff]  }
 0x1ea   :  { %v1406_v58 = vsel %vm1325_vm7, %v1092_v30, %v1314_v1  ;;  %v1009_v49 = vor.u32 %v1007_v13, %v1006_v31  ;;  %v1114_v4 = vrot.slane %v867_v21, 1  ;;  %3209 = vmatpush1.bf16.msra.mxu0 %v5426_v15  ;;  %v1224_v34 = vsel %vm6142_vm9, %v1153_v11, 0  ;;  %v1950_v20 = vld [vmem:[#allocation2 + $0x150] sm:$0xff] }
 0x1eb   :  { %1772 = vst.msk [vmem:[#allocation2 + $0x60] sm:$0xff] %vm5820_vm2, %v4828_v16  ;;  %1773 = vst.msk [vmem:[#allocation2 + $0x68] sm:$0xff] %vm5820_vm2, %v4829_v29  ;;  %v4870_v6 = vcombine.low %v1406_v58, %v1223_v48  ;;  %v4871_v33 = vcombine.high %v1406_v58, %v1223_v48  ;;  %v1274_v2 = vpop.permute.xlu0 %1273  ;;  %v1013_v38 = vrot.slane %v1011_v9, 7  ;;  %v1018_v12 = vshrl.u32 %v6124_v45, 16  ;;  %3210 = vmatprep.subr.bf16.mxu0 %v5705_v43  ;;  %v1951_v16 = vld [vmem:[#allocation2 + $0x158] sm:$0xff]  ;;  %v5436_v46 = vld [vmem:[#allocation6 + $0x10] sm:$0xff]  }
 0x1ec   :  { %v1346_v10 = vsel %vm1325_vm7, %v1072_v28, %v1274_v2  ;;  %v4916_v41 = vcombine.low %v1948_v14, %v1949_v3  ;;  %v1021_v19 = vshll.u32 %v6124_v45, 16  ;;  %v1155_v40 = vor.u32 %v1154_v7, %v1004_v27 }
 0x1ed   :  { %1814 = vst.msk [vmem:[#allocation2 + $0x1d0] sm:$0xff] %vm5820_vm2, %v4870_v6  ;;  %1815 = vst.msk [vmem:[#allocation2 + $0x1d8] sm:$0xff] %vm5820_vm2, %v4871_v33  ;;  %v4830_v52 = vcombine.low %v1346_v10, %v6437_v51  ;;  %v4831_v28 = vcombine.high %v1346_v10, %v6437_v51  ;;  %v1316_v31 = vpop.permute.xlu1 %1315  ;;  %v869_v53 = vor.u32 %v867_v21, %v866_v18  ;;  %v1156_v44 = vrot.slane %v1014_v0, 1  ;;  %v1921_v6 = vld [vmem:[#allocation2 + $0x48] sm:$0xff] }
 0x1ee   :  { %v1409_v26 = vsel %vm1325_vm7, %v1093_v35, %v1316_v31  ;;  %v1094_v13 = vsel %vm6137_vm8, 0, %v1009_v49  ;;  %v1115_v42 = vor.u32 %v1114_v4, %v864_v17  ;;  %3211 = vmatpush1.bf16.msra.mxu0 %v5427_v8  ;;  %v6636_v32 = vcombine.low %v1918_v57, %v1919_v54  ;;  %v6647_v17 = vld [vmem:[#allocation2 + $0x44] ss:$8 sps:$4 sm:$0xff]  }
 0x1ef   :  { %1774 = vst.msk [vmem:[#allocation2 + $0x70] sm:$0xff] %vm5820_vm2, %v4830_v52  ;;  %1775 = vst.msk [vmem:[#allocation2 + $0x78] sm:$0xff] %vm5820_vm2, %v4831_v28  ;;  %v4872_v24 = vcombine.low %v1409_v26, %v1224_v34  ;;  %v4873_v51 = vcombine.high %v1409_v26, %v1224_v34  ;;  %v1276_v30 = vpop.permute.xlu0 %1275  ;;  %2628 = vmatmul.mubr.bf16.gmra.mxu1 %v4916_v41  ;;  %v1016_v11 = vor.u32 %v1014_v0, %v1013_v38  ;;  %v6678_v34 = vld [vmem:[#allocation2 + $0x164] ss:$8 sps:$4 sm:$0xff]   ;;  %v6697_v26 = vld [vmem:[#allocation2 + $0x54] ss:$8 sps:$4 sm:$0xff]  }
 0x1f0   :  { %v1349_v27 = vsel %vm1325_vm7, %v1073_v60, %v1276_v30  ;;  %4976 = vmatprep.mubr.msk.bf16.mxu1 %vm1325_vm7, %v5411_v39  ;;  %v1020_v21 = vrot.slane %v1018_v12, 7  ;;  %3212 = vmatprep.subr.bf16.mxu0 %v5705_v43  ;;  %v1158_v15 = vrot.slane %v1021_v19, 1  ;;  %v1025_v37 = vshrl.u32 %v6128_v63, 16  ;;  %v5443_v31 = vld [vmem:[#allocation6 + $0x8] sm:$0xff]   ;;  %v1952_v41 = vld [vmem:[#allocation2 + $0x160] sm:$0xff] }
 0x1f1   :  { %1816 = vst.msk [vmem:[#allocation2 + $0x1e0] sm:$0xff] %vm5820_vm2, %v4872_v24  ;;  %1817 = vst.msk [vmem:[#allocation2 + $0x1e8] sm:$0xff] %vm5820_vm2, %v4873_v51  ;;  %v4832_v47 = vcombine.low %v1349_v27, %v6573_v36  ;;  %v4833_v62 = vcombine.high %v1349_v27, %v6573_v36  ;;  %v1318_v60 = vpop.permute.xlu1 %1317  ;;  %v1225_v29 = vsel %vm6142_vm9, %v1155_v40, 0  ;;  %2508 = vmatmul.mubr.bf16.gmra.mxu0 %v6636_v32  ;;  %v1028_v35 = vshll.u32 %v6128_v63, 16  ;;  %v1953_v40 = vld [vmem:[#allocation2 + $0x168] sm:$0xff] }
 0x1f2   :  { %v1412_v1 = vsel %vm1325_vm7, %v1094_v13, %v1318_v60  ;;  %v1157_v48 = vor.u32 %v1156_v44, %v1011_v9  ;;  %4961 = vmatprep.mubr.msk.bf16.mxu0 %vm1325_vm7, %v6647_v17  ;;  %v1074_v3 = vsel %vm6137_vm8, 0, %v869_v53  ;;  %3213 = vmatpush1.bf16.msra.mxu0 %v5434_v55  ;;  %v1920_v9 = vld [vmem:[#allocation2 + $0x40] sm:$0xff]  ;;  %v1205_v63 = vsel %vm6142_vm9, %v1115_v42, 0  ;;  %v1922_v42 = vld [vmem:[#allocation2 + $0x50] sm:$0xff]  ;;  %v1923_v55 = vld [vmem:[#allocation2 + $0x58] sm:$0xff] }
 0x1f3   :  { %1776 = vst.msk [vmem:[#allocation2 + $0x80] sm:$0xff] %vm5820_vm2, %v4832_v47  ;;  %1777 = vst.msk [vmem:[#allocation2 + $0x88] sm:$0xff] %vm5820_vm2, %v4833_v62  ;;  %v4874_v36 = vcombine.low %v1412_v1, %v1225_v29  ;;  %v4875_v14 = vcombine.high %v1412_v1, %v1225_v29  ;;  %v1278_v58 = vpop.permute.xlu0 %1277  ;;  %v1095_v18 = vsel %vm6137_vm8, 0, %v1016_v11  ;;  %v1023_v0 = vor.u32 %v1021_v19, %v1020_v21  ;;  %v5444_v13 = vld [vmem:[#allocation6] sm:$0xff]   ;;  %v6717_v62 = vld [vmem:[#allocation2 + $0x174] ss:$8 sps:$4 sm:$0xff]  }
 0x1f4   :  { %v1352_v7 = vsel %vm1325_vm7, %v1074_v3, %v1278_v58  ;;  %3214 = vmatprep.subr.bf16.mxu0 %v5705_v43  ;;  %v4918_v4 = vcombine.low %v1950_v20, %v1951_v16  ;;  %v1027_v8 = vrot.slane %v1025_v37, 7  ;;  %v1226_v57 = vsel %vm6142_vm9, %v1157_v48, 0  ;;  %v6729_v23 = vld [vmem:[#allocation2 + $0x64] ss:$8 sps:$4 sm:$0xff]   ;;  %v5453_v16 = vld [vmem:[#allocation6 + $0x50] sm:$0xff]  }
 0x1f5   :  { %1818 = vst.msk [vmem:[#allocation2 + $0x1f0] sm:$0xff] %vm5820_vm2, %v4874_v36  ;;  %1819 = vst.msk [vmem:[#allocation2 + $0x1f8] sm:$0xff] %vm5820_vm2, %v4875_v14  ;;  %v4834_v33 = vcombine.low %v1352_v7, %v1205_v63  ;;  %v4835_v2 = vcombine.high %v1352_v7, %v1205_v63  ;;  %v1320_v49 = vpop.permute.xlu1 %1319  ;;  %v1159_v38 = vor.u32 %v1158_v15, %v1018_v12  ;;  %v1160_v54 = vrot.slane %v1028_v35, 1  ;;  %v6735_v29 = vld [vmem:[#allocation2 + $0x170] ss:$8 sps:$4 sm:$0xff]   ;;  %v5459_v36 = vld [vmem:[#allocation6 + $0x40] sm:$0xff]  }
 0x1f6   :  { %v1415_v10 = vsel %vm1325_vm7, %v1095_v18, %v1320_v49  ;;  %3215 = vmatpush1.bf16.msra.mxu0 %v5436_v46  ;;  %v6688_v19 = vcombine.low %v1920_v9, %v1921_v6  ;;  %v1096_v12 = vsel %vm6137_vm8, 0, %v1023_v0  ;;  %v1030_v39 = vor.u32 %v1028_v35, %v1027_v8  ;;  %v6737_v1 = vld [vmem:[#allocation2 + $0x184] ss:$8 sps:$4 sm:$0xff]   ;;  %v6742_v48 = vld [vmem:[#allocation2 + $0x60] ss:$8 sps:$4 sm:$0xff]  }
 0x1f7   :  { %1778 = vst.msk [vmem:[#allocation2 + $0x90] sm:$0xff] %vm5820_vm2, %v4834_v33  ;;  %1779 = vst.msk [vmem:[#allocation2 + $0x98] sm:$0xff] %vm5820_vm2, %v4835_v2  ;;  %v4876_v52 = vcombine.low %v1415_v10, %v1226_v57  ;;  %v4877_v28 = vcombine.high %v1415_v10, %v1226_v57  ;;  %2636 = vmatmul.mubr.bf16.gmra.mxu1 %v4918_v4  ;;  %3216 = vmatprep.subr.bf16.mxu0 %v5705_v43  ;;  %v1227_v53 = vsel %vm6142_vm9, %v1159_v38, 0  ;;  %v6745_v35 = vld [vmem:[#allocation2 + $0x74] ss:$8 sps:$4 sm:$0xff]  }
 0x1f8   :  { %4977 = vmatprep.mubr.msk.bf16.mxu1 %vm1325_vm7, %v6678_v34  ;;  %v1161_v24 = vor.u32 %v1160_v54, %v1025_v37  ;;  %v1097_v27 = vsel %vm6137_vm8, 0, %v1030_v39  ;;  %v6712_v11 = vcombine.low %v1952_v41, %v1953_v40  ;;  %v5451_v37 = vld [vmem:[#allocation6 + $0x58] sm:$0xff]   ;;  %v6722_v22 = vcombine.low %v1922_v42, %v1923_v55  ;;  %v6751_v14 = vld [vmem:[#allocation2 + $0x180] ss:$8 sps:$4 sm:$0xff]   ;;  %v6767_v9 = vld [vmem:[#allocation2 + $0x1a4] ss:$8 sps:$4 sm:$0xff]  }
 0x1f9   :  { %1820 = vst.msk [vmem:[#allocation2 + $0x200] sm:$0xff] %vm5820_vm2, %v4876_v52  ;;  %1821 = vst.msk [vmem:[#allocation2 + $0x208] sm:$0xff] %vm5820_vm2, %v4877_v28  ;;  %v1322_v45 = vpop.permute.xlu1 %1321  ;;  %2516 = vmatmul.mubr.bf16.gmra.mxu0 %v6688_v19  ;;  %v6753_v3 = vld [vmem:[#allocation2 + $0x194] ss:$8 sps:$4 sm:$0xff]   ;;  %v6758_v58 = vld [vmem:[#allocation2 + $0x70] ss:$8 sps:$4 sm:$0xff]  }
 0x1fa   :  { %v1418_v44 = vsel %vm1325_vm7, %v1096_v12, %v1322_v45  ;;  %4962 = vmatprep.mubr.msk.bf16.mxu0 %vm1325_vm7, %v6697_v26  ;;  %3217 = vmatpush1.bf16.msra.mxu0 %v5443_v31  ;;  %v1228_v21 = vsel %vm6142_vm9, %v1161_v24, 0  ;;  %v6760_v46 = vld [vmem:[#allocation2 + $0x84] ss:$8 sps:$4 sm:$0xff]   ;;  %v6772_v63 = vld [vmem:[#allocation2 + $0x80] ss:$8 sps:$4 sm:$0xff]  }
 0x1fb   :  { %v4878_v51 = vcombine.low %v1418_v44, %v1227_v53  ;;  %v4879_v30 = vcombine.high %v1418_v44, %v1227_v53  ;;  %3218 = vmatprep.subr.bf16.mxu0 %v5705_v43  ;;  %v6779_v18 = vld [vmem:[#allocation2 + $0x1a0] ss:$8 sps:$4 sm:$0xff]   ;;  %v6781_v0 = vld [vmem:[#allocation2 + $0x1b4] ss:$8 sps:$4 sm:$0xff]   ;;  %v5465_v6 = vld [vmem:[#allocation2 + $0x4] ss:$8 sps:$4 sm:$0xff]  }
 0x1fc   :  { %v6790_v2 = vld [vmem:[#allocation2 + $0x1b0] ss:$8 sps:$4 sm:$0xff]   ;;  %v6792_v49 = vld [vmem:[#allocation2 + $0x1c4] ss:$8 sps:$4 sm:$0xff]   ;;  %v5463_v4 = vld [vmem:[#allocation2] ss:$8 sps:$4 sm:$0xff]  }
 0x1fd   :  { %1822 = vst.msk [vmem:[#allocation2 + $0x210] sm:$0xff] %vm5820_vm2, %v4878_v51  ;;  %1823 = vst.msk [vmem:[#allocation2 + $0x218] sm:$0xff] %vm5820_vm2, %v4879_v30  ;;  %v1324_v20 = vpop.permute.xlu1 %1323  ;;  %v6799_v8 = vld [vmem:[#allocation2 + $0x1c0] ss:$8 sps:$4 sm:$0xff]   ;;  %v6801_v57 = vld [vmem:[#allocation2 + $0x1d4] ss:$8 sps:$4 sm:$0xff]  }
 0x1fe   :  { %v1421_v47 = vsel %vm1325_vm7, %v1097_v27, %v1324_v20  ;;  %3219 = vmatpush1.bf16.msra.mxu0 %v5444_v13  ;;  %v6774_v7 = vld [vmem:[#allocation2 + $0x94] ss:$8 sps:$4 sm:$0xff]   ;;  %v6786_v33 = vld [vmem:[#allocation2 + $0x90] ss:$8 sps:$4 sm:$0xff]   ;;  %v6811_v38 = vld [vmem:[#allocation2 + $0x1e4] ss:$8 sps:$4 sm:$0xff]  }
 0x1ff   :  { %v4880_v60 = vcombine.low %v1421_v47, %v1228_v21  ;;  %v4881_v15 = vcombine.high %v1421_v47, %v1228_v21  ;;  %2644 = vmatmul.mubr.bf16.gmra.mxu1 %v6712_v11  ;;  %3228 = vmatprep.subr.bf16.mxu0 %v5705_v43  ;;  %v6809_v10 = vld [vmem:[#allocation2 + $0x1d0] ss:$8 sps:$4 sm:$0xff]   ;;  %v5489_v40 = vld [vmem:[#allocation2 + $0xa4] ss:$8 sps:$4 sm:$0xff]   ;;  %v5492_v24 = vld [vmem:[#allocation2 + $0xb4] ss:$8 sps:$4 sm:$0xff]  }
 0x200   :  { %4978 = vmatprep.mubr.msk.bf16.mxu1 %vm1325_vm7, %v6717_v62  ;;  %v6829_v54 = vld [vmem:[#allocation2 + $0x1f0] ss:$8 sps:$4 sm:$0xff]   ;;  %v6831_v52 = vld [vmem:[#allocation2 + $0x204] ss:$8 sps:$4 sm:$0xff]   ;;  %v6839_v28 = vld [vmem:[#allocation2 + $0x200] ss:$8 sps:$4 sm:$0xff]  }
 0x201   :  { %1824 = vst.msk [vmem:[#allocation2 + $0x220] sm:$0xff] %vm5820_vm2, %v4880_v60  ;;  %1825 = vst.msk [vmem:[#allocation2 + $0x228] sm:$0xff] %vm5820_vm2, %v4881_v15  ;;  %2524 = vmatmul.mubr.bf16.gmra.mxu0 %v6722_v22  ;;  %v6903_v20 = vld [vmem:[#allocation2 + $0xc0] ss:$8 sps:$4 sm:$0xff]   ;;  %v6905_v47 = vld [vmem:[#allocation2 + $0xd4] ss:$8 sps:$4 sm:$0xff]  }
 0x202   :  { %4963 = vmatprep.mubr.msk.bf16.mxu0 %vm1325_vm7, %v6729_v23  ;;  %3229 = vmatpush2.bf16.msra.mxu0 %v5451_v37 }
 0x203   :  { %3230 = vmatprep.subr.bf16.mxu0 %v5705_v43 }
 0x204   :  { %v6841_v31 = vld [vmem:[#allocation2 + $0x214] ss:$8 sps:$4 sm:$0xff]   ;;  %v6849_v41 = vld [vmem:[#allocation2 + $0x210] ss:$8 sps:$4 sm:$0xff]  }
 0x206   :  { %3231 = vmatpush2.bf16.msra.mxu0 %v5453_v16  ;;  %v6919_v16 = vld [vmem:[#allocation2 + $0xe4] ss:$8 sps:$4 sm:$0xff]  }
 0x207   :  { %2652 = vmatmul.mubr.bf16.gmra.mxu1 %v6735_v29  ;;  %3232 = vmatprep.subr.bf16.mxu0 %v5705_v43 }
 0x208   :  { %4979 = vmatprep.mubr.msk.bf16.mxu1 %vm1325_vm7, %v6737_v1  ;;  %v5485_v45 = vld [vmem:[#allocation2 + $0x224] ss:$8 sps:$4 sm:$0xff]   ;;  %v5488_v12 = vld [vmem:[#allocation2 + $0x220] ss:$8 sps:$4 sm:$0xff]  }
 0x209   :  { %2532 = vmatmul.mubr.bf16.gmra.mxu0 %v6742_v48 }
 0x20a   :  { %4964 = vmatprep.mubr.msk.bf16.mxu0 %vm1325_vm7, %v6745_v35  ;;  %3233 = vmatpush2.bf16.msra.mxu0 %v5458_v5 }
 0x20b   :  { %3234 = vmatprep.subr.bf16.mxu0 %v5705_v43  ;;  %v6765_v43 = vld [vmem:[#allocation2 + $0x190] ss:$8 sps:$4 sm:$0xff]  }
 0x20e   :  { %3235 = vmatpush2.bf16.msra.mxu0 %v5459_v36  ;;  %v6931_v36 = vld [vmem:[#allocation2 + $0xe0] ss:$8 sps:$4 sm:$0xff]  }
 0x20f   :  { %2660 = vmatmul.mubr.bf16.gmra.mxu1 %v6751_v14 }
 0x210   :  { %4980 = vmatprep.mubr.msk.bf16.mxu1 %vm1325_vm7, %v6753_v3 }
 0x211   :  { %2540 = vmatmul.mubr.bf16.gmra.mxu0 %v6758_v58 }
 0x212   :  { %4965 = vmatprep.mubr.msk.bf16.mxu0 %vm1325_vm7, %v6760_v46 }
 0x217   :  { %2668 = vmatmul.mubr.bf16.gmra.mxu1 %v6765_v43 }
 0x218   :  { %4981 = vmatprep.mubr.msk.bf16.mxu1 %vm1325_vm7, %v6767_v9 }
 0x219   :  { %2548 = vmatmul.mubr.bf16.gmra.mxu0 %v6772_v63 }
 0x21a   :  { %4966 = vmatprep.mubr.msk.bf16.mxu0 %vm1325_vm7, %v6774_v7 }
 0x21f   :  { %2676 = vmatmul.mubr.bf16.gmra.mxu1 %v6779_v18 }
 0x220   :  { %4982 = vmatprep.mubr.msk.bf16.mxu1 %vm1325_vm7, %v6781_v0 }
 0x221   :  { %2556 = vmatmul.mubr.bf16.gmra.mxu0 %v6786_v33 }
 0x222   :  { %5066 = vmatprep.mubr.msk.bf16.mxu0 %vm1325_vm7, %v5465_v6 }
 0x227   :  { %2684 = vmatmul.mubr.bf16.gmra.mxu1 %v6790_v2 }
 0x228   :  { %4983 = vmatprep.mubr.msk.bf16.mxu1 %vm1325_vm7, %v6792_v49 }
 0x229   :  { %3237 = vmatmul.mubr.bf16.vlgmr.msra.gmra.mxu0 %v5463_v4 }
 0x22a   :  { %5067 = vmatprep.mubr.msk.bf16.mxu0 %vm1325_vm7, %v6491_v50  ;;  %v6819_v50 = vld [vmem:[#allocation2 + $0x1e0] ss:$8 sps:$4 sm:$0xff]  }
 0x22f   :  { %2692 = vmatmul.mubr.bf16.gmra.mxu1 %v6799_v8 }
 0x230   :  { %4984 = vmatprep.mubr.msk.bf16.mxu1 %vm1325_vm7, %v6801_v57 }
 0x231   :  { %3245 = vmatmul.mubr.bf16.gmra.mxu0 %v6481_v59  ;;  %v6821_v59 = vld [vmem:[#allocation2 + $0x1f4] ss:$8 sps:$4 sm:$0xff]  }
 0x232   :  { %5068 = vmatprep.mubr.msk.bf16.mxu0 %vm1325_vm7, %v6519_v56 }
 0x237   :  { %2700 = vmatmul.mubr.bf16.gmra.mxu1 %v6809_v10 }
 0x238   :  { %4985 = vmatprep.mubr.msk.bf16.mxu1 %vm1325_vm7, %v6811_v38 }
 0x239   :  { %3253 = vmatmul.mubr.bf16.gmra.mxu0 %v6569_v25 }
 0x23a   :  { %5069 = vmatprep.mubr.msk.bf16.mxu0 %vm1325_vm7, %v6585_v61 }
 0x23f   :  { %2708 = vmatmul.mubr.bf16.gmra.mxu1 %v6819_v50 }
 0x240   :  { %4986 = vmatprep.mubr.msk.bf16.mxu1 %vm1325_vm7, %v6821_v59 }
 0x241   :  { %3261 = vmatmul.mubr.bf16.gmra.mxu0 %v6636_v32 }
 0x242   :  { %5070 = vmatprep.mubr.msk.bf16.mxu0 %vm1325_vm7, %v6647_v17 }
 0x247   :  { %2716 = vmatmul.mubr.bf16.gmra.mxu1 %v6829_v54 }
 0x248   :  { %4987 = vmatprep.mubr.msk.bf16.mxu1 %vm1325_vm7, %v6831_v52 }
 0x249   :  { %3269 = vmatmul.mubr.bf16.gmra.mxu0 %v6688_v19 }
 0x24a   :  { %5071 = vmatprep.mubr.msk.bf16.mxu0 %vm1325_vm7, %v6697_v26 }
 0x24f   :  { %2724 = vmatmul.mubr.bf16.gmra.mxu1 %v6839_v28 }
 0x250   :  { %4988 = vmatprep.mubr.msk.bf16.mxu1 %vm1325_vm7, %v6841_v31 }
 0x251   :  { %3277 = vmatmul.mubr.bf16.gmra.mxu0 %v6722_v22 }
 0x252   :  { %5072 = vmatprep.mubr.msk.bf16.mxu0 %vm1325_vm7, %v6729_v23 }
 0x257   :  { %2732 = vmatmul.mubr.bf16.gmra.mxu1 %v6849_v41 }
 0x258   :  { %4989 = vmatprep.mubr.msk.bf16.mxu1 %vm1325_vm7, %v5485_v45 }
 0x259   :  { %3285 = vmatmul.mubr.bf16.gmra.mxu0 %v6742_v48 }
 0x25a   :  { %5073 = vmatprep.mubr.msk.bf16.mxu0 %vm1325_vm7, %v6745_v35 }
 0x25f   :  { %2740 = vmatmul.mubr.bf16.gmra.mxu1 %v5488_v12 }
 0x260   :  { %5174 = vmatprep.mubr.msk.bf16.mxu1 %vm1325_vm7, %v6519_v56 }
 0x261   :  { %3293 = vmatmul.mubr.bf16.gmra.mxu0 %v6758_v58 }
 0x262   :  { %5074 = vmatprep.mubr.msk.bf16.mxu0 %vm1325_vm7, %v6760_v46 }
 0x267   :  { %4072 = vmatmul.mubr.bf16.vlgmr.msra.gmra.mxu1 %v6569_v25 }
 0x268   :  { %5175 = vmatprep.mubr.msk.bf16.mxu1 %vm1325_vm7, %v6585_v61 }
 0x269   :  { %3301 = vmatmul.mubr.bf16.gmra.mxu0 %v6772_v63 }
 0x26a   :  { %5075 = vmatprep.mubr.msk.bf16.mxu0 %vm1325_vm7, %v6774_v7 }
 0x26c   :  { %v6867_v39 = vpop.f32.mrf.mxu1 }
 0x26e   :  { %v2567_v56 = vpop.f32.mrf.mxu1 }
 0x26f   :  { %4080 = vmatmul.mubr.bf16.gmra.mxu1 %v6636_v32  ;;  %v5491_v32 = vld [vmem:[#allocation2 + $0xa0] ss:$8 sps:$4 sm:$0xff]  }
 0x270   :  { %5176 = vmatprep.mubr.msk.bf16.mxu1 %vm1325_vm7, %v6647_v17  ;;  %v6872_v53 = vpop.f32.mrf.mxu1 }
 0x271   :  { %3309 = vmatmul.mubr.bf16.gmra.mxu0 %v6786_v33 }
 0x272   :  { %5076 = vmatprep.mubr.msk.bf16.mxu0 %vm1325_vm7, %v5489_v40  ;;  %v2570_v25 = vpop.f32.mrf.mxu1 }
 0x277   :  { %v6876_v61 = vpop.f32.mrf.mxu1  ;;  %4088 = vmatmul.mubr.bf16.gmra.mxu1 %v6688_v19  ;;  %v6889_v19 = vld [vmem:[#allocation2 + $0xb0] ss:$8 sps:$4 sm:$0xff]  }
 0x278   :  { %5177 = vmatprep.mubr.msk.bf16.mxu1 %vm1325_vm7, %v6697_v26  ;;  %v6891_v26 = vld [vmem:[#allocation2 + $0xc4] ss:$8 sps:$4 sm:$0xff]  }
 0x279   :  { %v2575_v44 = vpop.f32.mrf.mxu1  ;;  %3317 = vmatmul.mubr.bf16.gmra.mxu0 %v5491_v32 }
 0x27a   :  { %5077 = vmatprep.mubr.msk.bf16.mxu0 %vm1325_vm7, %v5492_v24 }
 0x27b   :  { %v6882_v17 = vpop.f32.mrf.mxu1 }
 0x27d   :  { %v2578_v51 = vpop.f32.mrf.mxu1 }
 0x27f   :  { %v6884_v30 = vpop.f32.mrf.mxu1  ;;  %4096 = vmatmul.mubr.bf16.gmra.mxu1 %v6722_v22  ;;  %v6917_v22 = vld [vmem:[#allocation2 + $0xd0] ss:$8 sps:$4 sm:$0xff]  }
 0x280   :  { %5178 = vmatprep.mubr.msk.bf16.mxu1 %vm1325_vm7, %v6729_v23 }
 0x281   :  { %v2583_v13 = vpop.f32.mrf.mxu1  ;;  %3325 = vmatmul.mubr.bf16.gmra.mxu0 %v6889_v19 }
 0x282   :  { %5078 = vmatprep.mubr.msk.bf16.mxu0 %vm1325_vm7, %v6891_v26 }
 0x283   :  { %v6896_v42 = vpop.f32.mrf.mxu1 }
 0x285   :  { %v2586_v55 = vpop.f32.mrf.mxu1 }
 0x286   :  { %v5509_v55 = vld [vmem:[#allocation2 + $0x120] ss:$8 sps:$4 sm:$0xff]  }
 0x287   :  { %v6898_v27 = vpop.f32.mrf.mxu1  ;;  %4104 = vmatmul.mubr.bf16.gmra.mxu1 %v6742_v48 }
 0x288   :  { %5179 = vmatprep.mubr.msk.bf16.mxu1 %vm1325_vm7, %v6745_v35 }
 0x289   :  { %v2591_v21 = vpop.f32.mrf.mxu1  ;;  %3333 = vmatmul.mubr.bf16.gmra.mxu0 %v6903_v20 }
 0x28a   :  { %5079 = vmatprep.mubr.msk.bf16.mxu0 %vm1325_vm7, %v6905_v47 }
 0x28b   :  { %v6910_v60 = vpop.f32.mrf.mxu1 }
 0x28d   :  { %v2594_v15 = vpop.f32.mrf.mxu1 }
 0x28e   :  { %v5510_v15 = vld [vmem:[#allocation2 + $0x134] ss:$8 sps:$4 sm:$0xff]  }
 0x28f   :  { %v6912_v37 = vpop.f32.mrf.mxu1  ;;  %4112 = vmatmul.mubr.bf16.gmra.mxu1 %v6758_v58 }
 0x290   :  { %5180 = vmatprep.mubr.msk.bf16.mxu1 %vm1325_vm7, %v6760_v46  ;;  %v6933_v46 = vld [vmem:[#allocation2 + $0xf4] ss:$8 sps:$4 sm:$0xff]  }
 0x291   :  { %v2599_v23 = vpop.f32.mrf.mxu1  ;;  %3341 = vmatmul.mubr.bf16.gmra.mxu0 %v6917_v22 }
 0x292   :  { %5080 = vmatprep.mubr.msk.bf16.mxu0 %vm1325_vm7, %v6919_v16 }
 0x293   :  { %v6924_v5 = vpop.f32.mrf.mxu1 }
 0x295   :  { %v2602_v48 = vpop.f32.mrf.mxu1 }
 0x297   :  { %v6926_v35 = vpop.f32.mrf.mxu1  ;;  %4120 = vmatmul.mubr.bf16.gmra.mxu1 %v6772_v63  ;;  %v5507_v63 = vld [vmem:[#allocation2 + $0x124] ss:$8 sps:$4 sm:$0xff]  }
 0x298   :  { %5181 = vmatprep.mubr.msk.bf16.mxu1 %vm1325_vm7, %v6774_v7  ;;  %v6944_v7 = vld [vmem:[#allocation2 + $0xf0] ss:$8 sps:$4 sm:$0xff]  }
 0x299   :  { %v2607_v58 = vpop.f32.mrf.mxu1  ;;  %3349 = vmatmul.mubr.bf16.gmra.mxu0 %v6931_v36 }
 0x29a   :  { %5081 = vmatprep.mubr.msk.bf16.mxu0 %vm1325_vm7, %v6933_v46 }
 0x29b   :  { %v6938_v6 = vpop.f32.mrf.mxu1 }
 0x29d   :  { %v2610_v4 = vpop.f32.mrf.mxu1 }
 0x29f   :  { %v6940_v45 = vpop.f32.mrf.mxu1  ;;  %4128 = vmatmul.mubr.bf16.gmra.mxu1 %v6786_v33 }
 0x2a0   :  { %5182 = vmatprep.mubr.msk.bf16.mxu1 %vm1325_vm7, %v5489_v40  ;;  %v6946_v56 = vpop.f32.mrf.mxu0 }
 0x2a1   :  { %v2615_v12 = vpop.f32.mrf.mxu1  ;;  %3357 = vmatmul.mubr.bf16.gmra.mxu0 %v6944_v7 }
 0x2a2   :  { %5082 = vmatprep.mubr.msk.bf16.mxu0 %vm1325_vm7, %v5507_v63  ;;  %v2495_v44 = vpop.f32.mrf.mxu0 }
 0x2a3   :  { %v6949_v25 = vpop.f32.mrf.mxu1 }
 0x2a4   :  { %7561 = vst [vmem:[#allocation12_spill] sm:$0xff] %v6949_v25  ;;  %v6952_v13 = vpop.f32.mrf.mxu0 }
 0x2a5   :  { %v2618_v51 = vpop.f32.mrf.mxu1 }
 0x2a6   :  { %v2498_v40 = vpop.f32.mrf.mxu0  ;;  %v6969_v51 = vld [vmem:[#allocation2 + $0x144] ss:$8 sps:$4 sm:$0xff]  }
 0x2a7   :  { %v6954_v33 = vpop.f32.mrf.mxu1  ;;  %4136 = vmatmul.mubr.bf16.gmra.mxu1 %v5491_v32 }
 0x2a8   :  { %7562 = vst [vmem:[#allocation13_spill] sm:$0xff] %v6954_v33  ;;  %5183 = vmatprep.mubr.msk.bf16.mxu1 %vm1325_vm7, %v5492_v24  ;;  %v6957_v23 = vpop.f32.mrf.mxu0  ;;  %v5512_v24 = vld [vmem:[#allocation2 + $0x130] ss:$8 sps:$4 sm:$0xff]  }
 0x2a9   :  { %v2623_v21 = vpop.f32.mrf.mxu1  ;;  %3365 = vmatmul.mubr.bf16.gmra.mxu0 %v5509_v55 }
 0x2aa   :  { %5083 = vmatprep.mubr.msk.bf16.mxu0 %vm1325_vm7, %v5510_v15  ;;  %v2503_v58 = vpop.f32.mrf.mxu0 }
 0x2ab   :  { %v6960_v48 = vpop.f32.mrf.mxu1 }
 0x2ac   :  { %7563 = vst [vmem:[#allocation14_spill] sm:$0xff] %v6960_v48  ;;  %v6962_v63 = vpop.f32.mrf.mxu0 }
 0x2ad   :  { %v2626_v4 = vpop.f32.mrf.mxu1 }
 0x2ae   :  { %v2506_v32 = vpop.f32.mrf.mxu0  ;;  %v6984_v4 = vld [vmem:[#allocation2 + $0x140] ss:$8 sps:$4 sm:$0xff]  }
 0x2af   :  { %v6964_v12 = vpop.f32.mrf.mxu1  ;;  %4144 = vmatmul.mubr.bf16.gmra.mxu1 %v6889_v19 }
 0x2b0   :  { %7564 = vst [vmem:[#allocation15_spill] sm:$0xff] %v6964_v12  ;;  %5184 = vmatprep.mubr.msk.bf16.mxu1 %vm1325_vm7, %v6891_v26 }
 0x2b1   :  { %v2631_v44 = vpop.f32.mrf.mxu1  ;;  %v6971_v55 = vpop.f32.mrf.mxu0  ;;  %3373 = vmatmul.mubr.bf16.gmra.mxu0 %v5512_v24  ;;  %v6986_v24 = vld [vmem:[#allocation2 + $0x154] ss:$8 sps:$4 sm:$0xff]  }
 0x2b2   :  { %5084 = vmatprep.mubr.msk.bf16.mxu0 %vm1325_vm7, %v6969_v51 }
 0x2b3   :  { %v6975_v40 = vpop.f32.mrf.mxu1  ;;  %v2511_v21 = vpop.f32.mrf.mxu0 }
 0x2b4   :  { %7565 = vst [vmem:[#allocation16_spill] sm:$0xff] %v6975_v40 }
 0x2b5   :  { %v2634_v15 = vpop.f32.mrf.mxu1  ;;  %v6977_v58 = vpop.f32.mrf.mxu0 }
 0x2b7   :  { %v6979_v19 = vpop.f32.mrf.mxu1  ;;  %4152 = vmatmul.mubr.bf16.gmra.mxu1 %v6903_v20  ;;  %v2514_v26 = vpop.f32.mrf.mxu0 }
 0x2b8   :  { %7566 = vst [vmem:[#allocation17_spill] sm:$0xff] %v6979_v19  ;;  %5185 = vmatprep.mubr.msk.bf16.mxu1 %vm1325_vm7, %v6905_v47 }
 0x2b9   :  { %v2639_v32 = vpop.f32.mrf.mxu1  ;;  %v6988_v44 = vpop.f32.mrf.mxu0  ;;  %3381 = vmatmul.mubr.bf16.gmra.mxu0 %v6984_v4 }
 0x2ba   :  { %5085 = vmatprep.mubr.msk.bf16.mxu0 %vm1325_vm7, %v6986_v24  ;;  %v7002_v32 = vld [vmem:[#allocation2 + $0x150] ss:$8 sps:$4 sm:$0xff]  }
 0x2bb   :  { %v6993_v21 = vpop.f32.mrf.mxu1  ;;  %v2519_v15 = vpop.f32.mrf.mxu0 }
 0x2bc   :  { %7567 = vst [vmem:[#allocation18_spill] sm:$0xff] %v6993_v21 }
 0x2bd   :  { %v2642_v20 = vpop.f32.mrf.mxu1  ;;  %v6995_v26 = vpop.f32.mrf.mxu0 }
 0x2bf   :  { %v6997_v19 = vpop.f32.mrf.mxu1  ;;  %4160 = vmatmul.mubr.bf16.gmra.mxu1 %v6917_v22  ;;  %v2522_v47 = vpop.f32.mrf.mxu0 }
 0x2c0   :  { %7568 = vst [vmem:[#allocation19_spill] sm:$0xff] %v6997_v19  ;;  %5186 = vmatprep.mubr.msk.bf16.mxu1 %vm1325_vm7, %v6919_v16 }
 0x2c1   :  { %v2647_v40 = vpop.f32.mrf.mxu1  ;;  %v7004_v12 = vpop.f32.mrf.mxu0  ;;  %3389 = vmatmul.mubr.bf16.gmra.mxu0 %v7002_v32 }
 0x2c2   :  { %5086 = vmatprep.mubr.msk.bf16.mxu0 %vm1325_vm7, %v6678_v34 }
 0x2c3   :  { %v7009_v15 = vpop.f32.mrf.mxu1  ;;  %v2527_v20 = vpop.f32.mrf.mxu0 }
 0x2c4   :  { %7569 = vst [vmem:[#allocation20_spill] sm:$0xff] %v7009_v15 }
 0x2c5   :  { %v2650_v19 = vpop.f32.mrf.mxu1  ;;  %v7011_v21 = vpop.f32.mrf.mxu0 }
 0x2c7   :  { %v7013_v22 = vpop.f32.mrf.mxu1  ;;  %4168 = vmatmul.mubr.bf16.gmra.mxu1 %v6931_v36  ;;  %v2530_v16 = vpop.f32.mrf.mxu0 }
 0x2c8   :  { %7570 = vst [vmem:[#allocation21_spill] sm:$0xff] %v7013_v22  ;;  %5187 = vmatprep.mubr.msk.bf16.mxu1 %vm1325_vm7, %v6933_v46  ;;  %v5519_v22 = vld [vmem:[#allocation2 + $0x104] ss:$8 sps:$4 sm:$0xff]  }
 0x2c9   :  { %v2655_v40 = vpop.f32.mrf.mxu1  ;;  %v7018_v47 = vpop.f32.mrf.mxu0  ;;  %3397 = vmatmul.mubr.bf16.gmra.mxu0 %v6712_v11 }
 0x2ca   :  { %5087 = vmatprep.mubr.msk.bf16.mxu0 %vm1325_vm7, %v6717_v62 }
 0x2cb   :  { %v7023_v34 = vpop.f32.mrf.mxu1  ;;  %v2535_v19 = vpop.f32.mrf.mxu0 }
 0x2cc   :  { %7571 = vst [vmem:[#allocation22_spill] sm:$0xff] %v7023_v34  ;;  %v5522_v19 = vld [vmem:[#allocation2 + $0x114] ss:$8 sps:$4 sm:$0xff]   ;;  %v5521_v34 = vld [vmem:[#allocation2 + $0x100] ss:$8 sps:$4 sm:$0xff]  }
 0x2cd   :  { %v2658_v20 = vpop.f32.mrf.mxu1  ;;  %v7025_v15 = vpop.f32.mrf.mxu0 }
 0x2cf   :  { %v7027_v36 = vpop.f32.mrf.mxu1  ;;  %4176 = vmatmul.mubr.bf16.gmra.mxu1 %v6944_v7  ;;  %v2538_v46 = vpop.f32.mrf.mxu0 }
 0x2d0   :  { %7572 = vst [vmem:[#allocation23_spill] sm:$0xff] %v7027_v36  ;;  %5188 = vmatprep.mubr.msk.bf16.mxu1 %vm1325_vm7, %v5519_v22 }
 0x2d1   :  { %v2663_v16 = vpop.f32.mrf.mxu1  ;;  %v7031_v40 = vpop.f32.mrf.mxu0  ;;  %3405 = vmatmul.mubr.bf16.gmra.mxu0 %v6735_v29 }
 0x2d2   :  { %5088 = vmatprep.mubr.msk.bf16.mxu0 %vm1325_vm7, %v6737_v1  ;;  %v5524_v1 = vld [vmem:[#allocation2 + $0x110] ss:$8 sps:$4 sm:$0xff]  }
 0x2d3   :  { %v7036_v11 = vpop.f32.mrf.mxu1  ;;  %v2543_v62 = vpop.f32.mrf.mxu0 }
 0x2d4   :  { %7573 = vst [vmem:[#allocation24_spill] sm:$0xff] %v7036_v11 }
 0x2d5   :  { %v2666_v20 = vpop.f32.mrf.mxu1  ;;  %v7038_v36 = vpop.f32.mrf.mxu0 }
 0x2d7   :  { %v7040_v7 = vpop.f32.mrf.mxu1  ;;  %4184 = vmatmul.mubr.bf16.gmra.mxu1 %v5521_v34  ;;  %v2546_v22 = vpop.f32.mrf.mxu0 }
 0x2d8   :  { %7574 = vst [vmem:[#allocation25_spill] sm:$0xff] %v7040_v7  ;;  %5189 = vmatprep.mubr.msk.bf16.mxu1 %vm1325_vm7, %v5522_v19 }
 0x2d9   :  { %v2671_v46 = vpop.f32.mrf.mxu1  ;;  %v7043_v16 = vpop.f32.mrf.mxu0  ;;  %3413 = vmatmul.mubr.bf16.gmra.mxu0 %v6751_v14 }
 0x2da   :  { %5089 = vmatprep.mubr.msk.bf16.mxu0 %vm1325_vm7, %v6753_v3 }
 0x2db   :  { %v7048_v29 = vpop.f32.mrf.mxu1  ;;  %v2551_v62 = vpop.f32.mrf.mxu0 }
 0x2dc   :  { %7575 = vst [vmem:[#allocation26_spill] sm:$0xff] %v7048_v29 }
 0x2dd   :  { %v2674_v20 = vpop.f32.mrf.mxu1  ;;  %v7050_v11 = vpop.f32.mrf.mxu0 }
 0x2df   :  { %v7052_v7 = vpop.f32.mrf.mxu1  ;;  %4192 = vmatmul.mubr.bf16.gmra.mxu1 %v5524_v1  ;;  %v2554_v34 = vpop.f32.mrf.mxu0 }
 0x2e0   :  { %7576 = vst [vmem:[#allocation27_spill] sm:$0xff] %v7052_v7  ;;  %5190 = vmatprep.mubr.msk.bf16.mxu1 %vm1325_vm7, %v6969_v51 }
 0x2e1   :  { %v2679_v19 = vpop.f32.mrf.mxu1  ;;  %v7056_v22 = vpop.f32.mrf.mxu0  ;;  %3421 = vmatmul.mubr.bf16.gmra.mxu0 %v6765_v43 }
 0x2e2   :  { %5090 = vmatprep.mubr.msk.bf16.mxu0 %vm1325_vm7, %v6767_v9 }
 0x2e3   :  { %v7061_v14 = vpop.f32.mrf.mxu1  ;;  %v2559_v3 = vpop.f32.mrf.mxu0 }
 0x2e4   :  { %7577 = vst [vmem:[#allocation28_spill] sm:$0xff] %v7061_v14 }
 0x2e5   :  { %v2682_v46 = vpop.f32.mrf.mxu1  ;;  %v7063_v62 = vpop.f32.mrf.mxu0 }
 0x2e6   :  { %v5525_v46 = vld [vmem:[#allocation2 + $0x164] ss:$8 sps:$4 sm:$0xff]  }
 0x2e7   :  { %v7065_v20 = vpop.f32.mrf.mxu1  ;;  %4200 = vmatmul.mubr.bf16.gmra.mxu1 %v6984_v4  ;;  %v2562_v1 = vpop.f32.mrf.mxu0 }
 0x2e8   :  { %7578 = vst [vmem:[#allocation29_spill] sm:$0xff] %v7065_v20  ;;  %5191 = vmatprep.mubr.msk.bf16.mxu1 %vm1325_vm7, %v6986_v24 }
 0x2e9   :  { %v2687_v51 = vpop.f32.mrf.mxu1  ;;  %v7070_v34 = vpop.f32.mrf.mxu0  ;;  %3429 = vmatmul.mubr.bf16.gmra.mxu0 %v6779_v18 }
 0x2ea   :  { %5091 = vmatprep.mubr.msk.bf16.mxu0 %vm1325_vm7, %v6781_v0 }
 0x2eb   :  { %v7075_v43 = vpop.f32.mrf.mxu1  ;;  %v3240_v9 = vpop.f32.mrf.mxu0 }
 0x2ec   :  { %7579 = vst [vmem:[#allocation30_spill] sm:$0xff] %v7075_v43 }
 0x2ed   :  { %v2690_v19 = vpop.f32.mrf.mxu1  ;;  %v7077_v3 = vpop.f32.mrf.mxu0 }
 0x2ee   :  { %v5527_v19 = vld [vmem:[#allocation2 + $0x160] ss:$8 sps:$4 sm:$0xff]  }
 0x2ef   :  { %v7079_v4 = vpop.f32.mrf.mxu1  ;;  %4208 = vmatmul.mubr.bf16.gmra.mxu1 %v7002_v32  ;;  %v3243_v24 = vpop.f32.mrf.mxu0 }
 0x2f0   :  { %7580 = vst [vmem:[#allocation31_spill] sm:$0xff] %v7079_v4  ;;  %5192 = vmatprep.mubr.msk.bf16.mxu1 %vm1325_vm7, %v5525_v46  ;;  %v5528_v4 = vld [vmem:[#allocation2 + $0x174] ss:$8 sps:$4 sm:$0xff]  }
 0x2f1   :  { %v2695_v1 = vpop.f32.mrf.mxu1  ;;  %v7083_v51 = vpop.f32.mrf.mxu0  ;;  %3437 = vmatmul.mubr.bf16.gmra.mxu0 %v6790_v2 }
 0x2f2   :  { %5092 = vmatprep.mubr.msk.bf16.mxu0 %vm1325_vm7, %v6792_v49  ;;  %v3247_v14 = vadd.f32 %v7083_v51, %v6957_v23  ;;  %v5567_v23 = vld [vmem:[#allocation3] sm:$0xff] }
 0x2f3   :  { %v7088_v18 = vpop.f32.mrf.mxu1  ;;  %v3248_v0 = vpop.f32.mrf.mxu0 }
 0x2f4   :  { %7581 = vst [vmem:[#allocation32_spill] sm:$0xff] %v7088_v18 }
 0x2f5   :  { %v2698_v9 = vpop.f32.mrf.mxu1  ;;  %v7090_v43 = vpop.f32.mrf.mxu0 }
 0x2f6   :  { %v5530_v9 = vld [vmem:[#allocation2 + $0x170] ss:$8 sps:$4 sm:$0xff]  }
 0x2f7   :  { %v7092_v32 = vpop.f32.mrf.mxu1  ;;  %4216 = vmatmul.mubr.bf16.gmra.mxu1 %v5527_v19  ;;  %v3251_v46 = vpop.f32.mrf.mxu0 }
 0x2f8   :  { %7582 = vst [vmem:[#allocation33_spill] sm:$0xff] %v7092_v32  ;;  %5193 = vmatprep.mubr.msk.bf16.mxu1 %vm1325_vm7, %v5528_v4  ;;  %v5531_v32 = vld [vmem:[#allocation2 + $0x184] ss:$8 sps:$4 sm:$0xff]  }
 0x2f9   :  { %v2703_v24 = vpop.f32.mrf.mxu1  ;;  %v7095_v1 = vpop.f32.mrf.mxu0  ;;  %3445 = vmatmul.mubr.bf16.gmra.mxu0 %v6799_v8 }
 0x2fa   :  { %5093 = vmatprep.mubr.msk.bf16.mxu0 %vm1325_vm7, %v6801_v57 }
 0x2fb   :  { %v7100_v2 = vpop.f32.mrf.mxu1  ;;  %v3256_v49 = vpop.f32.mrf.mxu0 }
 0x2fc   :  { %7583 = vst [vmem:[#allocation34_spill] sm:$0xff] %v7100_v2 }
 0x2fd   :  { %v2706_v0 = vpop.f32.mrf.mxu1  ;;  %v7102_v18 = vpop.f32.mrf.mxu0 }
 0x2fe   :  { %v5533_v0 = vld [vmem:[#allocation2 + $0x180] ss:$8 sps:$4 sm:$0xff]  }
 0x2ff   :  { %v7104_v19 = vpop.f32.mrf.mxu1  ;;  %4224 = vmatmul.mubr.bf16.gmra.mxu1 %v5530_v9  ;;  %v3259_v4 = vpop.f32.mrf.mxu0 }
 0x300   :  { %7584 = vst [vmem:[#allocation35_spill] sm:$0xff] %v7104_v19  ;;  %5194 = vmatprep.mubr.msk.bf16.mxu1 %vm1325_vm7, %v5531_v32  ;;  %v5534_v19 = vld [vmem:[#allocation2 + $0x194] ss:$8 sps:$4 sm:$0xff]  }
 0x301   :  { %v2711_v46 = vpop.f32.mrf.mxu1  ;;  %v7107_v24 = vpop.f32.mrf.mxu0  ;;  %3453 = vmatmul.mubr.bf16.gmra.mxu0 %v6809_v10 }
 0x302   :  { %5094 = vmatprep.mubr.msk.bf16.mxu0 %vm1325_vm7, %v6811_v38 }
 0x303   :  { %v7112_v8 = vpop.f32.mrf.mxu1  ;;  %v3264_v57 = vpop.f32.mrf.mxu0 }
 0x304   :  { %7585 = vst [vmem:[#allocation36_spill] sm:$0xff] %v7112_v8 }
 0x305   :  { %v2714_v49 = vpop.f32.mrf.mxu1  ;;  %v7114_v2 = vpop.f32.mrf.mxu0 }
 0x306   :  { %v5536_v49 = vld [vmem:[#allocation2 + $0x190] ss:$8 sps:$4 sm:$0xff]  }
 0x307   :  { %v7116_v9 = vpop.f32.mrf.mxu1  ;;  %4232 = vmatmul.mubr.bf16.gmra.mxu1 %v5533_v0  ;;  %v3267_v32 = vpop.f32.mrf.mxu0 }
 0x308   :  { %7586 = vst [vmem:[#allocation37_spill] sm:$0xff] %v7116_v9  ;;  %5195 = vmatprep.mubr.msk.bf16.mxu1 %vm1325_vm7, %v5534_v19  ;;  %v5537_v9 = vld [vmem:[#allocation2 + $0x1a4] ss:$8 sps:$4 sm:$0xff]  }
 0x309   :  { %v2719_v4 = vpop.f32.mrf.mxu1  ;;  %v7119_v46 = vpop.f32.mrf.mxu0  ;;  %3461 = vmatmul.mubr.bf16.gmra.mxu0 %v6819_v50 }
 0x30a   :  { %5095 = vmatprep.mubr.msk.bf16.mxu0 %vm1325_vm7, %v6821_v59 }
 0x30b   :  { %v7124_v10 = vpop.f32.mrf.mxu1  ;;  %v3272_v38 = vpop.f32.mrf.mxu0 }
 0x30c   :  { %7587 = vst [vmem:[#allocation38_spill] sm:$0xff] %v7124_v10 }
 0x30d   :  { %v2722_v57 = vpop.f32.mrf.mxu1  ;;  %v7126_v8 = vpop.f32.mrf.mxu0 }
 0x30e   :  { %v5539_v57 = vld [vmem:[#allocation2 + $0x1a0] ss:$8 sps:$4 sm:$0xff]  }
 0x30f   :  { %v7128_v0 = vpop.f32.mrf.mxu1  ;;  %4240 = vmatmul.mubr.bf16.gmra.mxu1 %v5536_v49  ;;  %v3275_v19 = vpop.f32.mrf.mxu0 }
 0x310   :  { %7588 = vst [vmem:[#allocation39_spill] sm:$0xff] %v7128_v0  ;;  %5196 = vmatprep.mubr.msk.bf16.mxu1 %vm1325_vm7, %v5537_v9  ;;  %v5540_v0 = vld [vmem:[#allocation2 + $0x1b4] ss:$8 sps:$4 sm:$0xff]  }
 0x311   :  { %v2727_v32 = vpop.f32.mrf.mxu1  ;;  %v7131_v4 = vpop.f32.mrf.mxu0  ;;  %3469 = vmatmul.mubr.bf16.gmra.mxu0 %v6829_v54 }
 0x312   :  { %5096 = vmatprep.mubr.msk.bf16.mxu0 %vm1325_vm7, %v6831_v52 }
 0x313   :  { %v7136_v50 = vpop.f32.mrf.mxu1  ;;  %v3280_v59 = vpop.f32.mrf.mxu0 }
 0x314   :  { %7589 = vst [vmem:[#allocation40_spill] sm:$0xff] %v7136_v50 }
 0x315   :  { %v2730_v38 = vpop.f32.mrf.mxu1  ;;  %v7138_v10 = vpop.f32.mrf.mxu0 }
 0x316   :  { %v5542_v38 = vld [vmem:[#allocation2 + $0x1b0] ss:$8 sps:$4 sm:$0xff]  }
 0x317   :  { %v7140_v49 = vpop.f32.mrf.mxu1  ;;  %4248 = vmatmul.mubr.bf16.gmra.mxu1 %v5539_v57  ;;  %v3283_v9 = vpop.f32.mrf.mxu0 }
 0x318   :  { %7590 = vst [vmem:[#allocation41_spill] sm:$0xff] %v7140_v49  ;;  %5197 = vmatprep.mubr.msk.bf16.mxu1 %vm1325_vm7, %v5540_v0  ;;  %v5543_v49 = vld [vmem:[#allocation2 + $0x1c4] ss:$8 sps:$4 sm:$0xff]  }
 0x319   :  { %v2735_v19 = vpop.f32.mrf.mxu1  ;;  %v7143_v32 = vpop.f32.mrf.mxu0  ;;  %3477 = vmatmul.mubr.bf16.gmra.mxu0 %v6839_v28 }
 0x31a   :  { %5097 = vmatprep.mubr.msk.bf16.mxu0 %vm1325_vm7, %v6841_v31 }
 0x31b   :  { %v7148_v54 = vpop.f32.mrf.mxu1  ;;  %v3288_v52 = vpop.f32.mrf.mxu0 }
 0x31c   :  { %7591 = vst [vmem:[#allocation42_spill] sm:$0xff] %v7148_v54  ;;  %v3239_v54 = vadd.f32 %v7070_v34, %v6946_v56  ;;  %v3242_v34 = vadd.f32 %v7077_v3, %v6952_v13  ;;  %v5549_v13 = vld [vmem:[#allocation2 + $0x1e4] ss:$8 sps:$4 sm:$0xff]  }
 0x31d   :  { %v2738_v59 = vpop.f32.mrf.mxu1  ;;  %v7150_v50 = vpop.f32.mrf.mxu0 }
 0x31e   :  { %v5545_v59 = vld [vmem:[#allocation2 + $0x1c0] ss:$8 sps:$4 sm:$0xff]  }
 0x31f   :  { %v7152_v57 = vpop.f32.mrf.mxu1  ;;  %4256 = vmatmul.mubr.bf16.gmra.mxu1 %v5542_v38  ;;  %v3291_v0 = vpop.f32.mrf.mxu0 }
 0x320   :  { %7592 = vst [vmem:[#allocation43_spill] sm:$0xff] %v7152_v57  ;;  %5198 = vmatprep.mubr.msk.bf16.mxu1 %vm1325_vm7, %v5543_v49  ;;  %v5546_v57 = vld [vmem:[#allocation2 + $0x1d4] ss:$8 sps:$4 sm:$0xff]   ;;  %v7167_v49 = vld [vmem:[%s7552_s5] ss:$0 sm:$0xff] }
 0x321   :  { %v2743_v9 = vpop.f32.mrf.mxu1  ;;  %v7155_v19 = vpop.f32.mrf.mxu0  ;;  %3485 = vmatmul.mubr.bf16.gmra.mxu0 %v6849_v41 }
 0x322   :  { %v7173_v9 = vld [vmem:[%s7553_s6] ss:$0 sm:$0xff] }
 0x323   :  { %v7158_v28 = vpop.f32.mrf.mxu1  ;;  %v3296_v31 = vpop.f32.mrf.mxu0 }
 0x324   :  { %7593 = vst [vmem:[#allocation44_spill] sm:$0xff] %v7158_v28 }
 0x325   :  { %v2746_v52 = vpop.f32.mrf.mxu1  ;;  %v7162_v20 = vpop.f32.mrf.mxu0 }
 0x327   :  { %v4073_v38 = vpop.f32.mrf.mxu1  ;;  %4264 = vmatmul.mubr.bf16.gmra.mxu1 %v5545_v59  ;;  %v3299_v0 = vpop.f32.mrf.mxu0 }
 0x328   :  { %v4328_v41 = vadd.f32 %v4073_v38, %v3239_v54  ;;  %5199 = vmatprep.mubr.msk.bf16.mxu1 %vm1325_vm7, %v5546_v57  ;;  %v5548_v57 = vld [vmem:[#allocation2 + $0x1d0] ss:$8 sps:$4 sm:$0xff]  }
 0x329   :  { %v4075_v56 = vpop.f32.mrf.mxu1  ;;  %v7178_v52 = vpop.f32.mrf.mxu0 }
 0x32a   :  { %v4399_v31 = vmul.f32 %v7167_v49, %v4328_v41 }
 0x32b   :  { %v4076_v28 = vpop.f32.mrf.mxu1  ;;  %v3304_v0 = vpop.f32.mrf.mxu0 }
 0x32c   :  { %v4470_v59 = vadd.f32 %v7173_v9, %v4399_v31  ;;  %v4329_v54 = vadd.f32 %v4076_v28, %v3242_v34  ;;  %v3250_v34 = vadd.f32 %v7090_v43, %v6962_v63  ;;  %v5568_v63 = vld [vmem:[#allocation3 + $0x8] sm:$0xff] }
 0x32d   :  { %v4078_v38 = vpop.f32.mrf.mxu1  ;;  %v7184_v29 = vpop.f32.mrf.mxu0 }
 0x32e   :  { %v4534_v7 = vmul.f32 0.1, %v4470_v59  ;;  %v4400_v56 = vmul.f32 %v7167_v49, %v4329_v54 }
 0x32f   :  { %v4081_v3 = vpop.f32.mrf.mxu1  ;;  %4272 = vmatmul.mubr.bf16.gmra.mxu1 %v5548_v57  ;;  %v3307_v33 = vpop.f32.mrf.mxu0 }
 0x330   :  { %v4598_v41 = vmax.f32 %v4470_v59, %v4534_v7  ;;  %v4471_v48 = vadd.f32 %v7173_v9, %v4400_v56  ;;  %v4330_v31 = vadd.f32 %v4081_v3, %v3247_v14  ;;  %5200 = vmatprep.mubr.msk.bf16.mxu1 %vm1325_vm7, %v5549_v13  ;;  %v5551_v56 = vld [vmem:[#allocation2 + $0x1e0] ss:$8 sps:$4 sm:$0xff]   ;;  %v3255_v13 = vadd.f32 %v7095_v1, %v6971_v55  ;;  %v5569_v1 = vld [vmem:[#allocation3 + $0x10] sm:$0xff] }
 0x331   :  { %v4083_v28 = vpop.f32.mrf.mxu1  ;;  %v7191_v38 = vpop.f32.mrf.mxu0  ;;  %v3258_v55 = vadd.f32 %v7102_v18, %v6977_v58  ;;  %v5570_v58 = vld [vmem:[#allocation3 + $0x18] sm:$0xff] }
 0x332   :  { %v4662_v51 = vadd.f32 %v5567_v23, %v4598_v41  ;;  %v4535_v0 = vmul.f32 0.1, %v4471_v48  ;;  %v4401_v54 = vmul.f32 %v7167_v49, %v4330_v31  ;;  %v5552_v28 = vld [vmem:[#allocation2 + $0x1f4] ss:$8 sps:$4 sm:$0xff]  }
 0x333   :  { %v4084_v25 = vpop.f32.mrf.mxu1  ;;  %v3312_v33 = vpop.f32.mrf.mxu0 }
 0x334   :  { %4726 = vst [vmem:[#allocation8] sm:$0xff] %v4662_v51  ;;  %v4599_v7 = vmax.f32 %v4471_v48, %v4535_v0  ;;  %v4472_v59 = vadd.f32 %v7173_v9, %v4401_v54  ;;  %v4331_v14 = vadd.f32 %v4084_v25, %v3250_v34 }
 0x335   :  { %v4086_v57 = vpop.f32.mrf.mxu1  ;;  %v7197_v31 = vpop.f32.mrf.mxu0 }
 0x336   :  { %v4663_v43 = vadd.f32 %v5568_v63, %v4599_v7  ;;  %v4536_v3 = vmul.f32 0.1, %v4472_v59  ;;  %v4402_v41 = vmul.f32 %v7167_v49, %v4331_v14 }
 0x337   :  { %v4089_v23 = vpop.f32.mrf.mxu1  ;;  %4280 = vmatmul.mubr.bf16.gmra.mxu1 %v5551_v56  ;;  %v3315_v25 = vpop.f32.mrf.mxu0 }
 0x338   :  { %4727 = vst [vmem:[#allocation8 + $0x8] sm:$0xff] %v4663_v43  ;;  %v4600_v48 = vmax.f32 %v4472_v59, %v4536_v3  ;;  %v4473_v51 = vadd.f32 %v7173_v9, %v4402_v41  ;;  %v4332_v34 = vadd.f32 %v4089_v23, %v3255_v13  ;;  %5201 = vmatprep.mubr.msk.bf16.mxu1 %vm1325_vm7, %v5552_v28  ;;  %v5554_v3 = vld [vmem:[#allocation2 + $0x1f0] ss:$8 sps:$4 sm:$0xff]   ;;  %v5555_v25 = vld [vmem:[#allocation2 + $0x204] ss:$8 sps:$4 sm:$0xff]  }
 0x339   :  { %v4091_v0 = vpop.f32.mrf.mxu1  ;;  %v7204_v14 = vpop.f32.mrf.mxu0  ;;  %v3263_v41 = vadd.f32 %v7107_v24, %v6988_v44  ;;  %v3266_v44 = vadd.f32 %v7114_v2, %v6995_v26  ;;  %v5571_v24 = vld [vmem:[#allocation3 + $0x20] sm:$0xff]  ;;  %v5572_v26 = vld [vmem:[#allocation3 + $0x28] sm:$0xff] }
 0x33a   :  { %v4664_v54 = vadd.f32 %v5569_v1, %v4600_v48  ;;  %v4537_v7 = vmul.f32 0.1, %v4473_v51  ;;  %v4403_v33 = vmul.f32 %v7167_v49, %v4332_v34 }
 0x33b   :  { %v4092_v57 = vpop.f32.mrf.mxu1  ;;  %v3320_v63 = vpop.f32.mrf.mxu0 }
 0x33c   :  { %4728 = vst [vmem:[#allocation8 + $0x10] sm:$0xff] %v4664_v54  ;;  %v4601_v59 = vmax.f32 %v4473_v51, %v4537_v7  ;;  %v4474_v56 = vadd.f32 %v7173_v9, %v4403_v33  ;;  %v4333_v13 = vadd.f32 %v4092_v57, %v3258_v55 }
 0x33d   :  { %v4094_v43 = vpop.f32.mrf.mxu1  ;;  %v7210_v48 = vpop.f32.mrf.mxu0 }
 0x33e   :  { %v4665_v18 = vadd.f32 %v5570_v58, %v4601_v59  ;;  %v4538_v28 = vmul.f32 0.1, %v4474_v56  ;;  %v4404_v23 = vmul.f32 %v7167_v49, %v4333_v13  ;;  %v5557_v58 = vld [vmem:[#allocation2 + $0x200] ss:$8 sps:$4 sm:$0xff]  }
 0x33f   :  { %v4097_v34 = vpop.f32.mrf.mxu1  ;;  %4288 = vmatmul.mubr.bf16.gmra.mxu1 %v5554_v3  ;;  %v3323_v55 = vpop.f32.mrf.mxu0 }
 0x340   :  { %4729 = vst [vmem:[#allocation8 + $0x18] sm:$0xff] %v4665_v18  ;;  %v4602_v51 = vmax.f32 %v4474_v56, %v4538_v28  ;;  %v4475_v0 = vadd.f32 %v7173_v9, %v4404_v23  ;;  %v4334_v1 = vadd.f32 %v4097_v34, %v3263_v41  ;;  %5202 = vmatprep.mubr.msk.bf16.mxu1 %vm1325_vm7, %v5555_v25  ;;  %v5558_v34 = vld [vmem:[#allocation2 + $0x214] ss:$8 sps:$4 sm:$0xff]  }
 0x341   :  { %v4099_v54 = vpop.f32.mrf.mxu1  ;;  %v7217_v59 = vpop.f32.mrf.mxu0  ;;  %v3271_v18 = vadd.f32 %v7119_v46, %v7004_v12  ;;  %v3274_v12 = vadd.f32 %v7126_v8, %v7011_v21  ;;  %v5573_v46 = vld [vmem:[#allocation3 + $0x30] sm:$0xff]  ;;  %v5574_v21 = vld [vmem:[#allocation3 + $0x38] sm:$0xff] }
 0x342   :  { %v4666_v7 = vadd.f32 %v5571_v24, %v4602_v51  ;;  %v4539_v33 = vmul.f32 0.1, %v4475_v0  ;;  %v4405_v57 = vmul.f32 %v7167_v49, %v4334_v1 }
 0x343   :  { %v4100_v63 = vpop.f32.mrf.mxu1  ;;  %v3328_v43 = vpop.f32.mrf.mxu0 }
 0x344   :  { %4730 = vst [vmem:[#allocation8 + $0x20] sm:$0xff] %v4666_v7  ;;  %v4603_v56 = vmax.f32 %v4475_v0, %v4539_v33  ;;  %v4476_v13 = vadd.f32 %v7173_v9, %v4405_v57  ;;  %v4335_v3 = vadd.f32 %v4100_v63, %v3266_v44 }
 0x345   :  { %v4102_v41 = vpop.f32.mrf.mxu1  ;;  %v7223_v25 = vpop.f32.mrf.mxu0 }
 0x346   :  { %v4667_v2 = vadd.f32 %v5572_v26, %v4603_v56  ;;  %v4540_v28 = vmul.f32 0.1, %v4476_v13  ;;  %v4406_v23 = vmul.f32 %v7167_v49, %v4335_v3 }
 0x347   :  { %v4105_v51 = vpop.f32.mrf.mxu1  ;;  %4296 = vmatmul.mubr.bf16.gmra.mxu1 %v5557_v58  ;;  %v3331_v1 = vpop.f32.mrf.mxu0  ;;  %v5560_v58 = vld [vmem:[#allocation2 + $0x210] ss:$8 sps:$4 sm:$0xff]  }
 0x348   :  { %4731 = vst [vmem:[#allocation8 + $0x28] sm:$0xff] %v4667_v2  ;;  %v4604_v0 = vmax.f32 %v4476_v13, %v4540_v28  ;;  %v4477_v55 = vadd.f32 %v7173_v9, %v4406_v23  ;;  %v4336_v54 = vadd.f32 %v4105_v51, %v3271_v18  ;;  %5203 = vmatprep.mubr.msk.bf16.mxu1 %vm1325_vm7, %v5558_v34  ;;  %v5561_v23 = vld [vmem:[#allocation2 + $0x224] ss:$8 sps:$4 sm:$0xff]  }
 0x349   :  { %v4107_v44 = vpop.f32.mrf.mxu1  ;;  %v7230_v57 = vpop.f32.mrf.mxu0  ;;  %v3279_v18 = vadd.f32 %v7131_v4, %v7018_v47  ;;  %v3282_v47 = vadd.f32 %v7138_v10, %v7025_v15  ;;  %v5575_v4 = vld [vmem:[#allocation3 + $0x40] sm:$0xff]  ;;  %v3287_v15 = vadd.f32 %v7143_v32, %v7031_v40  ;;  %v5576_v10 = vld [vmem:[#allocation3 + $0x48] sm:$0xff]  ;;  %v3290_v40 = vadd.f32 %v7150_v50, %v7038_v36  ;;  %v5577_v32 = vld [vmem:[#allocation3 + $0x50] sm:$0xff] }
 0x34a   :  { %v4668_v24 = vadd.f32 %v5573_v46, %v4604_v0  ;;  %v4541_v7 = vmul.f32 0.1, %v4477_v55  ;;  %v4407_v33 = vmul.f32 %v7167_v49, %v4336_v54  ;;  %v5578_v36 = vld [vmem:[#allocation3 + $0x58] sm:$0xff] }
 0x34b   :  { %v4108_v63 = vpop.f32.mrf.mxu1  ;;  %v3336_v43 = vpop.f32.mrf.mxu0 }
 0x34c   :  { %4732 = vst [vmem:[#allocation8 + $0x30] sm:$0xff] %v4668_v24  ;;  %v4605_v56 = vmax.f32 %v4477_v55, %v4541_v7  ;;  %v4478_v13 = vadd.f32 %v7173_v9, %v4407_v33  ;;  %v4337_v3 = vadd.f32 %v4108_v63, %v3274_v12  ;;  %v5564_v43 = vld [vmem:[#allocation2 + $0x234] ss:$8 sps:$4 sm:$0xff]  }
 0x34d   :  { %v4110_v41 = vpop.f32.mrf.mxu1  ;;  %v7236_v28 = vpop.f32.mrf.mxu0 }
 0x34e   :  { %v4669_v8 = vadd.f32 %v5574_v21, %v4605_v56  ;;  %v4542_v26 = vmul.f32 0.1, %v4478_v13  ;;  %v4408_v2 = vmul.f32 %v7167_v49, %v4337_v3  ;;  %v5563_v41 = vld [vmem:[#allocation2 + $0x220] ss:$8 sps:$4 sm:$0xff]  }
 0x34f   :  { %v4113_v34 = vpop.f32.mrf.mxu1  ;;  %4304 = vmatmul.mubr.bf16.gmra.mxu1 %v5560_v58  ;;  %v3339_v55 = vpop.f32.mrf.mxu0 }
 0x350   :  { %4733 = vst [vmem:[#allocation8 + $0x38] sm:$0xff] %v4669_v8  ;;  %v4606_v51 = vmax.f32 %v4478_v13, %v4542_v26  ;;  %v4479_v0 = vadd.f32 %v7173_v9, %v4408_v2  ;;  %v4338_v1 = vadd.f32 %v4113_v34, %v3279_v18  ;;  %5204 = vmatprep.mubr.msk.bf16.mxu1 %vm1325_vm7, %v5561_v23 }
 0x351   :  { %v4115_v54 = vpop.f32.mrf.mxu1  ;;  %v7243_v24 = vpop.f32.mrf.mxu0 }
 0x352   :  { %v4670_v44 = vadd.f32 %v5575_v4, %v4606_v51  ;;  %v4543_v12 = vmul.f32 0.1, %v4479_v0  ;;  %v4409_v46 = vmul.f32 %v7167_v49, %v4338_v1 }
 0x353   :  { %v4116_v7 = vpop.f32.mrf.mxu1  ;;  %v3344_v56 = vpop.f32.mrf.mxu0 }
 0x354   :  { %4734 = vst [vmem:[#allocation8 + $0x40] sm:$0xff] %v4670_v44  ;;  %v4607_v33 = vmax.f32 %v4479_v0, %v4543_v12  ;;  %v4480_v63 = vadd.f32 %v7173_v9, %v4409_v46  ;;  %v4339_v13 = vadd.f32 %v4116_v7, %v3282_v47  ;;  %v5566_v44 = vld [vmem:[#allocation2 + $0x230] ss:$8 sps:$4 sm:$0xff]   ;;  %v3295_v56 = vadd.f32 %v7155_v19, %v7043_v16  ;;  %v5579_v16 = vld [vmem:[#allocation3 + $0x60] sm:$0xff] }
 0x355   :  { %v4118_v3 = vpop.f32.mrf.mxu1  ;;  %v7249_v8 = vpop.f32.mrf.mxu0 }
 0x356   :  { %v4671_v58 = vadd.f32 %v5576_v10, %v4607_v33  ;;  %v4544_v18 = vmul.f32 0.1, %v4480_v63  ;;  %v4410_v21 = vmul.f32 %v7167_v49, %v4339_v13 }
 0x357   :  { %v4121_v26 = vpop.f32.mrf.mxu1  ;;  %4312 = vmatmul.mubr.bf16.gmra.mxu1 %v5563_v41  ;;  %v3347_v34 = vpop.f32.mrf.mxu0 }
 0x358   :  { %4735 = vst [vmem:[#allocation8 + $0x48] sm:$0xff] %v4671_v58  ;;  %v4608_v2 = vmax.f32 %v4480_v63, %v4544_v18  ;;  %v4481_v23 = vadd.f32 %v7173_v9, %v4410_v21  ;;  %v4340_v51 = vadd.f32 %v4121_v26, %v3287_v15  ;;  %5205 = vmatprep.mubr.msk.bf16.mxu1 %vm1325_vm7, %v5564_v43 }
 0x359   :  { %v4123_v0 = vpop.f32.mrf.mxu1  ;;  %v7256_v47 = vpop.f32.mrf.mxu0  ;;  %v3298_v26 = vadd.f32 %v7162_v20, %v7050_v11 }
 0x35a   :  { %v4672_v55 = vadd.f32 %v5577_v32, %v4608_v2  ;;  %v4545_v1 = vmul.f32 0.1, %v4481_v23  ;;  %v4411_v54 = vmul.f32 %v7167_v49, %v4340_v51 }
 0x35b   :  { %v4124_v4 = vpop.f32.mrf.mxu1  ;;  %v3352_v7 = vpop.f32.mrf.mxu0 }
 0x35c   :  { %4736 = vst [vmem:[#allocation8 + $0x50] sm:$0xff] %v4672_v55  ;;  %v4609_v12 = vmax.f32 %v4481_v23, %v4545_v1  ;;  %v4482_v46 = vadd.f32 %v7173_v9, %v4411_v54  ;;  %v4341_v33 = vadd.f32 %v4124_v4, %v3290_v40  ;;  %v3303_v54 = vadd.f32 %v7178_v52, %v7056_v22  ;;  %v5580_v4 = vld [vmem:[#allocation3 + $0x68] sm:$0xff] }
 0x35d   :  { %v4126_v63 = vpop.f32.mrf.mxu1  ;;  %v7262_v3 = vpop.f32.mrf.mxu0 }
 0x35e   :  { %v4673_v50 = vadd.f32 %v5578_v36, %v4609_v12  ;;  %v4546_v13 = vmul.f32 0.1, %v4482_v46  ;;  %v4412_v43 = vmul.f32 %v7167_v49, %v4341_v33 }
 0x35f   :  { %v4129_v41 = vpop.f32.mrf.mxu1  ;;  %4320 = vmatmul.mubr.bf16.gmra.mxu1 %v5566_v44  ;;  %v3355_v58 = vpop.f32.mrf.mxu0 }
 0x360   :  { %4737 = vst [vmem:[#allocation8 + $0x58] sm:$0xff] %v4673_v50  ;;  %v4610_v15 = vmax.f32 %v4482_v46, %v4546_v13  ;;  %v4483_v10 = vadd.f32 %v7173_v9, %v4412_v43  ;;  %v4342_v18 = vadd.f32 %v4129_v41, %v3295_v56  ;;  %v3306_v50 = vadd.f32 %v7184_v29, %v7063_v62  ;;  %v5581_v13 = vld [vmem:[#allocation3 + $0x70] sm:$0xff] }
 0x361   :  { %v4131_v21 = vpop.f32.mrf.mxu1  ;;  %v7268_v34 = vpop.f32.mrf.mxu0 }
 0x362   :  { %v4674_v19 = vadd.f32 %v5579_v16, %v4610_v15  ;;  %v4547_v2 = vmul.f32 0.1, %v4483_v10  ;;  %v4413_v23 = vmul.f32 %v7167_v49, %v4342_v18  ;;  %v3311_v16 = vadd.f32 %v7191_v38, %v6867_v39 }
 0x363   :  { %v4132_v51 = vpop.f32.mrf.mxu1  ;;  %v3360_v32 = vpop.f32.mrf.mxu0 }
 0x364   :  { %4738 = vst [vmem:[#allocation8 + $0x60] sm:$0xff] %v4674_v19  ;;  %v4611_v0 = vmax.f32 %v4483_v10, %v4547_v2  ;;  %v4484_v40 = vadd.f32 %v7173_v9, %v4413_v23  ;;  %v4343_v55 = vadd.f32 %v4132_v51, %v3298_v26  ;;  %v5582_v19 = vld [vmem:[#allocation3 + $0x78] sm:$0xff] }
 0x365   :  { %v4134_v1 = vpop.f32.mrf.mxu1  ;;  %v7274_v12 = vpop.f32.mrf.mxu0 }
 0x366   :  { %v4675_v11 = vadd.f32 %v5580_v4, %v4611_v0  ;;  %v4548_v20 = vmul.f32 0.1, %v4484_v40  ;;  %v4414_v44 = vmul.f32 %v7167_v49, %v4343_v55  ;;  %v5583_v4 = vld [vmem:[#allocation3 + $0x80] sm:$0xff] }
 0x367   :  { %v4137_v46 = vpop.f32.mrf.mxu1  ;;  %v3363_v63 = vpop.f32.mrf.mxu0 }
 0x368   :  { %4739 = vst [vmem:[#allocation8 + $0x68] sm:$0xff] %v4675_v11  ;;  %v4612_v7 = vmax.f32 %v4484_v40, %v4548_v20  ;;  %v4485_v33 = vadd.f32 %v7173_v9, %v4414_v44  ;;  %v4344_v56 = vadd.f32 %v4137_v46, %v3303_v54  ;;  %v3314_v54 = vadd.f32 %v7197_v31, %v6872_v53 }
 0x369   :  { %v4139_v36 = vpop.f32.mrf.mxu1  ;;  %v7280_v41 = vpop.f32.mrf.mxu0 }
 0x36a   :  { %v4676_v22 = vadd.f32 %v5581_v13, %v4612_v7  ;;  %v4549_v52 = vmul.f32 0.1, %v4485_v33  ;;  %v4415_v43 = vmul.f32 %v7167_v49, %v4344_v56  ;;  %v3319_v36 = vadd.f32 %v7204_v14, %v6876_v61 }
 0x36b   :  { %v4140_v15 = vpop.f32.mrf.mxu1  ;;  %v3368_v18 = vpop.f32.mrf.mxu0 }
 0x36c   :  { %4740 = vst [vmem:[#allocation8 + $0x70] sm:$0xff] %v4676_v22  ;;  %v4613_v10 = vmax.f32 %v4485_v33, %v4549_v52  ;;  %v4486_v58 = vadd.f32 %v7173_v9, %v4415_v43  ;;  %v4345_v21 = vadd.f32 %v4140_v15, %v3306_v50  ;;  %v5584_v50 = vld [vmem:[#allocation3 + $0x88] sm:$0xff] }
 0x36d   :  { %v4142_v26 = vpop.f32.mrf.mxu1  ;;  %v7286_v23 = vpop.f32.mrf.mxu0 }
 0x36e   :  { %v4677_v29 = vadd.f32 %v5582_v19, %v4613_v10  ;;  %v4550_v62 = vmul.f32 0.1, %v4486_v58  ;;  %v4416_v2 = vmul.f32 %v7167_v49, %v4345_v21  ;;  %v3322_v21 = vadd.f32 %v7210_v48, %v6882_v17  ;;  %v5585_v26 = vld [vmem:[#allocation3 + $0x90] sm:$0xff] }
 0x36f   :  { %v4145_v51 = vpop.f32.mrf.mxu1  ;;  %v3371_v32 = vpop.f32.mrf.mxu0 }
 0x370   :  { %4741 = vst [vmem:[#allocation8 + $0x78] sm:$0xff] %v4677_v29  ;;  %v4614_v0 = vmax.f32 %v4486_v58, %v4550_v62  ;;  %v4487_v40 = vadd.f32 %v7173_v9, %v4416_v2  ;;  %v4346_v55 = vadd.f32 %v4145_v51, %v3311_v16  ;;  %v3327_v32 = vadd.f32 %v7217_v59, %v6884_v30 }
 0x371   :  { %v4147_v1 = vpop.f32.mrf.mxu1  ;;  %v7292_v20 = vpop.f32.mrf.mxu0 }
 0x372   :  { %v4678_v39 = vadd.f32 %v5583_v4, %v4614_v0  ;;  %v4551_v38 = vmul.f32 0.1, %v4487_v40  ;;  %v4417_v11 = vmul.f32 %v7167_v49, %v4346_v55  ;;  %v5586_v55 = vld [vmem:[#allocation3 + $0x98] sm:$0xff] }
 0x373   :  { %v4148_v44 = vpop.f32.mrf.mxu1  ;;  %v3376_v33 = vpop.f32.mrf.mxu0 }
 0x374   :  { %4742 = vst [vmem:[#allocation8 + $0x80] sm:$0xff] %v4678_v39  ;;  %v4615_v46 = vmax.f32 %v4487_v40, %v4551_v38  ;;  %v4488_v7 = vadd.f32 %v7173_v9, %v4417_v11  ;;  %v4347_v63 = vadd.f32 %v4148_v44, %v3314_v54  ;;  %v5587_v33 = vld [vmem:[#allocation3 + $0xa0] sm:$0xff] }
 0x375   :  { %v4150_v56 = vpop.f32.mrf.mxu1  ;;  %v7298_v22 = vpop.f32.mrf.mxu0 }
 0x376   :  { %v4679_v53 = vadd.f32 %v5584_v50, %v4615_v46  ;;  %v4552_v31 = vmul.f32 0.1, %v4488_v7  ;;  %v4418_v13 = vmul.f32 %v7167_v49, %v4347_v63 }
 0x377   :  { %v4153_v52 = vpop.f32.mrf.mxu1  ;;  %v3379_v10 = vpop.f32.mrf.mxu0 }
 0x378   :  { %4743 = vst [vmem:[#allocation8 + $0x88] sm:$0xff] %v4679_v53  ;;  %v4616_v43 = vmax.f32 %v4488_v7, %v4552_v31  ;;  %v4489_v15 = vadd.f32 %v7173_v9, %v4418_v13  ;;  %v4348_v58 = vadd.f32 %v4153_v52, %v3319_v36  ;;  %v3330_v7 = vadd.f32 %v7223_v25, %v6896_v42 }
 0x379   :  { %v4155_v18 = vpop.f32.mrf.mxu1  ;;  %v7304_v19 = vpop.f32.mrf.mxu0 }
 0x37a   :  { %v4680_v61 = vadd.f32 %v5585_v26, %v4616_v43  ;;  %v4553_v14 = vmul.f32 0.1, %v4489_v15  ;;  %v4419_v16 = vmul.f32 %v7167_v49, %v4348_v58  ;;  %v3335_v43 = vadd.f32 %v7230_v57, %v6898_v27 }
 0x37b   :  { %v4156_v29 = vpop.f32.mrf.mxu1  ;;  %v3384_v51 = vpop.f32.mrf.mxu0 }
 0x37c   :  { %4744 = vst [vmem:[#allocation8 + $0x90] sm:$0xff] %v4680_v61  ;;  %v4617_v62 = vmax.f32 %v4489_v15, %v4553_v14  ;;  %v4490_v2 = vadd.f32 %v7173_v9, %v4419_v16  ;;  %v4349_v0 = vadd.f32 %v4156_v29, %v3322_v21  ;;  %v5588_v15 = vld [vmem:[#allocation3 + $0xa8] sm:$0xff]  ;;  %v3338_v29 = vadd.f32 %v7236_v28, %v6910_v60 }
 0x37d   :  { %v4158_v40 = vpop.f32.mrf.mxu1  ;;  %v7310_v54 = vpop.f32.mrf.mxu0 }
 0x37e   :  { %v4681_v17 = vadd.f32 %v5586_v55, %v4617_v62  ;;  %v4554_v48 = vmul.f32 0.1, %v4490_v2  ;;  %v4420_v1 = vmul.f32 %v7167_v49, %v4349_v0  ;;  %v5589_v62 = vld [vmem:[#allocation3 + $0xb0] sm:$0xff] }
 0x37f   :  { %v4161_v4 = vpop.f32.mrf.mxu1  ;;  %v3387_v11 = vpop.f32.mrf.mxu0 }
 0x380   :  { %4745 = vst [vmem:[#allocation8 + $0x98] sm:$0xff] %v4681_v17  ;;  %v4618_v39 = vmax.f32 %v4490_v2, %v4554_v48  ;;  %v4491_v38 = vadd.f32 %v7173_v9, %v4420_v1  ;;  %v4350_v44 = vadd.f32 %v4161_v4, %v3327_v32  ;;  %v3343_v1 = vadd.f32 %v7243_v24, %v6912_v37  ;;  %v5590_v4 = vld [vmem:[#allocation3 + $0xb8] sm:$0xff] }
 0x381   :  { %v4163_v46 = vpop.f32.mrf.mxu1  ;;  %v7316_v56 = vpop.f32.mrf.mxu0 }
 0x382   :  { %v4682_v30 = vadd.f32 %v5587_v33, %v4618_v39  ;;  %v4555_v59 = vmul.f32 0.1, %v4491_v38  ;;  %v4421_v63 = vmul.f32 %v7167_v49, %v4350_v44 }
 0x383   :  { %v4164_v36 = vpop.f32.mrf.mxu1  ;;  %v3392_v31 = vpop.f32.mrf.mxu0 }
 0x384   :  { %4746 = vst [vmem:[#allocation8 + $0xa0] sm:$0xff] %v4682_v30  ;;  %v4619_v50 = vmax.f32 %v4491_v38, %v4555_v59  ;;  %v4492_v53 = vadd.f32 %v7173_v9, %v4421_v63  ;;  %v4351_v13 = vadd.f32 %v4164_v36, %v3330_v7  ;;  %v3346_v59 = vadd.f32 %v7249_v8, %v6924_v5  ;;  %v5591_v63 = vld [vmem:[#allocation3 + $0xc0] sm:$0xff] }
 0x385   :  { %v4166_v52 = vpop.f32.mrf.mxu1  ;;  %v7322_v58 = vpop.f32.mrf.mxu0 }
 0x386   :  { %v4683_v42 = vadd.f32 %v5588_v15, %v4619_v50  ;;  %v4556_v25 = vmul.f32 0.1, %v4492_v53  ;;  %v4422_v10 = vmul.f32 %v7167_v49, %v4351_v13 }
 0x387   :  { %v4169_v18 = vpop.f32.mrf.mxu1  ;;  %v3395_v61 = vpop.f32.mrf.mxu0 }
 0x388   :  { %4747 = vst [vmem:[#allocation8 + $0xa8] sm:$0xff] %v4683_v42  ;;  %v4620_v21 = vmax.f32 %v4492_v53, %v4556_v25  ;;  %v4493_v26 = vadd.f32 %v7173_v9, %v4422_v10  ;;  %v4352_v14 = vadd.f32 %v4169_v18, %v3335_v43  ;;  %v3351_v42 = vadd.f32 %v7256_v47, %v6926_v35  ;;  %v5592_v25 = vld [vmem:[#allocation3 + $0xc8] sm:$0xff] }
 0x389   :  { %v4171_v16 = vpop.f32.mrf.mxu1  ;;  %v7328_v51 = vpop.f32.mrf.mxu0 }
 0x38a   :  { %v4684_v27 = vadd.f32 %v5589_v62, %v4620_v21  ;;  %v4557_v57 = vmul.f32 0.1, %v4493_v26  ;;  %v4423_v2 = vmul.f32 %v7167_v49, %v4352_v14  ;;  %v3354_v62 = vadd.f32 %v7262_v3, %v6938_v6 }
 0x38b   :  { %v4172_v0 = vpop.f32.mrf.mxu1  ;;  %v3400_v55 = vpop.f32.mrf.mxu0 }
 0x38c   :  { %4748 = vst [vmem:[#allocation8 + $0xb0] sm:$0xff] %v4684_v27  ;;  %v4621_v40 = vmax.f32 %v4493_v26, %v4557_v57  ;;  %v4494_v32 = vadd.f32 %v7173_v9, %v4423_v2  ;;  %v4353_v17 = vadd.f32 %v4172_v0, %v3338_v29  ;;  %v5593_v27 = vld [vmem:[#allocation3 + $0xd0] sm:$0xff] }
 0x38d   :  { %v4174_v48 = vpop.f32.mrf.mxu1  ;;  %v7334_v38 = vpop.f32.mrf.mxu0 }
 0x38e   :  { %v4685_v60 = vadd.f32 %v5590_v4, %v4621_v40  ;;  %v4558_v28 = vmul.f32 0.1, %v4494_v32  ;;  %v4424_v39 = vmul.f32 %v7167_v49, %v4353_v17  ;;  %v5594_v4 = vld [vmem:[#allocation3 + $0xd8] sm:$0xff] }
 0x38f   :  { %v4177_v11 = vpop.f32.mrf.mxu1  ;;  %v3403_v7 = vpop.f32.mrf.mxu0 }
 0x390   :  { %4749 = vst [vmem:[#allocation8 + $0xb8] sm:$0xff] %v4685_v60  ;;  %v4622_v44 = vmax.f32 %v4494_v32, %v4558_v28  ;;  %v4495_v46 = vadd.f32 %v7173_v9, %v4424_v39  ;;  %v4354_v33 = vadd.f32 %v4177_v11, %v3343_v1  ;;  %v3359_v1 = vadd.f32 %v7268_v34, %v6940_v45 }
 0x391   :  { %v4179_v30 = vpop.f32.mrf.mxu1  ;;  %v7340_v50 = vpop.f32.mrf.mxu0 }
 0x392   :  { %v4686_v37 = vadd.f32 %v5591_v63, %v4622_v44  ;;  %v4559_v24 = vmul.f32 0.1, %v4495_v46  ;;  %v4425_v36 = vmul.f32 %v7167_v49, %v4354_v33  ;;  %v7594_v30 = vld [vmem:[#allocation12_spill] sm:$0xff] }
 0x393   :  { %v4180_v53 = vpop.f32.mrf.mxu1  ;;  %v3408_v52 = vpop.f32.mrf.mxu0  ;;  %v5595_v63 = vld [vmem:[#allocation3 + $0xe0] sm:$0xff] }
 0x394   :  { %4750 = vst [vmem:[#allocation8 + $0xc0] sm:$0xff] %v4686_v37  ;;  %v4623_v31 = vmax.f32 %v4495_v46, %v4559_v24  ;;  %v4496_v13 = vadd.f32 %v7173_v9, %v4425_v36  ;;  %v4355_v43 = vadd.f32 %v4180_v53, %v3346_v59  ;;  %v3362_v59 = vadd.f32 %v7274_v12, %v7594_v30 }
 0x395   :  { %v4182_v15 = vpop.f32.mrf.mxu1  ;;  %v7346_v18 = vpop.f32.mrf.mxu0 }
 0x396   :  { %v4687_v5 = vadd.f32 %v5592_v25, %v4623_v31  ;;  %v4560_v8 = vmul.f32 0.1, %v4496_v13  ;;  %v4426_v10 = vmul.f32 %v7167_v49, %v4355_v43  ;;  %v7595_v15 = vld [vmem:[#allocation13_spill] sm:$0xff] }
 0x397   :  { %v4185_v21 = vpop.f32.mrf.mxu1  ;;  %v3411_v14 = vpop.f32.mrf.mxu0  ;;  %v5596_v25 = vld [vmem:[#allocation3 + $0xe8] sm:$0xff] }
 0x398   :  { %4751 = vst [vmem:[#allocation8 + $0xc8] sm:$0xff] %v4687_v5  ;;  %v4624_v26 = vmax.f32 %v4496_v13, %v4560_v8  ;;  %v4497_v61 = vadd.f32 %v7173_v9, %v4426_v10  ;;  %v4356_v16 = vadd.f32 %v4185_v21, %v3351_v42  ;;  %v3367_v42 = vadd.f32 %v7280_v41, %v7595_v15 }
 0x399   :  { %v4187_v29 = vpop.f32.mrf.mxu1  ;;  %v7352_v2 = vpop.f32.mrf.mxu0 }
 0x39a   :  { %v4688_v35 = vadd.f32 %v5593_v27, %v4624_v26  ;;  %v4561_v47 = vmul.f32 0.1, %v4497_v61  ;;  %v4427_v57 = vmul.f32 %v7167_v49, %v4356_v16 }
 0x39b   :  { %v4188_v0 = vpop.f32.mrf.mxu1  ;;  %v3416_v55 = vpop.f32.mrf.mxu0 }
 0x39c   :  { %4752 = vst [vmem:[#allocation8 + $0xd0] sm:$0xff] %v4688_v35  ;;  %v4625_v40 = vmax.f32 %v4497_v61, %v4561_v47  ;;  %v4498_v32 = vadd.f32 %v7173_v9, %v4427_v57  ;;  %v4357_v17 = vadd.f32 %v4188_v0, %v3354_v62  ;;  %v7596_v62 = vld [vmem:[#allocation14_spill] sm:$0xff] }
 0x39d   :  { %v4190_v48 = vpop.f32.mrf.mxu1  ;;  %v7358_v28 = vpop.f32.mrf.mxu0  ;;  %v3370_v27 = vadd.f32 %v7286_v23, %v7596_v62  ;;  %v5597_v35 = vld [vmem:[#allocation3 + $0xf0] sm:$0xff] }
 0x39e   :  { %v4689_v6 = vadd.f32 %v5594_v4, %v4625_v40  ;;  %v4562_v3 = vmul.f32 0.1, %v4498_v32  ;;  %v4428_v60 = vmul.f32 %v7167_v49, %v4357_v17  ;;  %v7597_v4 = vld [vmem:[#allocation15_spill] sm:$0xff] }
 0x39f   :  { %v4193_v39 = vpop.f32.mrf.mxu1  ;;  %v3419_v46 = vpop.f32.mrf.mxu0 }
 0x3a0   :  { %4753 = vst [vmem:[#allocation8 + $0xd8] sm:$0xff] %v4689_v6  ;;  %v4626_v11 = vmax.f32 %v4498_v32, %v4562_v3  ;;  %v4499_v44 = vadd.f32 %v7173_v9, %v4428_v60  ;;  %v4358_v7 = vadd.f32 %v4193_v39, %v3359_v1  ;;  %v3375_v6 = vadd.f32 %v7292_v20, %v7597_v4  ;;  %v5598_v3 = vld [vmem:[#allocation3 + $0xf8] sm:$0xff] }
 0x3a1   :  { %v4195_v33 = vpop.f32.mrf.mxu1  ;;  %v7364_v24 = vpop.f32.mrf.mxu0 }
 0x3a2   :  { %v4690_v45 = vadd.f32 %v5595_v63, %v4626_v11  ;;  %v4563_v34 = vmul.f32 0.1, %v4499_v44  ;;  %v4429_v37 = vmul.f32 %v7167_v49, %v4358_v7  ;;  %v7598_v63 = vld [vmem:[#allocation16_spill] sm:$0xff] }
 0x3a3   :  { %v4196_v36 = vpop.f32.mrf.mxu1  ;;  %v3424_v13 = vpop.f32.mrf.mxu0 }
 0x3a4   :  { %4754 = vst [vmem:[#allocation8 + $0xe0] sm:$0xff] %v4690_v45  ;;  %v4627_v53 = vmax.f32 %v4499_v44, %v4563_v34  ;;  %v4500_v31 = vadd.f32 %v7173_v9, %v4429_v37  ;;  %v4359_v52 = vadd.f32 %v4196_v36, %v3362_v59  ;;  %v3378_v45 = vadd.f32 %v7298_v22, %v7598_v63  ;;  %v5599_v34 = vld [vmem:[#allocation3 + $0x100] sm:$0xff] }
 0x3a5   :  { %v4198_v43 = vpop.f32.mrf.mxu1  ;;  %v7370_v10 = vpop.f32.mrf.mxu0 }
 0x3a6   :  { %v4691_v12 = vadd.f32 %v5596_v25, %v4627_v53  ;;  %v4564_v5 = vmul.f32 0.1, %v4500_v31  ;;  %v4430_v8 = vmul.f32 %v7167_v49, %v4359_v52  ;;  %v7599_v25 = vld [vmem:[#allocation17_spill] sm:$0xff] }
 0x3a7   :  { %v4201_v21 = vpop.f32.mrf.mxu1  ;;  %v3427_v14 = vpop.f32.mrf.mxu0 }
 0x3a8   :  { %4755 = vst [vmem:[#allocation8 + $0xe8] sm:$0xff] %v4691_v12  ;;  %v4628_v26 = vmax.f32 %v4500_v31, %v4564_v5  ;;  %v4501_v61 = vadd.f32 %v7173_v9, %v4430_v8  ;;  %v4360_v16 = vadd.f32 %v4201_v21, %v3367_v42  ;;  %v3383_v12 = vadd.f32 %v7304_v19, %v7599_v25  ;;  %v5600_v5 = vld [vmem:[#allocation3 + $0x108] sm:$0xff] }
 0x3a9   :  { %v4203_v29 = vpop.f32.mrf.mxu1  ;;  %v7376_v0 = vpop.f32.mrf.mxu0 }
 0x3aa   :  { %v4692_v41 = vadd.f32 %v5597_v35, %v4628_v26  ;;  %v4565_v47 = vmul.f32 0.1, %v4501_v61  ;;  %v4431_v57 = vmul.f32 %v7167_v49, %v4360_v16  ;;  %v7600_v35 = vld [vmem:[#allocation18_spill] sm:$0xff] }
 0x3ab   :  { %v4204_v40 = vpop.f32.mrf.mxu1  ;;  %v3432_v17 = vpop.f32.mrf.mxu0 }
 0x3ac   :  { %4756 = vst [vmem:[#allocation8 + $0xf0] sm:$0xff] %v4692_v41  ;;  %v4629_v32 = vmax.f32 %v4501_v61, %v4565_v47  ;;  %v4502_v55 = vadd.f32 %v7173_v9, %v4431_v57  ;;  %v4361_v48 = vadd.f32 %v4204_v40, %v3370_v27  ;;  %v3386_v41 = vadd.f32 %v7310_v54, %v7600_v35  ;;  %v5601_v47 = vld [vmem:[#allocation3 + $0x110] sm:$0xff] }
 0x3ad   :  { %v4206_v1 = vpop.f32.mrf.mxu1  ;;  %v7382_v11 = vpop.f32.mrf.mxu0 }
 0x3ae   :  { %v4693_v23 = vadd.f32 %v5598_v3, %v4629_v32  ;;  %v4566_v60 = vmul.f32 0.1, %v4502_v55  ;;  %v4432_v39 = vmul.f32 %v7167_v49, %v4361_v48  ;;  %v7601_v3 = vld [vmem:[#allocation19_spill] sm:$0xff] }
 0x3af   :  { %v4209_v44 = vpop.f32.mrf.mxu1  ;;  %v3435_v33 = vpop.f32.mrf.mxu0 }
 0x3b0   :  { %4757 = vst [vmem:[#allocation8 + $0xf8] sm:$0xff] %v4693_v23  ;;  %v4630_v46 = vmax.f32 %v4502_v55, %v4566_v60  ;;  %v4503_v7 = vadd.f32 %v7173_v9, %v4432_v39  ;;  %v4362_v30 = vadd.f32 %v4209_v44, %v3375_v6  ;;  %v3391_v23 = vadd.f32 %v7316_v56, %v7601_v3  ;;  %v5602_v60 = vld [vmem:[#allocation3 + $0x118] sm:$0xff] }
 0x3b1   :  { %v4211_v59 = vpop.f32.mrf.mxu1  ;;  %v7388_v53 = vpop.f32.mrf.mxu0 }
 0x3b2   :  { %v4694_v20 = vadd.f32 %v5599_v34, %v4630_v46  ;;  %v4567_v37 = vmul.f32 0.1, %v4503_v7  ;;  %v4433_v36 = vmul.f32 %v7167_v49, %v4362_v30  ;;  %v7602_v34 = vld [vmem:[#allocation20_spill] sm:$0xff] }
 0x3b3   :  { %v4212_v31 = vpop.f32.mrf.mxu1  ;;  %v3440_v43 = vpop.f32.mrf.mxu0 }
 0x3b4   :  { %4758 = vst [vmem:[#allocation8 + $0x100] sm:$0xff] %v4694_v20  ;;  %v4631_v13 = vmax.f32 %v4503_v7, %v4567_v37  ;;  %v4504_v52 = vadd.f32 %v7173_v9, %v4433_v36  ;;  %v4363_v15 = vadd.f32 %v4212_v31, %v3378_v45  ;;  %v3394_v20 = vadd.f32 %v7322_v58, %v7602_v34  ;;  %v5603_v37 = vld [vmem:[#allocation3 + $0x120] sm:$0xff] }
 0x3b5   :  { %v4214_v42 = vpop.f32.mrf.mxu1  ;;  %v7394_v26 = vpop.f32.mrf.mxu0 }
 0x3b6   :  { %v4695_v22 = vadd.f32 %v5600_v5, %v4631_v13  ;;  %v4568_v8 = vmul.f32 0.1, %v4504_v52  ;;  %v4434_v21 = vmul.f32 %v7167_v49, %v4363_v15  ;;  %v7603_v5 = vld [vmem:[#allocation21_spill] sm:$0xff] }
 0x3b7   :  { %v4217_v61 = vpop.f32.mrf.mxu1  ;;  %v3443_v29 = vpop.f32.mrf.mxu0 }
 0x3b8   :  { %4759 = vst [vmem:[#allocation8 + $0x108] sm:$0xff] %v4695_v22  ;;  %v4632_v14 = vmax.f32 %v4504_v52, %v4568_v8  ;;  %v4505_v16 = vadd.f32 %v7173_v9, %v4434_v21  ;;  %v4364_v62 = vadd.f32 %v4217_v61, %v3383_v12  ;;  %v3399_v22 = vadd.f32 %v7328_v51, %v7603_v5  ;;  %v5604_v8 = vld [vmem:[#allocation3 + $0x128] sm:$0xff] }
 0x3b9   :  { %v4219_v27 = vpop.f32.mrf.mxu1  ;;  %v7400_v32 = vpop.f32.mrf.mxu0 }
 0x3ba   :  { %v4696_v19 = vadd.f32 %v5601_v47, %v4632_v14  ;;  %v4569_v57 = vmul.f32 0.1, %v4505_v16  ;;  %v4435_v40 = vmul.f32 %v7167_v49, %v4364_v62  ;;  %v7604_v47 = vld [vmem:[#allocation22_spill] sm:$0xff] }
 0x3bb   :  { %v4220_v55 = vpop.f32.mrf.mxu1  ;;  %v3448_v1 = vpop.f32.mrf.mxu0 }
 0x3bc   :  { %4760 = vst [vmem:[#allocation8 + $0x110] sm:$0xff] %v4696_v19  ;;  %v4633_v17 = vmax.f32 %v4505_v16, %v4569_v57  ;;  %v4506_v48 = vadd.f32 %v7173_v9, %v4435_v40  ;;  %v4365_v4 = vadd.f32 %v4220_v55, %v3386_v41  ;;  %v3402_v19 = vadd.f32 %v7334_v38, %v7604_v47  ;;  %v5605_v57 = vld [vmem:[#allocation3 + $0x130] sm:$0xff] }
 0x3bd   :  { %v4222_v6 = vpop.f32.mrf.mxu1  ;;  %v7406_v46 = vpop.f32.mrf.mxu0 }
 0x3be   :  { %v4697_v54 = vadd.f32 %v5602_v60, %v4633_v17  ;;  %v4570_v39 = vmul.f32 0.1, %v4506_v48  ;;  %v4436_v44 = vmul.f32 %v7167_v49, %v4365_v4  ;;  %v7605_v60 = vld [vmem:[#allocation23_spill] sm:$0xff] }
 0x3bf   :  { %v4225_v7 = vpop.f32.mrf.mxu1  ;;  %v3451_v59 = vpop.f32.mrf.mxu0 }
 0x3c0   :  { %4761 = vst [vmem:[#allocation8 + $0x118] sm:$0xff] %v4697_v54  ;;  %v4634_v33 = vmax.f32 %v4506_v48, %v4570_v39  ;;  %v4507_v30 = vadd.f32 %v7173_v9, %v4436_v44  ;;  %v4366_v63 = vadd.f32 %v4225_v7, %v3391_v23  ;;  %v3407_v54 = vadd.f32 %v7340_v50, %v7605_v60  ;;  %v5606_v39 = vld [vmem:[#allocation3 + $0x138] sm:$0xff]  ;;  %v7440_v59 = vld [vmem:[%s7553_s6] ss:$0 sm:$0xff] }
 0x3c1   :  { %v4227_v45 = vpop.f32.mrf.mxu1  ;;  %v7412_v13 = vpop.f32.mrf.mxu0 }
 0x3c2   :  { %v4698_v56 = vadd.f32 %v5603_v37, %v4634_v33  ;;  %v4571_v36 = vmul.f32 0.1, %v4507_v30  ;;  %v4437_v31 = vmul.f32 %v7167_v49, %v4366_v63 }
 0x3c3   :  { %v4228_v52 = vpop.f32.mrf.mxu1  ;;  %v3456_v42 = vpop.f32.mrf.mxu0 }
 0x3c4   :  { %4762 = vst [vmem:[#allocation8 + $0x120] sm:$0xff] %v4698_v56  ;;  %v4635_v43 = vmax.f32 %v4507_v30, %v4571_v36  ;;  %v4508_v15 = vadd.f32 %v7173_v9, %v4437_v31  ;;  %v4367_v25 = vadd.f32 %v4228_v52, %v3394_v20  ;;  %v7606_v20 = vld [vmem:[#allocation24_spill] sm:$0xff] }
 0x3c5   :  { %v4230_v12 = vpop.f32.mrf.mxu1  ;;  %v7418_v14 = vpop.f32.mrf.mxu0  ;;  %v3410_v37 = vadd.f32 %v7346_v18, %v7606_v20  ;;  %v5609_v56 = vld [vmem:[#allocation3 + $0x140] sm:$0xff] }
 0x3c6   :  { %v4699_v58 = vadd.f32 %v5604_v8, %v4635_v43  ;;  %v4572_v21 = vmul.f32 0.1, %v4508_v15  ;;  %v4438_v61 = vmul.f32 %v7167_v49, %v4367_v25  ;;  %v7607_v8 = vld [vmem:[#allocation25_spill] sm:$0xff] }
 0x3c7   :  { %v4233_v16 = vpop.f32.mrf.mxu1  ;;  %v3459_v27 = vpop.f32.mrf.mxu0 }
 0x3c8   :  { %4763 = vst [vmem:[#allocation8 + $0x128] sm:$0xff] %v4699_v58  ;;  %v4636_v29 = vmax.f32 %v4508_v15, %v4572_v21  ;;  %v4509_v62 = vadd.f32 %v7173_v9, %v4438_v61  ;;  %v4368_v35 = vadd.f32 %v4233_v16, %v3399_v22  ;;  %v3415_v58 = vadd.f32 %v7352_v2, %v7607_v8  ;;  %v5610_v21 = vld [vmem:[#allocation3 + $0x148] sm:$0xff] }
 0x3c9   :  { %v4235_v41 = vpop.f32.mrf.mxu1  ;;  %v7424_v17 = vpop.f32.mrf.mxu0 }
 0x3ca   :  { %v4700_v51 = vadd.f32 %v5605_v57, %v4636_v29  ;;  %v4573_v40 = vmul.f32 0.1, %v4509_v62  ;;  %v4439_v55 = vmul.f32 %v7167_v49, %v4368_v35  ;;  %v7432_v49 = vld [vmem:[%s7552_s5] ss:$0 sm:$0xff]  ;;  %v7608_v57 = vld [vmem:[#allocation26_spill] sm:$0xff]  ;;  %s5706_s5 = smov [#allocation8]  }
 0x3cb   :  { %v4236_v48 = vpop.f32.mrf.mxu1  ;;  %v3464_v6 = vpop.f32.mrf.mxu0  ;;  %s4795_s6 = sshll.u32 %s5706_s5, 4  ;;  %s4796_s6 = int_to_ptr.vmem [resolvable:$true] %s4795_s6 }
 0x3cc   :  { %4764 = vst [vmem:[#allocation8 + $0x130] sm:$0xff] %v4700_v51  ;;  %v4637_v1 = vmax.f32 %v4509_v62, %v4573_v40  ;;  %v4510_v4 = vadd.f32 %v7173_v9, %v4439_v55  ;;  %v4369_v3 = vadd.f32 %v4236_v48, %v3402_v19  ;;  %v3418_v51 = vadd.f32 %v7358_v28, %v7608_v57  ;;  %v5611_v40 = vld [vmem:[#allocation3 + $0x150] sm:$0xff]  ;;  %s5673_s16 = scalar_lea.vmem %s4796_s6, 8192  ;;  %p5678_p11 = scmp.lt.s32.totalorder %s4796_s6, %s4796_s6 }
 0x3cd   :  { %v4238_v23 = vpop.f32.mrf.mxu1  ;;  %v7435_v33 = vpop.f32.mrf.mxu0  ;;  %p5674_p10 = scmp.ne.s32.totalorder %s4796_s6, %s5673_s16  ;;  %p5679_p12 = scmp.lt.s32.totalorder %s5673_s16, %s5673_s16 }
 0x3ce   :  { %v4701_v38 = vadd.f32 %v5606_v39, %v4637_v1  ;;  %v4574_v44 = vmul.f32 0.1, %v4510_v4  ;;  %v4440_v7 = vmul.f32 %v7432_v49, %v4369_v3  ;;  %v7609_v39 = vld [vmem:[#allocation27_spill] sm:$0xff] }
 0x3cf   :  { %v4241_v30 = vpop.f32.mrf.mxu1  ;;  %v3467_v63 = vpop.f32.mrf.mxu0  ;;  %p5680_p13 = por %p5679_p12, %p5678_p11 }
 0x3d0   :  { %4765 = vst [vmem:[#allocation8 + $0x138] sm:$0xff] %v4701_v38  ;;  %v4638_v9 = vmax.f32 %v4510_v4, %v4574_v44  ;;  %v4511_v50 = vadd.f32 %v7440_v59, %v4440_v7  ;;  %v4370_v45 = vadd.f32 %v4241_v30, %v3407_v54  ;;  %v3423_v38 = vadd.f32 %v7364_v24, %v7609_v39  ;;  %v5612_v44 = vld [vmem:[#allocation3 + $0x158] sm:$0xff] }
 0x3d1   :  { %v4243_v34 = vpop.f32.mrf.mxu1  ;;  %v7446_v43 = vpop.f32.mrf.mxu0  ;;  %v7613_v39 = vld [vmem:[#allocation31_spill] sm:$0xff]  ;;  %p5681_p0 = pnand %p5680_p13, %p5674_p10 }
 0x3d2   :  { %v4702_v36 = vadd.f32 %v5609_v56, %v4638_v9  ;;  %v4575_v31 = vmul.f32 0.1, %v4511_v50  ;;  %v4441_v52 = vmul.f32 %v7432_v49, %v4370_v45  ;;  %v7610_v56 = vld [vmem:[#allocation28_spill] sm:$0xff] }
 0x3d3   :  { %v4244_v15 = vpop.f32.mrf.mxu1  ;;  %v3472_v12 = vpop.f32.mrf.mxu0 }
 0x3d4   :  { %4766 = vst [vmem:[#allocation8 + $0x140] sm:$0xff] %v4702_v36  ;;  %v4639_v42 = vmax.f32 %v4511_v50, %v4575_v31  ;;  %v4512_v25 = vadd.f32 %v7440_v59, %v4441_v52  ;;  %v4371_v5 = vadd.f32 %v4244_v15, %v3410_v37  ;;  %v3426_v36 = vadd.f32 %v7370_v10, %v7610_v56  ;;  %v5613_v31 = vld [vmem:[#allocation3 + $0x160] sm:$0xff] }
 0x3d5   :  { %v4246_v22 = vpop.f32.mrf.mxu1  ;;  %v7452_v29 = vpop.f32.mrf.mxu0  ;;  %v5617_v56 = vld [vmem:[#allocation3 + $0x180] sm:$0xff] }
 0x3d6   :  { %v4703_v18 = vadd.f32 %v5610_v21, %v4639_v42  ;;  %v4576_v61 = vmul.f32 0.1, %v4512_v25  ;;  %v4442_v16 = vmul.f32 %v7432_v49, %v4371_v5  ;;  %v7611_v21 = vld [vmem:[#allocation29_spill] sm:$0xff] }
 0x3d7   :  { %v4249_v62 = vpop.f32.mrf.mxu1  ;;  %v3475_v41 = vpop.f32.mrf.mxu0 }
 0x3d8   :  { %4767 = vst [vmem:[#allocation8 + $0x148] sm:$0xff] %v4703_v18  ;;  %v4640_v27 = vmax.f32 %v4512_v25, %v4576_v61  ;;  %v4513_v35 = vadd.f32 %v7440_v59, %v4442_v16  ;;  %v4372_v47 = vadd.f32 %v4249_v62, %v3415_v58  ;;  %v3431_v18 = vadd.f32 %v7376_v0, %v7611_v21  ;;  %v5614_v61 = vld [vmem:[#allocation3 + $0x168] sm:$0xff] }
 0x3d9   :  { %v4251_v19 = vpop.f32.mrf.mxu1  ;;  %v7458_v1 = vpop.f32.mrf.mxu0 }
 0x3da   :  { %v4704_v2 = vadd.f32 %v5611_v40, %v4640_v27  ;;  %v4577_v55 = vmul.f32 0.1, %v4513_v35  ;;  %v4443_v48 = vmul.f32 %v7432_v49, %v4372_v47  ;;  %v7612_v40 = vld [vmem:[#allocation30_spill] sm:$0xff] }
 0x3db   :  { %v4252_v4 = vpop.f32.mrf.mxu1  ;;  %v3480_v23 = vpop.f32.mrf.mxu0 }
 0x3dc   :  { %4768 = vst [vmem:[#allocation8 + $0x150] sm:$0xff] %v4704_v2  ;;  %v4641_v6 = vmax.f32 %v4513_v35, %v4577_v55  ;;  %v4514_v3 = vadd.f32 %v7440_v59, %v4443_v48  ;;  %v4373_v60 = vadd.f32 %v4252_v4, %v3418_v51  ;;  %v3434_v2 = vadd.f32 %v7382_v11, %v7612_v40  ;;  %v5615_v55 = vld [vmem:[#allocation3 + $0x170] sm:$0xff] }
 0x3dd   :  { %v4254_v54 = vpop.f32.mrf.mxu1  ;;  %v7464_v9 = vpop.f32.mrf.mxu0 }
 0x3de   :  { %v4705_v28 = vadd.f32 %v5612_v44, %v4641_v6  ;;  %v4578_v7 = vmul.f32 0.1, %v4514_v3  ;;  %v4444_v30 = vmul.f32 %v7432_v49, %v4373_v60  ;;  %v5616_v44 = vld [vmem:[#allocation3 + $0x178] sm:$0xff] }
 0x3df   :  { %v4257_v50 = vpop.f32.mrf.mxu1  ;;  %v3483_v34 = vpop.f32.mrf.mxu0 }
 0x3e0   :  { %4769 = vst [vmem:[#allocation8 + $0x158] sm:$0xff] %v4705_v28  ;;  %v4642_v63 = vmax.f32 %v4514_v3, %v4578_v7  ;;  %v4515_v45 = vadd.f32 %v7440_v59, %v4444_v30  ;;  %v4374_v20 = vadd.f32 %v4257_v50, %v3423_v38  ;;  %v3439_v38 = vadd.f32 %v7388_v53, %v7613_v39 }
 0x3e1   :  { %v4259_v37 = vpop.f32.mrf.mxu1  ;;  %v7470_v42 = vpop.f32.mrf.mxu0 }
 0x3e2   :  { %v4706_v24 = vadd.f32 %v5613_v31, %v4642_v63  ;;  %v4579_v52 = vmul.f32 0.1, %v4515_v45  ;;  %v4445_v15 = vmul.f32 %v7432_v49, %v4374_v20  ;;  %v7614_v20 = vld [vmem:[#allocation32_spill] sm:$0xff] }
 0x3e3   :  { %v4260_v25 = vpop.f32.mrf.mxu1  ;;  %v3488_v22 = vpop.f32.mrf.mxu0  ;;  %v3442_v37 = vadd.f32 %v7394_v26, %v7614_v20 }
 0x3e4   :  { %4770 = vst [vmem:[#allocation8 + $0x160] sm:$0xff] %v4706_v24  ;;  %v4643_v12 = vmax.f32 %v4515_v45, %v4579_v52  ;;  %v4516_v5 = vadd.f32 %v7440_v59, %v4445_v15  ;;  %v4375_v8 = vadd.f32 %v4260_v25, %v3426_v36 }
 0x3e5   :  { %v4262_v58 = vpop.f32.mrf.mxu1  ;;  %v7476_v27 = vpop.f32.mrf.mxu0 }
 0x3e6   :  { %v4707_v10 = vadd.f32 %v5614_v61, %v4643_v12  ;;  %v4580_v16 = vmul.f32 0.1, %v4516_v5  ;;  %v4446_v62 = vmul.f32 %v7432_v49, %v4375_v8  ;;  %v5618_v8 = vld [vmem:[#allocation3 + $0x188] sm:$0xff] }
 0x3e7   :  { %v4265_v35 = vpop.f32.mrf.mxu1  ;;  %v3491_v19 = vpop.f32.mrf.mxu0 }
 0x3e8   :  { %4771 = vst [vmem:[#allocation8 + $0x168] sm:$0xff] %v4707_v10  ;;  %v4644_v41 = vmax.f32 %v4516_v5, %v4580_v16  ;;  %v4517_v47 = vadd.f32 %v7440_v59, %v4446_v62  ;;  %v4376_v57 = vadd.f32 %v4265_v35, %v3431_v18  ;;  %v7615_v5 = vld [vmem:[#allocation33_spill] sm:$0xff]  ;;  %v7616_v35 = vld [vmem:[#allocation34_spill] sm:$0xff] }
 0x3e9   :  { %v4267_v51 = vpop.f32.mrf.mxu1  ;;  %v3447_v22 = vadd.f32 %v7400_v32, %v7615_v5 }
 0x3ea   :  { %v4708_v0 = vadd.f32 %v5615_v55, %v4644_v41  ;;  %v4581_v48 = vmul.f32 0.1, %v4517_v47  ;;  %v4447_v4 = vmul.f32 %v7432_v49, %v4376_v57  ;;  %v3450_v41 = vadd.f32 %v7406_v46, %v7616_v35  ;;  %v7621_v35 = vld [vmem:[#allocation39_spill] sm:$0xff] }
 0x3eb   :  { %v4268_v6 = vpop.f32.mrf.mxu1 }
 0x3ec   :  { %4772 = vst [vmem:[#allocation8 + $0x170] sm:$0xff] %v4708_v0  ;;  %v4645_v3 = vmax.f32 %v4517_v47, %v4581_v48  ;;  %v4518_v23 = vadd.f32 %v7440_v59, %v4447_v4  ;;  %v4377_v60 = vadd.f32 %v4268_v6, %v3434_v2  ;;  %v5619_v47 = vld [vmem:[#allocation3 + $0x190] sm:$0xff]  ;;  %v7617_v48 = vld [vmem:[#allocation35_spill] sm:$0xff] }
 0x3ed   :  { %v4270_v54 = vpop.f32.mrf.mxu1  ;;  %v3455_v4 = vadd.f32 %v7412_v13, %v7617_v48  ;;  %v5620_v6 = vld [vmem:[#allocation3 + $0x198] sm:$0xff] }
 0x3ee   :  { %v4709_v28 = vadd.f32 %v5616_v44, %v4645_v3  ;;  %v4582_v7 = vmul.f32 0.1, %v4518_v23  ;;  %v4448_v11 = vmul.f32 %v7432_v49, %v4377_v60 }
 0x3ef   :  { %v4273_v30 = vpop.f32.mrf.mxu1 }
 0x3f0   :  { %4773 = vst [vmem:[#allocation8 + $0x178] sm:$0xff] %v4709_v28  ;;  %v4646_v50 = vmax.f32 %v4518_v23, %v4582_v7  ;;  %v4519_v63 = vadd.f32 %v7440_v59, %v4448_v11  ;;  %v4378_v45 = vadd.f32 %v4273_v30, %v3439_v38  ;;  %v7618_v28 = vld [vmem:[#allocation36_spill] sm:$0xff] }
 0x3f1   :  { %v4275_v34 = vpop.f32.mrf.mxu1  ;;  %v3458_v7 = vadd.f32 %v7418_v14, %v7618_v28  ;;  %v5621_v11 = vld [vmem:[#allocation3 + $0x1a0] sm:$0xff]  ;;  %v5626_v28 = vld [vmem:[#allocation3 + $0x1c8] sm:$0xff] }
 0x3f2   :  { %v4710_v36 = vadd.f32 %v5617_v56, %v4646_v50  ;;  %v4583_v31 = vmul.f32 0.1, %v4519_v63  ;;  %v4449_v53 = vmul.f32 %v7432_v49, %v4378_v45  ;;  %v7619_v56 = vld [vmem:[#allocation37_spill] sm:$0xff] }
 0x3f3   :  { %v4276_v24 = vpop.f32.mrf.mxu1 }
 0x3f4   :  { %4774 = vst [vmem:[#allocation8 + $0x180] sm:$0xff] %v4710_v36  ;;  %v4647_v52 = vmax.f32 %v4519_v63, %v4583_v31  ;;  %v4520_v15 = vadd.f32 %v7440_v59, %v4449_v53  ;;  %v4379_v25 = vadd.f32 %v4276_v24, %v3442_v37  ;;  %v3463_v36 = vadd.f32 %v7424_v17, %v7619_v56  ;;  %v5622_v31 = vld [vmem:[#allocation3 + $0x1a8] sm:$0xff] }
 0x3f5   :  { %v4278_v12 = vpop.f32.mrf.mxu1 }
 0x3f6   :  { %v4711_v58 = vadd.f32 %v5618_v8, %v4647_v52  ;;  %v4584_v21 = vmul.f32 0.1, %v4520_v15  ;;  %v4450_v26 = vmul.f32 %v7432_v49, %v4379_v25 }
 0x3f7   :  { %v4281_v18 = vpop.f32.mrf.mxu1 }
 0x3f8   :  { %4775 = vst [vmem:[#allocation8 + $0x188] sm:$0xff] %v4711_v58  ;;  %v4648_v61 = vmax.f32 %v4520_v15, %v4584_v21  ;;  %v4521_v10 = vadd.f32 %v7440_v59, %v4450_v26  ;;  %v4380_v16 = vadd.f32 %v4281_v18, %v3447_v22  ;;  %v7620_v22 = vld [vmem:[#allocation38_spill] sm:$0xff] }
 0x3f9   :  { %v4283_v62 = vpop.f32.mrf.mxu1  ;;  %v3466_v8 = vadd.f32 %v7435_v33, %v7620_v22  ;;  %v5623_v58 = vld [vmem:[#allocation3 + $0x1b0] sm:$0xff] }
 0x3fa   :  { %v4712_v19 = vadd.f32 %v5619_v47, %v4648_v61  ;;  %v4585_v57 = vmul.f32 0.1, %v4521_v10  ;;  %v4451_v32 = vmul.f32 %v7432_v49, %v4380_v16  ;;  %v5624_v47 = vld [vmem:[#allocation3 + $0x1b8] sm:$0xff] }
 0x3fb   :  { %v4284_v51 = vpop.f32.mrf.mxu1 }
 0x3fc   :  { %4776 = vst [vmem:[#allocation8 + $0x190] sm:$0xff] %v4712_v19  ;;  %v4649_v40 = vmax.f32 %v4521_v10, %v4585_v57  ;;  %v4522_v2 = vadd.f32 %v7440_v59, %v4451_v32  ;;  %v4381_v55 = vadd.f32 %v4284_v51, %v3450_v41  ;;  %v3471_v41 = vadd.f32 %v7446_v43, %v7621_v35 }
 0x3fd   :  { %v4286_v0 = vpop.f32.mrf.mxu1 }
 0x3fe   :  { %v4713_v3 = vadd.f32 %v5620_v6, %v4649_v40  ;;  %v4586_v23 = vmul.f32 0.1, %v4522_v2  ;;  %v4452_v46 = vmul.f32 %v7432_v49, %v4381_v55  ;;  %v7622_v0 = vld [vmem:[#allocation40_spill] sm:$0xff] }
 0x3ff   :  { %v4289_v60 = vpop.f32.mrf.mxu1  ;;  %v3474_v48 = vadd.f32 %v7452_v29, %v7622_v0 }
 0x400   :  { %4777 = vst [vmem:[#allocation8 + $0x198] sm:$0xff] %v4713_v3  ;;  %v4650_v54 = vmax.f32 %v4522_v2, %v4586_v23  ;;  %v4523_v39 = vadd.f32 %v7440_v59, %v4452_v46  ;;  %v4382_v38 = vadd.f32 %v4289_v60, %v3455_v4  ;;  %v5625_v4 = vld [vmem:[#allocation3 + $0x1c0] sm:$0xff] }
 0x401   :  { %v4291_v44 = vpop.f32.mrf.mxu1 }
 0x402   :  { %v4714_v30 = vadd.f32 %v5621_v11, %v4650_v54  ;;  %v4587_v50 = vmul.f32 0.1, %v4523_v39  ;;  %v4453_v13 = vmul.f32 %v7432_v49, %v4382_v38  ;;  %v7623_v38 = vld [vmem:[#allocation41_spill] sm:$0xff] }
 0x403   :  { %v4292_v63 = vpop.f32.mrf.mxu1  ;;  %v3479_v44 = vadd.f32 %v7458_v1, %v7623_v38 }
 0x404   :  { %4778 = vst [vmem:[#allocation8 + $0x1a0] sm:$0xff] %v4714_v30  ;;  %v4651_v45 = vmax.f32 %v4523_v39, %v4587_v50  ;;  %v4524_v34 = vadd.f32 %v7440_v59, %v4453_v13  ;;  %v4383_v20 = vadd.f32 %v4292_v63, %v3458_v7 }
 0x405   :  { %v4294_v37 = vpop.f32.mrf.mxu1 }
 0x406   :  { %v4715_v53 = vadd.f32 %v5622_v31, %v4651_v45  ;;  %v4588_v24 = vmul.f32 0.1, %v4524_v34  ;;  %v4454_v14 = vmul.f32 %v7432_v49, %v4383_v20  ;;  %v5627_v37 = vld [vmem:[#allocation3 + $0x1d0] sm:$0xff] }
 0x407   :  { %v4297_v52 = vpop.f32.mrf.mxu1 }
 0x408   :  { %4779 = vst [vmem:[#allocation8 + $0x1a8] sm:$0xff] %v4715_v53  ;;  %v4652_v15 = vmax.f32 %v4524_v34, %v4588_v24  ;;  %v4525_v25 = vadd.f32 %v7440_v59, %v4454_v14  ;;  %v4384_v12 = vadd.f32 %v4297_v52, %v3463_v36  ;;  %v7624_v34 = vld [vmem:[#allocation42_spill] sm:$0xff] }
 0x409   :  { %v4299_v5 = vpop.f32.mrf.mxu1  ;;  %v3482_v20 = vadd.f32 %v7464_v9, %v7624_v34 }
 0x40a   :  { %v4716_v21 = vadd.f32 %v5623_v58, %v4652_v15  ;;  %v4589_v26 = vmul.f32 0.1, %v4525_v25  ;;  %v4455_v17 = vmul.f32 %v7432_v49, %v4384_v12  ;;  %v7625_v15 = vld [vmem:[#allocation43_spill] sm:$0xff] }
 0x40b   :  { %v4300_v18 = vpop.f32.mrf.mxu1  ;;  %v5628_v12 = vld [vmem:[#allocation3 + $0x1d8] sm:$0xff] }
 0x40c   :  { %4780 = vst [vmem:[#allocation8 + $0x1b0] sm:$0xff] %v4716_v21  ;;  %v4653_v61 = vmax.f32 %v4525_v25, %v4589_v26  ;;  %v4526_v10 = vadd.f32 %v7440_v59, %v4455_v17  ;;  %v4385_v16 = vadd.f32 %v4300_v18, %v3466_v8  ;;  %v3487_v25 = vadd.f32 %v7470_v42, %v7625_v15  ;;  %v7626_v18 = vld [vmem:[#allocation44_spill] sm:$0xff] }
 0x40d   :  { %v4302_v62 = vpop.f32.mrf.mxu1 }
 0x40e   :  { %v4717_v19 = vadd.f32 %v5624_v47, %v4653_v61  ;;  %v4590_v57 = vmul.f32 0.1, %v4526_v10  ;;  %v4456_v33 = vmul.f32 %v7432_v49, %v4385_v16  ;;  %v3490_v61 = vadd.f32 %v7476_v27, %v7626_v18 }
 0x40f   :  { %v4305_v32 = vpop.f32.mrf.mxu1 }
 0x410   :  { %4781 = vst [vmem:[#allocation8 + $0x1b8] sm:$0xff] %v4717_v19  ;;  %v4654_v51 = vmax.f32 %v4526_v10, %v4590_v57  ;;  %v4527_v40 = vadd.f32 %v7440_v59, %v4456_v33  ;;  %v4386_v2 = vadd.f32 %v4305_v32, %v3471_v41  ;;  %v5629_v10 = vld [vmem:[#allocation3 + $0x1e0] sm:$0xff]  ;;  %v5630_v33 = vld [vmem:[#allocation3 + $0x1e8] sm:$0xff] }
 0x411   :  { %v4307_v55 = vpop.f32.mrf.mxu1 }
 0x412   :  { %v4718_v6 = vadd.f32 %v5625_v4, %v4654_v51  ;;  %v4591_v3 = vmul.f32 0.1, %v4527_v40  ;;  %v4457_v43 = vmul.f32 %v7432_v49, %v4386_v2  ;;  %v5631_v55 = vld [vmem:[#allocation3 + $0x1f0] sm:$0xff] }
 0x413   :  { %v4308_v23 = vpop.f32.mrf.mxu1 }
 0x414   :  { %4782 = vst [vmem:[#allocation8 + $0x1c0] sm:$0xff] %v4718_v6  ;;  %v4655_v46 = vmax.f32 %v4527_v40, %v4591_v3  ;;  %v4528_v60 = vadd.f32 %v7440_v59, %v4457_v43  ;;  %v4387_v54 = vadd.f32 %v4308_v23, %v3474_v48  ;;  %v5632_v6 = vld [vmem:[#allocation3 + $0x1f8] sm:$0xff] }
 0x415   :  { %v4310_v39 = vpop.f32.mrf.mxu1 }
 0x416   :  { %v4719_v7 = vadd.f32 %v5626_v28, %v4655_v46  ;;  %v4592_v11 = vmul.f32 0.1, %v4528_v60  ;;  %v4458_v29 = vmul.f32 %v7432_v49, %v4387_v54 }
 0x417   :  { %v4313_v30 = vpop.f32.mrf.mxu1 }
 0x418   :  { %4783 = vst [vmem:[#allocation8 + $0x1c8] sm:$0xff] %v4719_v7  ;;  %v4656_v50 = vmax.f32 %v4528_v60, %v4592_v11  ;;  %v4529_v13 = vadd.f32 %v7440_v59, %v4458_v29  ;;  %v4388_v63 = vadd.f32 %v4313_v30, %v3479_v44 }
 0x419   :  { %v4315_v45 = vpop.f32.mrf.mxu1 }
 0x41a   :  { %v4720_v56 = vadd.f32 %v5627_v37, %v4656_v50  ;;  %v4593_v36 = vmul.f32 0.1, %v4529_v13  ;;  %v4459_v1 = vmul.f32 %v7432_v49, %v4388_v63 }
 0x41b   :  { %v4316_v31 = vpop.f32.mrf.mxu1 }
 0x41c   :  { %4784 = vst [vmem:[#allocation8 + $0x1d0] sm:$0xff] %v4720_v56  ;;  %v4657_v53 = vmax.f32 %v4529_v13, %v4593_v36  ;;  %v4530_v24 = vadd.f32 %v7440_v59, %v4459_v1  ;;  %v4389_v14 = vadd.f32 %v4316_v31, %v3482_v20 }
 0x41d   :  { %v4318_v52 = vpop.f32.mrf.mxu1 }
 0x41e   :  { %v4721_v5 = vadd.f32 %v5628_v12, %v4657_v53  ;;  %v4594_v22 = vmul.f32 0.1, %v4530_v24  ;;  %v4460_v9 = vmul.f32 %v7432_v49, %v4389_v14 }
 0x41f   :  { %v4321_v8 = vpop.f32.mrf.mxu1 }
 0x420   :  { %4785 = vst [vmem:[#allocation8 + $0x1d8] sm:$0xff] %v4721_v5  ;;  %v4658_v58 = vmax.f32 %v4530_v24, %v4594_v22  ;;  %v4531_v21 = vadd.f32 %v7440_v59, %v4460_v9  ;;  %v4390_v26 = vadd.f32 %v4321_v8, %v3487_v25 }
 0x421   :  { %v4323_v17 = vpop.f32.mrf.mxu1 }
 0x422   :  { %v4722_v16 = vadd.f32 %v5629_v10, %v4658_v58  ;;  %v4595_v62 = vmul.f32 0.1, %v4531_v21  ;;  %v4461_v42 = vmul.f32 %v7432_v49, %v4390_v26 }
 0x423   :  { %v4324_v35 = vpop.f32.mrf.mxu1 }
 0x424   :  { %4786 = vst [vmem:[#allocation8 + $0x1e0] sm:$0xff] %v4722_v16  ;;  %v4659_v41 = vmax.f32 %v4531_v21, %v4595_v62  ;;  %v4532_v47 = vadd.f32 %v7440_v59, %v4461_v42  ;;  %v4391_v19 = vadd.f32 %v4324_v35, %v3490_v61 }
 0x425   :  { %v4326_v57 = vpop.f32.mrf.mxu1 }
 0x426   :  { %v4723_v32 = vadd.f32 %v5630_v33, %v4659_v41  ;;  %v4596_v51 = vmul.f32 0.1, %v4532_v47  ;;  %v4462_v40 = vmul.f32 %v7432_v49, %v4391_v19 }
 0x428   :  { %4787 = vst [vmem:[#allocation8 + $0x1e8] sm:$0xff] %v4723_v32  ;;  %v4660_v2 = vmax.f32 %v4532_v47, %v4596_v51  ;;  %v4533_v27 = vadd.f32 %v7440_v59, %v4462_v40 }
 0x42a   :  { %v4724_v0 = vadd.f32 %v5631_v55, %v4660_v2  ;;  %v4597_v48 = vmul.f32 0.1, %v4533_v27 }
 0x42c   :  { %4788 = vst [vmem:[#allocation8 + $0x1f0] sm:$0xff] %v4724_v0  ;;  %v4661_v4 = vmax.f32 %v4533_v27, %v4597_v48 }
 0x42e   :  { %v4725_v3 = vadd.f32 %v5632_v6, %v4661_v4 }
 0x430   :  { %4789 = vst [vmem:[#allocation8 + $0x1f8] sm:$0xff] %v4725_v3 }
 0x431   :  { %5684 = shalt.err (!%p5681_p0)
}
 0x432   :  { %4801 = dma.vmem_to_hbm [thread:$0]  %s4796_s6, 8192, %s7554_s7, [#allocation5], %s5700_s27, %s5700_s27, %s5701_s28  }
 0x433   :  { %5697 = dma.done.wait [#allocation5], 8192  }
 0x434   :  { %5698 = vsyncadd [#allocation5], 4294959104 }
 0x435   :  { %4805 = vsyncpa [#allocation4], 1 }
 0x436   :  { %4806 = vsyncpa [#allocation7], 1 }
 0x437   :  { %4807 = vsyncpa [#allocation5], 1 }

</bundles_post_ra>
